<compile_context>
chip_gen: v5e
topology: v5e:2x2
jax: 0.10.0
libtpu: 0.0.40
codegen_flags: <defaults>
</compile_context>

<pallas_src>
import numpy as np
import jax
import jax.numpy as jnp
from jax import lax
from jax.experimental import pallas as pl
from jax.experimental.pallas import tpu as pltpu


# ---------------------------------------------------------------------------
# Fused Pallas kernel (processes one batch element per grid step)
# ---------------------------------------------------------------------------

def fused_cnn_kernel(x_ref, w1_ref, b1_ref, p1_ref, g2_ref, w2_ref, b2_ref,
                     p2_ref, wf1_ref, bf1_ref, wf2_ref, bf2_ref, o_ref):
    f32 = jnp.float32

    # ---- conv1 + bias + ReLU --------------------------------------------
    # x_ref: (10, 18, 16) = input zero-padded in (D, H), W on lanes.
    # 9 accumulated matmuls, one per (kz, ky) tap; the banded weight handles
    # the kx taps and the W-boundary zeros, and orders the output columns as
    # (dx, pw, cout) so the W max-pool is a free lane-half max.
    # y1: (128, 256)  rows = d*16 + h,  lanes = dx*128 + pw*16 + co
    y1 = jnp.zeros((128, 256), f32)
    for kz in range(3):
        for ky in range(3):
            slab = x_ref[kz:kz + 8, ky:ky + 16, :].reshape(128, 16)
            y1 = y1 + jnp.dot(slab, w1_ref[kz * 3 + ky],
                              preferred_element_type=f32)
    y1 = jnp.maximum(y1 + b1_ref[...], 0.0)

    # ---- maxpool1 (2x2x2) -------------------------------------------------
    # W: max of the two 128-lane halves.  (D, H): four one-hot row-gather
    # matmuls (one per (dz, dy)) followed by elementwise max.
    t = jnp.maximum(y1[:, :128], y1[:, 128:])                       # (128, 128)
    a1 = jnp.dot(p1_ref[0], t, preferred_element_type=f32)
    for j in range(1, 4):
        a1 = jnp.maximum(a1, jnp.dot(p1_ref[j], t, preferred_element_type=f32))
    # a1: (32, 128)  rows = d*8 + h (4x8 volume), lanes = w*16 + c (8x16)

    # ---- conv2 + bias + ReLU ----------------------------------------------
    # Per (kz, ky) tap: a 0/1 row-gather matmul shifts the (D, H) rows and
    # supplies the zero padding, then a banded-weight matmul does the
    # (kx, cin) contraction.  y2: (32, 256) rows = d*8+h, lanes = dx*128+pw*32+co
    y2 = jnp.zeros((32, 256), f32)
    for kk in range(9):
        slab = jnp.dot(g2_ref[kk], a1, preferred_element_type=f32)   # (32, 128)
        y2 = y2 + jnp.dot(slab, w2_ref[kk], preferred_element_type=f32)
    y2 = jnp.maximum(y2 + b2_ref[...], 0.0)

    # ---- maxpool2 (2x2x2) -------------------------------------------------
    t = jnp.maximum(y2[:, :128], y2[:, 128:])                        # (32, 128)
    a2 = jnp.dot(p2_ref[0], t, preferred_element_type=f32)
    for j in range(1, 4):
        a2 = jnp.maximum(a2, jnp.dot(p2_ref[j], t, preferred_element_type=f32))
    # a2: (8, 128)  rows = d*4 + h (2x4), lanes = w*32 + c (4x32)
    # == the flattened conv features in the kernel's own layout.

    # ---- fc1 -> ReLU -> fc2 -------------------------------------------------
    # fc1 weight was pre-permuted to this feature layout and split into 8 row
    # blocks of 128; fc2 weight/bias are zero-padded to 128 output lanes so the
    # only HBM store is a full 128-lane row.
    h = jnp.zeros((1, 128), f32)
    for r in range(8):
        h = h + jnp.dot(a2[r:r + 1, :], wf1_ref[r], preferred_element_type=f32)
    h = jnp.maximum(h + bf1_ref[...], 0.0)
    out = jnp.dot(h, wf2_ref[...], preferred_element_type=f32) + bf2_ref[...]

    o_ref[...] = jnp.broadcast_to(out, (8, 128)).astype(o_ref.dtype)


def _pallas_forward(xpad, packed):
    n = xpad.shape[0]
    (w1b, b1b, p1s, g2, w2b, b2b, p2s, wf1, bf1, wf2, bf2) = packed
    return pl.pallas_call(
        fused_cnn_kernel,
        out_shape=jax.ShapeDtypeStruct((n, 8, 128), jnp.float32),
        grid=(n,),
        in_specs=[
            pl.BlockSpec((None, 10, 18, 16), lambda i: (i, 0, 0, 0)),  # xpad
            pl.BlockSpec((9, 16, 256), lambda i: (0, 0, 0)),           # w1b
            pl.BlockSpec((1, 256), lambda i: (0, 0)),                  # b1b
            pl.BlockSpec((4, 32, 128), lambda i: (0, 0, 0)),           # pool1 sel
            pl.BlockSpec((9, 32, 32), lambda i: (0, 0, 0)),            # conv2 gather
            pl.BlockSpec((9, 128, 256), lambda i: (0, 0, 0)),          # w2b
            pl.BlockSpec((1, 256), lambda i: (0, 0)),                  # b2b
            pl.BlockSpec((4, 8, 32), lambda i: (0, 0, 0)),             # pool2 sel
            pl.BlockSpec((8, 128, 128), lambda i: (0, 0, 0)),          # fc1 W
            pl.BlockSpec((1, 128), lambda i: (0, 0)),                  # fc1 b
            pl.BlockSpec((128, 128), lambda i: (0, 0)),                # fc2 W (padded)
            pl.BlockSpec((1, 128), lambda i: (0, 0)),                  # fc2 b (padded)
        ],
        out_specs=pl.BlockSpec((None, 8, 128), lambda i: (i, 0, 0)),
        compiler_params=pltpu.CompilerParams(
            dimension_semantics=("parallel",)),
    )(xpad, w1b, b1b, p1s, g2, w2b, b2b, p2s, wf1, bf1, wf2, bf2)


@jax.jit
def simple3dcnn_forward(x, packed):
    """x: (N, 1, 8, 16, 16) NCDHW.  Returns (N, 2) logits."""
    # Zero-pad D and H by 1 (W padding is folded into the banded conv weights).
    xpad = jnp.pad(x[:, 0], ((0, 0), (1, 1), (1, 1), (0, 0)))   # (N, 10, 18, 16)
    out = _pallas_forward(xpad, packed)                          # (N, 8, 128)
    return out[:, 0, :2]


# ---------------------------------------------------------------------------
# One-time weight preprocessing (numpy; all matrices are tiny)
# ---------------------------------------------------------------------------

def _banded_conv_weight(w, b, width):
    """Conv3d weight (Cout, Cin, 3, 3, 3) -> per-(kz,ky) banded matmul weights.

    wb[kz*3+ky, u*Cin+ci, dx*(width//2)*Cout + pw*Cout + co]
        = w[co, ci, kz, ky, u - (2*pw+dx) + 1]   if the kx tap is in range,
        = 0                                      otherwise (W zero padding).
    The dx-major column order makes the later W max-pool a lane-half max.
    """
    cout, cin = w.shape[0], w.shape[1]
    half = width // 2
    wb = np.zeros((9, width * cin, width * cout), np.float32)
    bb = np.zeros((1, width * cout), np.float32)
    for kz in range(3):
        for ky in range(3):
            kk = kz * 3 + ky
            for wo in range(width):
                pw, dx = wo // 2, wo % 2
                col0 = dx * half * cout + pw * cout
                bb[0, col0:col0 + cout] = b
                for kx in range(3):
                    u = wo - 1 + kx
                    if 0 <= u < width:
                        wb[kk, u * cin:(u + 1) * cin, col0:col0 + cout] = \
                            w[:, :, kz, ky, kx].T
    return wb, bb


def _pool_select(nd, nh):
    """(4, nd//2*nh//2, nd*nh) one-hot gathers for a 2x2 (d, h) max-pool over a
    (d*nh + h)-flattened row axis; index j encodes (dz, dy)."""
    pd, ph = nd // 2, nh // 2
    sel = np.zeros((4, pd * ph, nd * nh), np.float32)
    for j in range(4):
        dz, dy = j // 2, j % 2
        for r in range(pd * ph):
            i, k = r // ph, r % ph
            sel[j, r, (2 * i + dz) * nh + 2 * k + dy] = 1.0
    return sel


def _conv2_row_gather():
    """(9, 32, 32) one-hot gathers: output row d*8+h of tap (kz, ky) picks the
    pooled-conv1 row (d-1+kz)*8 + (h-1+ky), or all-zero outside the volume
    (this implements conv2's D/H zero padding)."""
    g = np.zeros((9, 32, 32), np.float32)
    for kz in range(3):
        for ky in range(3):
            kk = kz * 3 + ky
            for r in range(32):
                d, h = r // 8, r % 8
                ds, hs = d - 1 + kz, h - 1 + ky
                if 0 <= ds < 4 and 0 <= hs < 8:
                    g[kk, r, ds * 8 + hs] = 1.0
    return g


def pack_params(params):
    c1w, c1b, c2w, c2b, f1w, f1b, f2w, f2b = [np.asarray(p, np.float32)
                                              for p in params]

    w1b, b1b = _banded_conv_weight(c1w, c1b, width=16)   # (9,16,256), (1,256)
    w2b, b2b = _banded_conv_weight(c2w, c2b, width=8)    # (9,128,256), (1,256)
    p1s = _pool_select(8, 16)                            # (4,32,128)
    p2s = _pool_select(4, 8)                             # (4,8,32)
    g2 = _conv2_row_gather()                             # (9,32,32)

    # fc1: permute the 1024 input features from PyTorch's (c, d, h, w) flatten
    # order to the kernel's (row = d*4+h, lane = w*32+c) layout; split into
    # 8 row blocks of 128.
    wf1 = np.zeros((8, 128, 128), np.float32)
    for r in range(8):
        d, h = r // 4, r % 4
        for l in range(128):
            w_, c = l // 32, l % 32
            wf1[r, l, :] = f1w[:, c * 32 + d * 16 + h * 4 + w_]
    bf1 = f1b.reshape(1, 128)

    # fc2: zero-pad the 2 output logits to a lane-dense 128-wide output row.
    wf2 = np.zeros((128, 128), np.float32)
    wf2[:, :2] = f2w.T
    bf2 = np.zeros((1, 128), np.float32)
    bf2[0, :2] = f2b

    return tuple(jnp.asarray(a) for a in
                 (w1b, b1b, p1s, g2, w2b, b2b, p2s, wf1, bf1, wf2, bf2))


# ---------------------------------------------------------------------------
# Pure-JAX reference (mirrors the PyTorch module exactly)
# ---------------------------------------------------------------------------

def reference_forward(x, params):
    (c1w, c1b, c2w, c2b, f1w, f1b, f2w, f2b) = params

    def conv3d(x, w, b):
        y = lax.conv_general_dilated(
            x, w, window_strides=(1, 1, 1), padding="SAME",
            dimension_numbers=("NCDHW", "OIDHW", "NCDHW"))
        return y + b.reshape(1, -1, 1, 1, 1)

    def pool(x):
        return lax.reduce_window(x, -jnp.inf, lax.max,
                                 (1, 1, 2, 2, 2), (1, 1, 2, 2, 2), "VALID")

    y = pool(jax.nn.relu(conv3d(x, c1w, c1b)))
    y = pool(jax.nn.relu(conv3d(y, c2w, c2b)))
    y = y.reshape(y.shape[0], -1)
    y = jax.nn.relu(y @ f1w.T + f1b)
    return y @ f2w.T + f2b


# ---------------------------------------------------------------------------
# Deterministic parameter init (same shapes as the PyTorch module)
# ---------------------------------------------------------------------------

def init_params(key):
    def u(key, shape, fan_in):
        bound = 1.0 / np.sqrt(fan_in)
        return jax.random.uniform(key, shape, jnp.float32, -bound, bound)

    ks = jax.random.split(key, 8)
    c1w = u(ks[0], (16, 1, 3, 3, 3), 1 * 27)
    c1b = u(ks[1], (16,), 1 * 27)
    c2w = u(ks[2], (32, 16, 3, 3, 3), 16 * 27)
    c2b = u(ks[3], (32,), 16 * 27)
    f1w = u(ks[4], (128, 32 * 2 * 4 * 4), 32 * 2 * 4 * 4)
    f1b = u(ks[5], (128,), 32 * 2 * 4 * 4)
    f2w = u(ks[6], (2, 128), 128)
    f2b = u(ks[7], (2,), 128)
    return (c1w, c1b, c2w, c2b, f1w, f1b, f2w, f2b)


if __name__ == "__main__":
    key = jax.random.PRNGKey(0)
    k_param, k_x = jax.random.split(key)
    params = init_params(k_param)
    packed = pack_params(params)

    # Input implied by fc1 (32*2*4*4 after two /2 pools): (N, 1, 8, 16, 16)
    x = jax.random.normal(k_x, (2, 1, 8, 16, 16), dtype=jnp.float32)

    out = jax.block_until_ready(simple3dcnn_forward(x, packed))
    ref = jax.block_until_ready(reference_forward(x, params))

    assert out.shape == (2, 2), out.shape
    np.testing.assert_allclose(np.asarray(out), np.asarray(ref),
                               rtol=1e-3, atol=2e-4)

    print("KERNEL_OK")
</pallas_src>

<mosaic_0001>
module attributes {stable_mosaic.version = 11 : i64} {
  func.func @fused_cnn_kernel(%arg0: i32, %arg1: memref<1x10x18x16xf32, #tpu.memory_space<vmem>>, %arg2: memref<9x16x256xf32, #tpu.memory_space<vmem>>, %arg3: memref<1x256xf32, #tpu.memory_space<vmem>>, %arg4: memref<4x32x128xf32, #tpu.memory_space<vmem>>, %arg5: memref<9x32x32xf32, #tpu.memory_space<vmem>>, %arg6: memref<9x128x256xf32, #tpu.memory_space<vmem>>, %arg7: memref<1x256xf32, #tpu.memory_space<vmem>>, %arg8: memref<4x8x32xf32, #tpu.memory_space<vmem>>, %arg9: memref<8x128x128xf32, #tpu.memory_space<vmem>>, %arg10: memref<1x128xf32, #tpu.memory_space<vmem>>, %arg11: memref<128x128xf32, #tpu.memory_space<vmem>>, %arg12: memref<1x128xf32, #tpu.memory_space<vmem>>, %arg13: memref<1x8x128xf32, #tpu.memory_space<vmem>>) attributes {dimension_semantics = [#tpu.dimension_semantics<parallel>], iteration_bounds = array<i64: 2>, scalar_prefetch = 0 : i64, scratch_operands = 0 : i64, tpu.core_type = #tpu.core_type<tc>, window_params = [{transform_indices = @transform_0, window_bounds = array<i64: 1, 10, 18, 16>}, {pipeline_mode = #tpu.pipeline_mode<synchronous>, transform_indices = @transform_1, window_bounds = array<i64: 9, 16, 256>}, {pipeline_mode = #tpu.pipeline_mode<synchronous>, transform_indices = @transform_2, window_bounds = array<i64: 1, 256>}, {pipeline_mode = #tpu.pipeline_mode<synchronous>, transform_indices = @transform_3, window_bounds = array<i64: 4, 32, 128>}, {pipeline_mode = #tpu.pipeline_mode<synchronous>, transform_indices = @transform_4, window_bounds = array<i64: 9, 32, 32>}, {pipeline_mode = #tpu.pipeline_mode<synchronous>, transform_indices = @transform_5, window_bounds = array<i64: 9, 128, 256>}, {pipeline_mode = #tpu.pipeline_mode<synchronous>, transform_indices = @transform_6, window_bounds = array<i64: 1, 256>}, {pipeline_mode = #tpu.pipeline_mode<synchronous>, transform_indices = @transform_7, window_bounds = array<i64: 4, 8, 32>}, {pipeline_mode = #tpu.pipeline_mode<synchronous>, transform_indices = @transform_8, window_bounds = array<i64: 8, 128, 128>}, {pipeline_mode = #tpu.pipeline_mode<synchronous>, transform_indices = @transform_9, window_bounds = array<i64: 1, 128>}, {pipeline_mode = #tpu.pipeline_mode<synchronous>, transform_indices = @transform_10, window_bounds = array<i64: 128, 128>}, {pipeline_mode = #tpu.pipeline_mode<synchronous>, transform_indices = @transform_11, window_bounds = array<i64: 1, 128>}, {transform_indices = @transform_12, window_bounds = array<i64: 1, 8, 128>}]} {
    %cst = arith.constant 0.000000e+00 : f32
    %0 = vector.broadcast %cst : f32 to vector<128x256xf32>
    %c0 = arith.constant 0 : index
    %c0_0 = arith.constant 0 : index
    %c0_1 = arith.constant 0 : index
    %c0_2 = arith.constant 0 : index
    %1 = vector.load %arg1[%c0, %c0_0, %c0_1, %c0_2] : memref<1x10x18x16xf32, #tpu.memory_space<vmem>>, vector<1x8x16x16xf32>
    %2 = vector.shape_cast %1 : vector<1x8x16x16xf32> to vector<8x16x16xf32>
    %3 = vector.shape_cast %2 : vector<8x16x16xf32> to vector<128x16xf32>
    %c0_3 = arith.constant 0 : index
    %c0_4 = arith.constant 0 : index
    %c0_5 = arith.constant 0 : index
    %4 = vector.load %arg2[%c0_3, %c0_4, %c0_5] : memref<9x16x256xf32, #tpu.memory_space<vmem>>, vector<1x16x256xf32>
    %5 = vector.shape_cast %4 : vector<1x16x256xf32> to vector<16x256xf32>
    %cst_6 = arith.constant dense<0.000000e+00> : vector<128x256xf32>
    %6 = tpu.matmul %3, %5, %cst_6 {dimension_numbers = #tpu.dot_dimension_numbers<[1], [0], [0], [1], [0, 0, 1, 1], [], []>} : vector<128x16xf32>, vector<16x256xf32>, vector<128x256xf32> -> vector<128x256xf32>
    %7 = arith.addf %0, %6 : vector<128x256xf32>
    %c0_7 = arith.constant 0 : index
    %c0_8 = arith.constant 0 : index
    %c1 = arith.constant 1 : index
    %c0_9 = arith.constant 0 : index
    %8 = vector.load %arg1[%c0_7, %c0_8, %c1, %c0_9] : memref<1x10x18x16xf32, #tpu.memory_space<vmem>>, vector<1x8x16x16xf32>
    %9 = vector.shape_cast %8 : vector<1x8x16x16xf32> to vector<8x16x16xf32>
    %10 = vector.shape_cast %9 : vector<8x16x16xf32> to vector<128x16xf32>
    %c1_10 = arith.constant 1 : index
    %c0_11 = arith.constant 0 : index
    %c0_12 = arith.constant 0 : index
    %11 = vector.load %arg2[%c1_10, %c0_11, %c0_12] : memref<9x16x256xf32, #tpu.memory_space<vmem>>, vector<1x16x256xf32>
    %12 = vector.shape_cast %11 : vector<1x16x256xf32> to vector<16x256xf32>
    %cst_13 = arith.constant dense<0.000000e+00> : vector<128x256xf32>
    %13 = tpu.matmul %10, %12, %cst_13 {dimension_numbers = #tpu.dot_dimension_numbers<[1], [0], [0], [1], [0, 0, 1, 1], [], []>} : vector<128x16xf32>, vector<16x256xf32>, vector<128x256xf32> -> vector<128x256xf32>
    %14 = arith.addf %7, %13 : vector<128x256xf32>
    %c0_14 = arith.constant 0 : index
    %c0_15 = arith.constant 0 : index
    %c2 = arith.constant 2 : index
    %c0_16 = arith.constant 0 : index
    %15 = vector.load %arg1[%c0_14, %c0_15, %c2, %c0_16] : memref<1x10x18x16xf32, #tpu.memory_space<vmem>>, vector<1x8x16x16xf32>
    %16 = vector.shape_cast %15 : vector<1x8x16x16xf32> to vector<8x16x16xf32>
    %17 = vector.shape_cast %16 : vector<8x16x16xf32> to vector<128x16xf32>
    %c2_17 = arith.constant 2 : index
    %c0_18 = arith.constant 0 : index
    %c0_19 = arith.constant 0 : index
    %18 = vector.load %arg2[%c2_17, %c0_18, %c0_19] : memref<9x16x256xf32, #tpu.memory_space<vmem>>, vector<1x16x256xf32>
    %19 = vector.shape_cast %18 : vector<1x16x256xf32> to vector<16x256xf32>
    %cst_20 = arith.constant dense<0.000000e+00> : vector<128x256xf32>
    %20 = tpu.matmul %17, %19, %cst_20 {dimension_numbers = #tpu.dot_dimension_numbers<[1], [0], [0], [1], [0, 0, 1, 1], [], []>} : vector<128x16xf32>, vector<16x256xf32>, vector<128x256xf32> -> vector<128x256xf32>
    %21 = arith.addf %14, %20 : vector<128x256xf32>
    %c0_21 = arith.constant 0 : index
    %c1_22 = arith.constant 1 : index
    %c0_23 = arith.constant 0 : index
    %c0_24 = arith.constant 0 : index
    %22 = vector.load %arg1[%c0_21, %c1_22, %c0_23, %c0_24] : memref<1x10x18x16xf32, #tpu.memory_space<vmem>>, vector<1x8x16x16xf32>
    %23 = vector.shape_cast %22 : vector<1x8x16x16xf32> to vector<8x16x16xf32>
    %24 = vector.shape_cast %23 : vector<8x16x16xf32> to vector<128x16xf32>
    %c3 = arith.constant 3 : index
    %c0_25 = arith.constant 0 : index
    %c0_26 = arith.constant 0 : index
    %25 = vector.load %arg2[%c3, %c0_25, %c0_26] : memref<9x16x256xf32, #tpu.memory_space<vmem>>, vector<1x16x256xf32>
    %26 = vector.shape_cast %25 : vector<1x16x256xf32> to vector<16x256xf32>
    %cst_27 = arith.constant dense<0.000000e+00> : vector<128x256xf32>
    %27 = tpu.matmul %24, %26, %cst_27 {dimension_numbers = #tpu.dot_dimension_numbers<[1], [0], [0], [1], [0, 0, 1, 1], [], []>} : vector<128x16xf32>, vector<16x256xf32>, vector<128x256xf32> -> vector<128x256xf32>
    %28 = arith.addf %21, %27 : vector<128x256xf32>
    %c0_28 = arith.constant 0 : index
    %c1_29 = arith.constant 1 : index
    %c1_30 = arith.constant 1 : index
    %c0_31 = arith.constant 0 : index
    %29 = vector.load %arg1[%c0_28, %c1_29, %c1_30, %c0_31] : memref<1x10x18x16xf32, #tpu.memory_space<vmem>>, vector<1x8x16x16xf32>
    %30 = vector.shape_cast %29 : vector<1x8x16x16xf32> to vector<8x16x16xf32>
    %31 = vector.shape_cast %30 : vector<8x16x16xf32> to vector<128x16xf32>
    %c4 = arith.constant 4 : index
    %c0_32 = arith.constant 0 : index
    %c0_33 = arith.constant 0 : index
    %32 = vector.load %arg2[%c4, %c0_32, %c0_33] : memref<9x16x256xf32, #tpu.memory_space<vmem>>, vector<1x16x256xf32>
    %33 = vector.shape_cast %32 : vector<1x16x256xf32> to vector<16x256xf32>
    %cst_34 = arith.constant dense<0.000000e+00> : vector<128x256xf32>
    %34 = tpu.matmul %31, %33, %cst_34 {dimension_numbers = #tpu.dot_dimension_numbers<[1], [0], [0], [1], [0, 0, 1, 1], [], []>} : vector<128x16xf32>, vector<16x256xf32>, vector<128x256xf32> -> vector<128x256xf32>
    %35 = arith.addf %28, %34 : vector<128x256xf32>
    %c0_35 = arith.constant 0 : index
    %c1_36 = arith.constant 1 : index
    %c2_37 = arith.constant 2 : index
    %c0_38 = arith.constant 0 : index
    %36 = vector.load %arg1[%c0_35, %c1_36, %c2_37, %c0_38] : memref<1x10x18x16xf32, #tpu.memory_space<vmem>>, vector<1x8x16x16xf32>
    %37 = vector.shape_cast %36 : vector<1x8x16x16xf32> to vector<8x16x16xf32>
    %38 = vector.shape_cast %37 : vector<8x16x16xf32> to vector<128x16xf32>
    %c5 = arith.constant 5 : index
    %c0_39 = arith.constant 0 : index
    %c0_40 = arith.constant 0 : index
    %39 = vector.load %arg2[%c5, %c0_39, %c0_40] : memref<9x16x256xf32, #tpu.memory_space<vmem>>, vector<1x16x256xf32>
    %40 = vector.shape_cast %39 : vector<1x16x256xf32> to vector<16x256xf32>
    %cst_41 = arith.constant dense<0.000000e+00> : vector<128x256xf32>
    %41 = tpu.matmul %38, %40, %cst_41 {dimension_numbers = #tpu.dot_dimension_numbers<[1], [0], [0], [1], [0, 0, 1, 1], [], []>} : vector<128x16xf32>, vector<16x256xf32>, vector<128x256xf32> -> vector<128x256xf32>
    %42 = arith.addf %35, %41 : vector<128x256xf32>
    %c0_42 = arith.constant 0 : index
    %c2_43 = arith.constant 2 : index
    %c0_44 = arith.constant 0 : index
    %c0_45 = arith.constant 0 : index
    %43 = vector.load %arg1[%c0_42, %c2_43, %c0_44, %c0_45] : memref<1x10x18x16xf32, #tpu.memory_space<vmem>>, vector<1x8x16x16xf32>
    %44 = vector.shape_cast %43 : vector<1x8x16x16xf32> to vector<8x16x16xf32>
    %45 = vector.shape_cast %44 : vector<8x16x16xf32> to vector<128x16xf32>
    %c6 = arith.constant 6 : index
    %c0_46 = arith.constant 0 : index
    %c0_47 = arith.constant 0 : index
    %46 = vector.load %arg2[%c6, %c0_46, %c0_47] : memref<9x16x256xf32, #tpu.memory_space<vmem>>, vector<1x16x256xf32>
    %47 = vector.shape_cast %46 : vector<1x16x256xf32> to vector<16x256xf32>
    %cst_48 = arith.constant dense<0.000000e+00> : vector<128x256xf32>
    %48 = tpu.matmul %45, %47, %cst_48 {dimension_numbers = #tpu.dot_dimension_numbers<[1], [0], [0], [1], [0, 0, 1, 1], [], []>} : vector<128x16xf32>, vector<16x256xf32>, vector<128x256xf32> -> vector<128x256xf32>
    %49 = arith.addf %42, %48 : vector<128x256xf32>
    %c0_49 = arith.constant 0 : index
    %c2_50 = arith.constant 2 : index
    %c1_51 = arith.constant 1 : index
    %c0_52 = arith.constant 0 : index
    %50 = vector.load %arg1[%c0_49, %c2_50, %c1_51, %c0_52] : memref<1x10x18x16xf32, #tpu.memory_space<vmem>>, vector<1x8x16x16xf32>
    %51 = vector.shape_cast %50 : vector<1x8x16x16xf32> to vector<8x16x16xf32>
    %52 = vector.shape_cast %51 : vector<8x16x16xf32> to vector<128x16xf32>
    %c7 = arith.constant 7 : index
    %c0_53 = arith.constant 0 : index
    %c0_54 = arith.constant 0 : index
    %53 = vector.load %arg2[%c7, %c0_53, %c0_54] : memref<9x16x256xf32, #tpu.memory_space<vmem>>, vector<1x16x256xf32>
    %54 = vector.shape_cast %53 : vector<1x16x256xf32> to vector<16x256xf32>
    %cst_55 = arith.constant dense<0.000000e+00> : vector<128x256xf32>
    %55 = tpu.matmul %52, %54, %cst_55 {dimension_numbers = #tpu.dot_dimension_numbers<[1], [0], [0], [1], [0, 0, 1, 1], [], []>} : vector<128x16xf32>, vector<16x256xf32>, vector<128x256xf32> -> vector<128x256xf32>
    %56 = arith.addf %49, %55 : vector<128x256xf32>
    %c0_56 = arith.constant 0 : index
    %c2_57 = arith.constant 2 : index
    %c2_58 = arith.constant 2 : index
    %c0_59 = arith.constant 0 : index
    %57 = vector.load %arg1[%c0_56, %c2_57, %c2_58, %c0_59] : memref<1x10x18x16xf32, #tpu.memory_space<vmem>>, vector<1x8x16x16xf32>
    %58 = vector.shape_cast %57 : vector<1x8x16x16xf32> to vector<8x16x16xf32>
    %59 = vector.shape_cast %58 : vector<8x16x16xf32> to vector<128x16xf32>
    %c8 = arith.constant 8 : index
    %c0_60 = arith.constant 0 : index
    %c0_61 = arith.constant 0 : index
    %60 = vector.load %arg2[%c8, %c0_60, %c0_61] : memref<9x16x256xf32, #tpu.memory_space<vmem>>, vector<1x16x256xf32>
    %61 = vector.shape_cast %60 : vector<1x16x256xf32> to vector<16x256xf32>
    %cst_62 = arith.constant dense<0.000000e+00> : vector<128x256xf32>
    %62 = tpu.matmul %59, %61, %cst_62 {dimension_numbers = #tpu.dot_dimension_numbers<[1], [0], [0], [1], [0, 0, 1, 1], [], []>} : vector<128x16xf32>, vector<16x256xf32>, vector<128x256xf32> -> vector<128x256xf32>
    %63 = arith.addf %56, %62 : vector<128x256xf32>
    %c0_63 = arith.constant 0 : index
    %c0_64 = arith.constant 0 : index
    %64 = vector.load %arg3[%c0_63, %c0_64] : memref<1x256xf32, #tpu.memory_space<vmem>>, vector<1x256xf32>
    %65 = vector.broadcast %64 : vector<1x256xf32> to vector<128x256xf32>
    %66 = arith.addf %63, %65 : vector<128x256xf32>
    %cst_65 = arith.constant 0.000000e+00 : f32
    %67 = vector.broadcast %cst_65 : f32 to vector<128x256xf32>
    %68 = arith.maximumf %66, %67 : vector<128x256xf32>
    %69 = vector.extract_strided_slice %68 {offsets = [0, 0], sizes = [128, 128], strides = [1, 1]} : vector<128x256xf32> to vector<128x128xf32>
    %70 = vector.extract_strided_slice %68 {offsets = [0, 128], sizes = [128, 128], strides = [1, 1]} : vector<128x256xf32> to vector<128x128xf32>
    %71 = arith.maximumf %69, %70 : vector<128x128xf32>
    %c0_66 = arith.constant 0 : index
    %c0_67 = arith.constant 0 : index
    %c0_68 = arith.constant 0 : index
    %72 = vector.load %arg4[%c0_66, %c0_67, %c0_68] : memref<4x32x128xf32, #tpu.memory_space<vmem>>, vector<1x32x128xf32>
    %73 = vector.shape_cast %72 : vector<1x32x128xf32> to vector<32x128xf32>
    %cst_69 = arith.constant dense<0.000000e+00> : vector<32x128xf32>
    %74 = tpu.matmul %73, %71, %cst_69 {dimension_numbers = #tpu.dot_dimension_numbers<[1], [0], [0], [1], [0, 0, 1, 1], [], []>} : vector<32x128xf32>, vector<128x128xf32>, vector<32x128xf32> -> vector<32x128xf32>
    %c1_70 = arith.constant 1 : index
    %c0_71 = arith.constant 0 : index
    %c0_72 = arith.constant 0 : index
    %75 = vector.load %arg4[%c1_70, %c0_71, %c0_72] : memref<4x32x128xf32, #tpu.memory_space<vmem>>, vector<1x32x128xf32>
    %76 = vector.shape_cast %75 : vector<1x32x128xf32> to vector<32x128xf32>
    %cst_73 = arith.constant dense<0.000000e+00> : vector<32x128xf32>
    %77 = tpu.matmul %76, %71, %cst_73 {dimension_numbers = #tpu.dot_dimension_numbers<[1], [0], [0], [1], [0, 0, 1, 1], [], []>} : vector<32x128xf32>, vector<128x128xf32>, vector<32x128xf32> -> vector<32x128xf32>
    %78 = arith.maximumf %74, %77 : vector<32x128xf32>
    %c2_74 = arith.constant 2 : index
    %c0_75 = arith.constant 0 : index
    %c0_76 = arith.constant 0 : index
    %79 = vector.load %arg4[%c2_74, %c0_75, %c0_76] : memref<4x32x128xf32, #tpu.memory_space<vmem>>, vector<1x32x128xf32>
    %80 = vector.shape_cast %79 : vector<1x32x128xf32> to vector<32x128xf32>
    %cst_77 = arith.constant dense<0.000000e+00> : vector<32x128xf32>
    %81 = tpu.matmul %80, %71, %cst_77 {dimension_numbers = #tpu.dot_dimension_numbers<[1], [0], [0], [1], [0, 0, 1, 1], [], []>} : vector<32x128xf32>, vector<128x128xf32>, vector<32x128xf32> -> vector<32x128xf32>
    %82 = arith.maximumf %78, %81 : vector<32x128xf32>
    %c3_78 = arith.constant 3 : index
    %c0_79 = arith.constant 0 : index
    %c0_80 = arith.constant 0 : index
    %83 = vector.load %arg4[%c3_78, %c0_79, %c0_80] : memref<4x32x128xf32, #tpu.memory_space<vmem>>, vector<1x32x128xf32>
    %84 = vector.shape_cast %83 : vector<1x32x128xf32> to vector<32x128xf32>
    %cst_81 = arith.constant dense<0.000000e+00> : vector<32x128xf32>
    %85 = tpu.matmul %84, %71, %cst_81 {dimension_numbers = #tpu.dot_dimension_numbers<[1], [0], [0], [1], [0, 0, 1, 1], [], []>} : vector<32x128xf32>, vector<128x128xf32>, vector<32x128xf32> -> vector<32x128xf32>
    %86 = arith.maximumf %82, %85 : vector<32x128xf32>
    %cst_82 = arith.constant 0.000000e+00 : f32
    %87 = vector.broadcast %cst_82 : f32 to vector<32x256xf32>
    %c0_83 = arith.constant 0 : index
    %c0_84 = arith.constant 0 : index
    %c0_85 = arith.constant 0 : index
    %88 = vector.load %arg5[%c0_83, %c0_84, %c0_85] : memref<9x32x32xf32, #tpu.memory_space<vmem>>, vector<1x32x32xf32>
    %89 = vector.shape_cast %88 : vector<1x32x32xf32> to vector<32x32xf32>
    %cst_86 = arith.constant dense<0.000000e+00> : vector<32x128xf32>
    %90 = tpu.matmul %89, %86, %cst_86 {dimension_numbers = #tpu.dot_dimension_numbers<[1], [0], [0], [1], [0, 0, 1, 1], [], []>} : vector<32x32xf32>, vector<32x128xf32>, vector<32x128xf32> -> vector<32x128xf32>
    %c0_87 = arith.constant 0 : index
    %c0_88 = arith.constant 0 : index
    %c0_89 = arith.constant 0 : index
    %91 = vector.load %arg6[%c0_87, %c0_88, %c0_89] : memref<9x128x256xf32, #tpu.memory_space<vmem>>, vector<1x128x256xf32>
    %92 = vector.shape_cast %91 : vector<1x128x256xf32> to vector<128x256xf32>
    %cst_90 = arith.constant dense<0.000000e+00> : vector<32x256xf32>
    %93 = tpu.matmul %90, %92, %cst_90 {dimension_numbers = #tpu.dot_dimension_numbers<[1], [0], [0], [1], [0, 0, 1, 1], [], []>} : vector<32x128xf32>, vector<128x256xf32>, vector<32x256xf32> -> vector<32x256xf32>
    %94 = arith.addf %87, %93 : vector<32x256xf32>
    %c1_91 = arith.constant 1 : index
    %c0_92 = arith.constant 0 : index
    %c0_93 = arith.constant 0 : index
    %95 = vector.load %arg5[%c1_91, %c0_92, %c0_93] : memref<9x32x32xf32, #tpu.memory_space<vmem>>, vector<1x32x32xf32>
    %96 = vector.shape_cast %95 : vector<1x32x32xf32> to vector<32x32xf32>
    %cst_94 = arith.constant dense<0.000000e+00> : vector<32x128xf32>
    %97 = tpu.matmul %96, %86, %cst_94 {dimension_numbers = #tpu.dot_dimension_numbers<[1], [0], [0], [1], [0, 0, 1, 1], [], []>} : vector<32x32xf32>, vector<32x128xf32>, vector<32x128xf32> -> vector<32x128xf32>
    %c1_95 = arith.constant 1 : index
    %c0_96 = arith.constant 0 : index
    %c0_97 = arith.constant 0 : index
    %98 = vector.load %arg6[%c1_95, %c0_96, %c0_97] : memref<9x128x256xf32, #tpu.memory_space<vmem>>, vector<1x128x256xf32>
    %99 = vector.shape_cast %98 : vector<1x128x256xf32> to vector<128x256xf32>
    %cst_98 = arith.constant dense<0.000000e+00> : vector<32x256xf32>
    %100 = tpu.matmul %97, %99, %cst_98 {dimension_numbers = #tpu.dot_dimension_numbers<[1], [0], [0], [1], [0, 0, 1, 1], [], []>} : vector<32x128xf32>, vector<128x256xf32>, vector<32x256xf32> -> vector<32x256xf32>
    %101 = arith.addf %94, %100 : vector<32x256xf32>
    %c2_99 = arith.constant 2 : index
    %c0_100 = arith.constant 0 : index
    %c0_101 = arith.constant 0 : index
    %102 = vector.load %arg5[%c2_99, %c0_100, %c0_101] : memref<9x32x32xf32, #tpu.memory_space<vmem>>, vector<1x32x32xf32>
    %103 = vector.shape_cast %102 : vector<1x32x32xf32> to vector<32x32xf32>
    %cst_102 = arith.constant dense<0.000000e+00> : vector<32x128xf32>
    %104 = tpu.matmul %103, %86, %cst_102 {dimension_numbers = #tpu.dot_dimension_numbers<[1], [0], [0], [1], [0, 0, 1, 1], [], []>} : vector<32x32xf32>, vector<32x128xf32>, vector<32x128xf32> -> vector<32x128xf32>
    %c2_103 = arith.constant 2 : index
    %c0_104 = arith.constant 0 : index
    %c0_105 = arith.constant 0 : index
    %105 = vector.load %arg6[%c2_103, %c0_104, %c0_105] : memref<9x128x256xf32, #tpu.memory_space<vmem>>, vector<1x128x256xf32>
    %106 = vector.shape_cast %105 : vector<1x128x256xf32> to vector<128x256xf32>
    %cst_106 = arith.constant dense<0.000000e+00> : vector<32x256xf32>
    %107 = tpu.matmul %104, %106, %cst_106 {dimension_numbers = #tpu.dot_dimension_numbers<[1], [0], [0], [1], [0, 0, 1, 1], [], []>} : vector<32x128xf32>, vector<128x256xf32>, vector<32x256xf32> -> vector<32x256xf32>
    %108 = arith.addf %101, %107 : vector<32x256xf32>
    %c3_107 = arith.constant 3 : index
    %c0_108 = arith.constant 0 : index
    %c0_109 = arith.constant 0 : index
    %109 = vector.load %arg5[%c3_107, %c0_108, %c0_109] : memref<9x32x32xf32, #tpu.memory_space<vmem>>, vector<1x32x32xf32>
    %110 = vector.shape_cast %109 : vector<1x32x32xf32> to vector<32x32xf32>
    %cst_110 = arith.constant dense<0.000000e+00> : vector<32x128xf32>
    %111 = tpu.matmul %110, %86, %cst_110 {dimension_numbers = #tpu.dot_dimension_numbers<[1], [0], [0], [1], [0, 0, 1, 1], [], []>} : vector<32x32xf32>, vector<32x128xf32>, vector<32x128xf32> -> vector<32x128xf32>
    %c3_111 = arith.constant 3 : index
    %c0_112 = arith.constant 0 : index
    %c0_113 = arith.constant 0 : index
    %112 = vector.load %arg6[%c3_111, %c0_112, %c0_113] : memref<9x128x256xf32, #tpu.memory_space<vmem>>, vector<1x128x256xf32>
    %113 = vector.shape_cast %112 : vector<1x128x256xf32> to vector<128x256xf32>
    %cst_114 = arith.constant dense<0.000000e+00> : vector<32x256xf32>
    %114 = tpu.matmul %111, %113, %cst_114 {dimension_numbers = #tpu.dot_dimension_numbers<[1], [0], [0], [1], [0, 0, 1, 1], [], []>} : vector<32x128xf32>, vector<128x256xf32>, vector<32x256xf32> -> vector<32x256xf32>
    %115 = arith.addf %108, %114 : vector<32x256xf32>
    %c4_115 = arith.constant 4 : index
    %c0_116 = arith.constant 0 : index
    %c0_117 = arith.constant 0 : index
    %116 = vector.load %arg5[%c4_115, %c0_116, %c0_117] : memref<9x32x32xf32, #tpu.memory_space<vmem>>, vector<1x32x32xf32>
    %117 = vector.shape_cast %116 : vector<1x32x32xf32> to vector<32x32xf32>
    %cst_118 = arith.constant dense<0.000000e+00> : vector<32x128xf32>
    %118 = tpu.matmul %117, %86, %cst_118 {dimension_numbers = #tpu.dot_dimension_numbers<[1], [0], [0], [1], [0, 0, 1, 1], [], []>} : vector<32x32xf32>, vector<32x128xf32>, vector<32x128xf32> -> vector<32x128xf32>
    %c4_119 = arith.constant 4 : index
    %c0_120 = arith.constant 0 : index
    %c0_121 = arith.constant 0 : index
    %119 = vector.load %arg6[%c4_119, %c0_120, %c0_121] : memref<9x128x256xf32, #tpu.memory_space<vmem>>, vector<1x128x256xf32>
    %120 = vector.shape_cast %119 : vector<1x128x256xf32> to vector<128x256xf32>
    %cst_122 = arith.constant dense<0.000000e+00> : vector<32x256xf32>
    %121 = tpu.matmul %118, %120, %cst_122 {dimension_numbers = #tpu.dot_dimension_numbers<[1], [0], [0], [1], [0, 0, 1, 1], [], []>} : vector<32x128xf32>, vector<128x256xf32>, vector<32x256xf32> -> vector<32x256xf32>
    %122 = arith.addf %115, %121 : vector<32x256xf32>
    %c5_123 = arith.constant 5 : index
    %c0_124 = arith.constant 0 : index
    %c0_125 = arith.constant 0 : index
    %123 = vector.load %arg5[%c5_123, %c0_124, %c0_125] : memref<9x32x32xf32, #tpu.memory_space<vmem>>, vector<1x32x32xf32>
    %124 = vector.shape_cast %123 : vector<1x32x32xf32> to vector<32x32xf32>
    %cst_126 = arith.constant dense<0.000000e+00> : vector<32x128xf32>
    %125 = tpu.matmul %124, %86, %cst_126 {dimension_numbers = #tpu.dot_dimension_numbers<[1], [0], [0], [1], [0, 0, 1, 1], [], []>} : vector<32x32xf32>, vector<32x128xf32>, vector<32x128xf32> -> vector<32x128xf32>
    %c5_127 = arith.constant 5 : index
    %c0_128 = arith.constant 0 : index
    %c0_129 = arith.constant 0 : index
    %126 = vector.load %arg6[%c5_127, %c0_128, %c0_129] : memref<9x128x256xf32, #tpu.memory_space<vmem>>, vector<1x128x256xf32>
    %127 = vector.shape_cast %126 : vector<1x128x256xf32> to vector<128x256xf32>
    %cst_130 = arith.constant dense<0.000000e+00> : vector<32x256xf32>
    %128 = tpu.matmul %125, %127, %cst_130 {dimension_numbers = #tpu.dot_dimension_numbers<[1], [0], [0], [1], [0, 0, 1, 1], [], []>} : vector<32x128xf32>, vector<128x256xf32>, vector<32x256xf32> -> vector<32x256xf32>
    %129 = arith.addf %122, %128 : vector<32x256xf32>
    %c6_131 = arith.constant 6 : index
    %c0_132 = arith.constant 0 : index
    %c0_133 = arith.constant 0 : index
    %130 = vector.load %arg5[%c6_131, %c0_132, %c0_133] : memref<9x32x32xf32, #tpu.memory_space<vmem>>, vector<1x32x32xf32>
    %131 = vector.shape_cast %130 : vector<1x32x32xf32> to vector<32x32xf32>
    %cst_134 = arith.constant dense<0.000000e+00> : vector<32x128xf32>
    %132 = tpu.matmul %131, %86, %cst_134 {dimension_numbers = #tpu.dot_dimension_numbers<[1], [0], [0], [1], [0, 0, 1, 1], [], []>} : vector<32x32xf32>, vector<32x128xf32>, vector<32x128xf32> -> vector<32x128xf32>
    %c6_135 = arith.constant 6 : index
    %c0_136 = arith.constant 0 : index
    %c0_137 = arith.constant 0 : index
    %133 = vector.load %arg6[%c6_135, %c0_136, %c0_137] : memref<9x128x256xf32, #tpu.memory_space<vmem>>, vector<1x128x256xf32>
    %134 = vector.shape_cast %133 : vector<1x128x256xf32> to vector<128x256xf32>
    %cst_138 = arith.constant dense<0.000000e+00> : vector<32x256xf32>
    %135 = tpu.matmul %132, %134, %cst_138 {dimension_numbers = #tpu.dot_dimension_numbers<[1], [0], [0], [1], [0, 0, 1, 1], [], []>} : vector<32x128xf32>, vector<128x256xf32>, vector<32x256xf32> -> vector<32x256xf32>
    %136 = arith.addf %129, %135 : vector<32x256xf32>
    %c7_139 = arith.constant 7 : index
    %c0_140 = arith.constant 0 : index
    %c0_141 = arith.constant 0 : index
    %137 = vector.load %arg5[%c7_139, %c0_140, %c0_141] : memref<9x32x32xf32, #tpu.memory_space<vmem>>, vector<1x32x32xf32>
    %138 = vector.shape_cast %137 : vector<1x32x32xf32> to vector<32x32xf32>
    %cst_142 = arith.constant dense<0.000000e+00> : vector<32x128xf32>
    %139 = tpu.matmul %138, %86, %cst_142 {dimension_numbers = #tpu.dot_dimension_numbers<[1], [0], [0], [1], [0, 0, 1, 1], [], []>} : vector<32x32xf32>, vector<32x128xf32>, vector<32x128xf32> -> vector<32x128xf32>
    %c7_143 = arith.constant 7 : index
    %c0_144 = arith.constant 0 : index
    %c0_145 = arith.constant 0 : index
    %140 = vector.load %arg6[%c7_143, %c0_144, %c0_145] : memref<9x128x256xf32, #tpu.memory_space<vmem>>, vector<1x128x256xf32>
    %141 = vector.shape_cast %140 : vector<1x128x256xf32> to vector<128x256xf32>
    %cst_146 = arith.constant dense<0.000000e+00> : vector<32x256xf32>
    %142 = tpu.matmul %139, %141, %cst_146 {dimension_numbers = #tpu.dot_dimension_numbers<[1], [0], [0], [1], [0, 0, 1, 1], [], []>} : vector<32x128xf32>, vector<128x256xf32>, vector<32x256xf32> -> vector<32x256xf32>
    %143 = arith.addf %136, %142 : vector<32x256xf32>
    %c8_147 = arith.constant 8 : index
    %c0_148 = arith.constant 0 : index
    %c0_149 = arith.constant 0 : index
    %144 = vector.load %arg5[%c8_147, %c0_148, %c0_149] : memref<9x32x32xf32, #tpu.memory_space<vmem>>, vector<1x32x32xf32>
    %145 = vector.shape_cast %144 : vector<1x32x32xf32> to vector<32x32xf32>
    %cst_150 = arith.constant dense<0.000000e+00> : vector<32x128xf32>
    %146 = tpu.matmul %145, %86, %cst_150 {dimension_numbers = #tpu.dot_dimension_numbers<[1], [0], [0], [1], [0, 0, 1, 1], [], []>} : vector<32x32xf32>, vector<32x128xf32>, vector<32x128xf32> -> vector<32x128xf32>
    %c8_151 = arith.constant 8 : index
    %c0_152 = arith.constant 0 : index
    %c0_153 = arith.constant 0 : index
    %147 = vector.load %arg6[%c8_151, %c0_152, %c0_153] : memref<9x128x256xf32, #tpu.memory_space<vmem>>, vector<1x128x256xf32>
    %148 = vector.shape_cast %147 : vector<1x128x256xf32> to vector<128x256xf32>
    %cst_154 = arith.constant dense<0.000000e+00> : vector<32x256xf32>
    %149 = tpu.matmul %146, %148, %cst_154 {dimension_numbers = #tpu.dot_dimension_numbers<[1], [0], [0], [1], [0, 0, 1, 1], [], []>} : vector<32x128xf32>, vector<128x256xf32>, vector<32x256xf32> -> vector<32x256xf32>
    %150 = arith.addf %143, %149 : vector<32x256xf32>
    %c0_155 = arith.constant 0 : index
    %c0_156 = arith.constant 0 : index
    %151 = vector.load %arg7[%c0_155, %c0_156] : memref<1x256xf32, #tpu.memory_space<vmem>>, vector<1x256xf32>
    %152 = vector.broadcast %151 : vector<1x256xf32> to vector<32x256xf32>
    %153 = arith.addf %150, %152 : vector<32x256xf32>
    %cst_157 = arith.constant 0.000000e+00 : f32
    %154 = vector.broadcast %cst_157 : f32 to vector<32x256xf32>
    %155 = arith.maximumf %153, %154 : vector<32x256xf32>
    %156 = vector.extract_strided_slice %155 {offsets = [0, 0], sizes = [32, 128], strides = [1, 1]} : vector<32x256xf32> to vector<32x128xf32>
    %157 = vector.extract_strided_slice %155 {offsets = [0, 128], sizes = [32, 128], strides = [1, 1]} : vector<32x256xf32> to vector<32x128xf32>
    %158 = arith.maximumf %156, %157 : vector<32x128xf32>
    %c0_158 = arith.constant 0 : index
    %c0_159 = arith.constant 0 : index
    %c0_160 = arith.constant 0 : index
    %159 = vector.load %arg8[%c0_158, %c0_159, %c0_160] : memref<4x8x32xf32, #tpu.memory_space<vmem>>, vector<1x8x32xf32>
    %160 = vector.shape_cast %159 : vector<1x8x32xf32> to vector<8x32xf32>
    %cst_161 = arith.constant dense<0.000000e+00> : vector<8x128xf32>
    %161 = tpu.matmul %160, %158, %cst_161 {dimension_numbers = #tpu.dot_dimension_numbers<[1], [0], [0], [1], [0, 0, 1, 1], [], []>} : vector<8x32xf32>, vector<32x128xf32>, vector<8x128xf32> -> vector<8x128xf32>
    %c1_162 = arith.constant 1 : index
    %c0_163 = arith.constant 0 : index
    %c0_164 = arith.constant 0 : index
    %162 = vector.load %arg8[%c1_162, %c0_163, %c0_164] : memref<4x8x32xf32, #tpu.memory_space<vmem>>, vector<1x8x32xf32>
    %163 = vector.shape_cast %162 : vector<1x8x32xf32> to vector<8x32xf32>
    %cst_165 = arith.constant dense<0.000000e+00> : vector<8x128xf32>
    %164 = tpu.matmul %163, %158, %cst_165 {dimension_numbers = #tpu.dot_dimension_numbers<[1], [0], [0], [1], [0, 0, 1, 1], [], []>} : vector<8x32xf32>, vector<32x128xf32>, vector<8x128xf32> -> vector<8x128xf32>
    %165 = arith.maximumf %161, %164 : vector<8x128xf32>
    %c2_166 = arith.constant 2 : index
    %c0_167 = arith.constant 0 : index
    %c0_168 = arith.constant 0 : index
    %166 = vector.load %arg8[%c2_166, %c0_167, %c0_168] : memref<4x8x32xf32, #tpu.memory_space<vmem>>, vector<1x8x32xf32>
    %167 = vector.shape_cast %166 : vector<1x8x32xf32> to vector<8x32xf32>
    %cst_169 = arith.constant dense<0.000000e+00> : vector<8x128xf32>
    %168 = tpu.matmul %167, %158, %cst_169 {dimension_numbers = #tpu.dot_dimension_numbers<[1], [0], [0], [1], [0, 0, 1, 1], [], []>} : vector<8x32xf32>, vector<32x128xf32>, vector<8x128xf32> -> vector<8x128xf32>
    %169 = arith.maximumf %165, %168 : vector<8x128xf32>
    %c3_170 = arith.constant 3 : index
    %c0_171 = arith.constant 0 : index
    %c0_172 = arith.constant 0 : index
    %170 = vector.load %arg8[%c3_170, %c0_171, %c0_172] : memref<4x8x32xf32, #tpu.memory_space<vmem>>, vector<1x8x32xf32>
    %171 = vector.shape_cast %170 : vector<1x8x32xf32> to vector<8x32xf32>
    %cst_173 = arith.constant dense<0.000000e+00> : vector<8x128xf32>
    %172 = tpu.matmul %171, %158, %cst_173 {dimension_numbers = #tpu.dot_dimension_numbers<[1], [0], [0], [1], [0, 0, 1, 1], [], []>} : vector<8x32xf32>, vector<32x128xf32>, vector<8x128xf32> -> vector<8x128xf32>
    %173 = arith.maximumf %169, %172 : vector<8x128xf32>
    %cst_174 = arith.constant 0.000000e+00 : f32
    %174 = vector.broadcast %cst_174 : f32 to vector<1x128xf32>
    %175 = vector.extract_strided_slice %173 {offsets = [0, 0], sizes = [1, 128], strides = [1, 1]} : vector<8x128xf32> to vector<1x128xf32>
    %c0_175 = arith.constant 0 : index
    %c0_176 = arith.constant 0 : index
    %c0_177 = arith.constant 0 : index
    %176 = vector.load %arg9[%c0_175, %c0_176, %c0_177] : memref<8x128x128xf32, #tpu.memory_space<vmem>>, vector<1x128x128xf32>
    %177 = vector.shape_cast %176 : vector<1x128x128xf32> to vector<128x128xf32>
    %cst_178 = arith.constant dense<0.000000e+00> : vector<1x128xf32>
    %178 = tpu.matmul %175, %177, %cst_178 {dimension_numbers = #tpu.dot_dimension_numbers<[1], [0], [0], [1], [0, 0, 1, 1], [], []>} : vector<1x128xf32>, vector<128x128xf32>, vector<1x128xf32> -> vector<1x128xf32>
    %179 = arith.addf %174, %178 : vector<1x128xf32>
    %180 = vector.extract_strided_slice %173 {offsets = [1, 0], sizes = [1, 128], strides = [1, 1]} : vector<8x128xf32> to vector<1x128xf32>
    %c1_179 = arith.constant 1 : index
    %c0_180 = arith.constant 0 : index
    %c0_181 = arith.constant 0 : index
    %181 = vector.load %arg9[%c1_179, %c0_180, %c0_181] : memref<8x128x128xf32, #tpu.memory_space<vmem>>, vector<1x128x128xf32>
    %182 = vector.shape_cast %181 : vector<1x128x128xf32> to vector<128x128xf32>
    %cst_182 = arith.constant dense<0.000000e+00> : vector<1x128xf32>
    %183 = tpu.matmul %180, %182, %cst_182 {dimension_numbers = #tpu.dot_dimension_numbers<[1], [0], [0], [1], [0, 0, 1, 1], [], []>} : vector<1x128xf32>, vector<128x128xf32>, vector<1x128xf32> -> vector<1x128xf32>
    %184 = arith.addf %179, %183 : vector<1x128xf32>
    %185 = vector.extract_strided_slice %173 {offsets = [2, 0], sizes = [1, 128], strides = [1, 1]} : vector<8x128xf32> to vector<1x128xf32>
    %c2_183 = arith.constant 2 : index
    %c0_184 = arith.constant 0 : index
    %c0_185 = arith.constant 0 : index
    %186 = vector.load %arg9[%c2_183, %c0_184, %c0_185] : memref<8x128x128xf32, #tpu.memory_space<vmem>>, vector<1x128x128xf32>
    %187 = vector.shape_cast %186 : vector<1x128x128xf32> to vector<128x128xf32>
    %cst_186 = arith.constant dense<0.000000e+00> : vector<1x128xf32>
    %188 = tpu.matmul %185, %187, %cst_186 {dimension_numbers = #tpu.dot_dimension_numbers<[1], [0], [0], [1], [0, 0, 1, 1], [], []>} : vector<1x128xf32>, vector<128x128xf32>, vector<1x128xf32> -> vector<1x128xf32>
    %189 = arith.addf %184, %188 : vector<1x128xf32>
    %190 = vector.extract_strided_slice %173 {offsets = [3, 0], sizes = [1, 128], strides = [1, 1]} : vector<8x128xf32> to vector<1x128xf32>
    %c3_187 = arith.constant 3 : index
    %c0_188 = arith.constant 0 : index
    %c0_189 = arith.constant 0 : index
    %191 = vector.load %arg9[%c3_187, %c0_188, %c0_189] : memref<8x128x128xf32, #tpu.memory_space<vmem>>, vector<1x128x128xf32>
    %192 = vector.shape_cast %191 : vector<1x128x128xf32> to vector<128x128xf32>
    %cst_190 = arith.constant dense<0.000000e+00> : vector<1x128xf32>
    %193 = tpu.matmul %190, %192, %cst_190 {dimension_numbers = #tpu.dot_dimension_numbers<[1], [0], [0], [1], [0, 0, 1, 1], [], []>} : vector<1x128xf32>, vector<128x128xf32>, vector<1x128xf32> -> vector<1x128xf32>
    %194 = arith.addf %189, %193 : vector<1x128xf32>
    %195 = vector.extract_strided_slice %173 {offsets = [4, 0], sizes = [1, 128], strides = [1, 1]} : vector<8x128xf32> to vector<1x128xf32>
    %c4_191 = arith.constant 4 : index
    %c0_192 = arith.constant 0 : index
    %c0_193 = arith.constant 0 : index
    %196 = vector.load %arg9[%c4_191, %c0_192, %c0_193] : memref<8x128x128xf32, #tpu.memory_space<vmem>>, vector<1x128x128xf32>
    %197 = vector.shape_cast %196 : vector<1x128x128xf32> to vector<128x128xf32>
    %cst_194 = arith.constant dense<0.000000e+00> : vector<1x128xf32>
    %198 = tpu.matmul %195, %197, %cst_194 {dimension_numbers = #tpu.dot_dimension_numbers<[1], [0], [0], [1], [0, 0, 1, 1], [], []>} : vector<1x128xf32>, vector<128x128xf32>, vector<1x128xf32> -> vector<1x128xf32>
    %199 = arith.addf %194, %198 : vector<1x128xf32>
    %200 = vector.extract_strided_slice %173 {offsets = [5, 0], sizes = [1, 128], strides = [1, 1]} : vector<8x128xf32> to vector<1x128xf32>
    %c5_195 = arith.constant 5 : index
    %c0_196 = arith.constant 0 : index
    %c0_197 = arith.constant 0 : index
    %201 = vector.load %arg9[%c5_195, %c0_196, %c0_197] : memref<8x128x128xf32, #tpu.memory_space<vmem>>, vector<1x128x128xf32>
    %202 = vector.shape_cast %201 : vector<1x128x128xf32> to vector<128x128xf32>
    %cst_198 = arith.constant dense<0.000000e+00> : vector<1x128xf32>
    %203 = tpu.matmul %200, %202, %cst_198 {dimension_numbers = #tpu.dot_dimension_numbers<[1], [0], [0], [1], [0, 0, 1, 1], [], []>} : vector<1x128xf32>, vector<128x128xf32>, vector<1x128xf32> -> vector<1x128xf32>
    %204 = arith.addf %199, %203 : vector<1x128xf32>
    %205 = vector.extract_strided_slice %173 {offsets = [6, 0], sizes = [1, 128], strides = [1, 1]} : vector<8x128xf32> to vector<1x128xf32>
    %c6_199 = arith.constant 6 : index
    %c0_200 = arith.constant 0 : index
    %c0_201 = arith.constant 0 : index
    %206 = vector.load %arg9[%c6_199, %c0_200, %c0_201] : memref<8x128x128xf32, #tpu.memory_space<vmem>>, vector<1x128x128xf32>
    %207 = vector.shape_cast %206 : vector<1x128x128xf32> to vector<128x128xf32>
    %cst_202 = arith.constant dense<0.000000e+00> : vector<1x128xf32>
    %208 = tpu.matmul %205, %207, %cst_202 {dimension_numbers = #tpu.dot_dimension_numbers<[1], [0], [0], [1], [0, 0, 1, 1], [], []>} : vector<1x128xf32>, vector<128x128xf32>, vector<1x128xf32> -> vector<1x128xf32>
    %209 = arith.addf %204, %208 : vector<1x128xf32>
    %210 = vector.extract_strided_slice %173 {offsets = [7, 0], sizes = [1, 128], strides = [1, 1]} : vector<8x128xf32> to vector<1x128xf32>
    %c7_203 = arith.constant 7 : index
    %c0_204 = arith.constant 0 : index
    %c0_205 = arith.constant 0 : index
    %211 = vector.load %arg9[%c7_203, %c0_204, %c0_205] : memref<8x128x128xf32, #tpu.memory_space<vmem>>, vector<1x128x128xf32>
    %212 = vector.shape_cast %211 : vector<1x128x128xf32> to vector<128x128xf32>
    %cst_206 = arith.constant dense<0.000000e+00> : vector<1x128xf32>
    %213 = tpu.matmul %210, %212, %cst_206 {dimension_numbers = #tpu.dot_dimension_numbers<[1], [0], [0], [1], [0, 0, 1, 1], [], []>} : vector<1x128xf32>, vector<128x128xf32>, vector<1x128xf32> -> vector<1x128xf32>
    %214 = arith.addf %209, %213 : vector<1x128xf32>
    %c0_207 = arith.constant 0 : index
    %c0_208 = arith.constant 0 : index
    %215 = vector.load %arg10[%c0_207, %c0_208] : memref<1x128xf32, #tpu.memory_space<vmem>>, vector<1x128xf32>
    %216 = arith.addf %214, %215 : vector<1x128xf32>
    %cst_209 = arith.constant 0.000000e+00 : f32
    %217 = vector.broadcast %cst_209 : f32 to vector<1x128xf32>
    %218 = arith.maximumf %216, %217 : vector<1x128xf32>
    %c0_210 = arith.constant 0 : index
    %c0_211 = arith.constant 0 : index
    %219 = vector.load %arg11[%c0_210, %c0_211] : memref<128x128xf32, #tpu.memory_space<vmem>>, vector<128x128xf32>
    %cst_212 = arith.constant dense<0.000000e+00> : vector<1x128xf32>
    %220 = tpu.matmul %218, %219, %cst_212 {dimension_numbers = #tpu.dot_dimension_numbers<[1], [0], [0], [1], [0, 0, 1, 1], [], []>} : vector<1x128xf32>, vector<128x128xf32>, vector<1x128xf32> -> vector<1x128xf32>
    %c0_213 = arith.constant 0 : index
    %c0_214 = arith.constant 0 : index
    %221 = vector.load %arg12[%c0_213, %c0_214] : memref<1x128xf32, #tpu.memory_space<vmem>>, vector<1x128xf32>
    %222 = arith.addf %220, %221 : vector<1x128xf32>
    %223 = vector.shape_cast %222 : vector<1x128xf32> to vector<1x128xf32>
    %224 = vector.broadcast %223 : vector<1x128xf32> to vector<8x128xf32>
    %c0_215 = arith.constant 0 : index
    %c0_216 = arith.constant 0 : index
    %c0_217 = arith.constant 0 : index
    %225 = vector.load %arg13[%c0_215, %c0_216, %c0_217] : memref<1x8x128xf32, #tpu.memory_space<vmem>>, vector<1x8x128xf32>
    %226 = vector.shape_cast %225 : vector<1x8x128xf32> to vector<8x128xf32>
    %227 = vector.shape_cast %224 : vector<8x128xf32> to vector<1x8x128xf32>
    tpu.vector_store %arg13[%c0_215, %c0_216, %c0_217], %227 {strides = array<i32>} : memref<1x8x128xf32, #tpu.memory_space<vmem>>, vector<1x8x128xf32>,
    return
  }
  func.func @transform_0(%arg0: i32) -> (i32, i32, i32, i32) {
    %c0_i32 = arith.constant 0 : i32
    %c0_i32_0 = arith.constant 0 : i32
    %c0_i32_1 = arith.constant 0 : i32
    %c0_i32_2 = arith.constant 0 : i32
    return %arg0, %c0_i32, %c0_i32_0, %c0_i32_1 : i32, i32, i32, i32
  }
  func.func @transform_1(%arg0: i32) -> (i32, i32, i32) {
    %c0_i32 = arith.constant 0 : i32
    %c0_i32_0 = arith.constant 0 : i32
    %c0_i32_1 = arith.constant 0 : i32
    %c0_i32_2 = arith.constant 0 : i32
    return %c0_i32, %c0_i32_0, %c0_i32_1 : i32, i32, i32
  }
  func.func @transform_2(%arg0: i32) -> (i32, i32) {
    %c0_i32 = arith.constant 0 : i32
    %c0_i32_0 = arith.constant 0 : i32
    %c0_i32_1 = arith.constant 0 : i32
    return %c0_i32, %c0_i32_0 : i32, i32
  }
  func.func @transform_3(%arg0: i32) -> (i32, i32, i32) {
    %c0_i32 = arith.constant 0 : i32
    %c0_i32_0 = arith.constant 0 : i32
    %c0_i32_1 = arith.constant 0 : i32
    %c0_i32_2 = arith.constant 0 : i32
    return %c0_i32, %c0_i32_0, %c0_i32_1 : i32, i32, i32
  }
  func.func @transform_4(%arg0: i32) -> (i32, i32, i32) {
    %c0_i32 = arith.constant 0 : i32
    %c0_i32_0 = arith.constant 0 : i32
    %c0_i32_1 = arith.constant 0 : i32
    %c0_i32_2 = arith.constant 0 : i32
    return %c0_i32, %c0_i32_0, %c0_i32_1 : i32, i32, i32
  }
  func.func @transform_5(%arg0: i32) -> (i32, i32, i32) {
    %c0_i32 = arith.constant 0 : i32
    %c0_i32_0 = arith.constant 0 : i32
    %c0_i32_1 = arith.constant 0 : i32
    %c0_i32_2 = arith.constant 0 : i32
    return %c0_i32, %c0_i32_0, %c0_i32_1 : i32, i32, i32
  }
  func.func @transform_6(%arg0: i32) -> (i32, i32) {
    %c0_i32 = arith.constant 0 : i32
    %c0_i32_0 = arith.constant 0 : i32
    %c0_i32_1 = arith.constant 0 : i32
    return %c0_i32, %c0_i32_0 : i32, i32
  }
  func.func @transform_7(%arg0: i32) -> (i32, i32, i32) {
    %c0_i32 = arith.constant 0 : i32
    %c0_i32_0 = arith.constant 0 : i32
    %c0_i32_1 = arith.constant 0 : i32
    %c0_i32_2 = arith.constant 0 : i32
    return %c0_i32, %c0_i32_0, %c0_i32_1 : i32, i32, i32
  }
  func.func @transform_8(%arg0: i32) -> (i32, i32, i32) {
    %c0_i32 = arith.constant 0 : i32
    %c0_i32_0 = arith.constant 0 : i32
    %c0_i32_1 = arith.constant 0 : i32
    %c0_i32_2 = arith.constant 0 : i32
    return %c0_i32, %c0_i32_0, %c0_i32_1 : i32, i32, i32
  }
  func.func @transform_9(%arg0: i32) -> (i32, i32) {
    %c0_i32 = arith.constant 0 : i32
    %c0_i32_0 = arith.constant 0 : i32
    %c0_i32_1 = arith.constant 0 : i32
    return %c0_i32, %c0_i32_0 : i32, i32
  }
  func.func @transform_10(%arg0: i32) -> (i32, i32) {
    %c0_i32 = arith.constant 0 : i32
    %c0_i32_0 = arith.constant 0 : i32
    %c0_i32_1 = arith.constant 0 : i32
    return %c0_i32, %c0_i32_0 : i32, i32
  }
  func.func @transform_11(%arg0: i32) -> (i32, i32) {
    %c0_i32 = arith.constant 0 : i32
    %c0_i32_0 = arith.constant 0 : i32
    %c0_i32_1 = arith.constant 0 : i32
    return %c0_i32, %c0_i32_0 : i32, i32
  }
  func.func @transform_12(%arg0: i32) -> (i32, i32, i32) {
    %c0_i32 = arith.constant 0 : i32
    %c0_i32_0 = arith.constant 0 : i32
    %c0_i32_1 = arith.constant 0 : i32
    return %arg0, %c0_i32, %c0_i32_0 : i32, i32, i32
  }
}

</mosaic_0001>

<bundles_post_ra>
// kernel: simple3dcnn_forward.1
= control target key start
LH: loop header
LB: loop body
LE: loop exit
PB: predicated region body
PF: predicated region fallthrough
CT: control target
= control target key end

     0   :  { %s7460_s0 = inlined_call_operand.vmem [shape: f32[2,10,18,16], index: 0, kind: input, shape index: {}]   ;;  %s7461_s1 = inlined_call_operand.hbm [shape: f32[9,16,256], index: 1, kind: input, shape index: {}]   ;;  %s7462_s2 = inlined_call_operand.hbm [shape: f32[1,256], index: 2, kind: input, shape index: {}]   ;;  %s7463_s3 = inlined_call_operand.hbm [shape: f32[4,32,128], index: 3, kind: input, shape index: {}]   ;;  %s7464_s4 = inlined_call_operand.hbm [shape: f32[9,32,32], index: 4, kind: input, shape index: {}]   ;;  %s7465_s5 = inlined_call_operand.hbm [shape: f32[9,128,256], index: 5, kind: input, shape index: {}]   ;;  %s7466_s6 = inlined_call_operand.hbm [shape: f32[1,256], index: 6, kind: input, shape index: {}]   ;;  %s7467_s7 = inlined_call_operand.hbm [shape: f32[4,8,32], index: 7, kind: input, shape index: {}]   ;;  %s7468_s8 = inlined_call_operand.hbm [shape: f32[8,128,128], index: 8, kind: input, shape index: {}]   ;;  %s7469_s9 = inlined_call_operand.hbm [shape: f32[1,128], index: 9, kind: input, shape index: {}]   ;;  %s7470_s10 = inlined_call_operand.hbm [shape: f32[128,128], index: 10, kind: input, shape index: {}]   ;;  %s7471_s11 = inlined_call_operand.hbm [shape: f32[1,128], index: 11, kind: input, shape index: {}]   ;;  %s7472_s12 = inlined_call_operand.vmem [shape: f32[2,8,128], index: 12, kind: output, shape index: {}]  }
   0x1   :  { %7491 = sst [smem:[#allocation82_spill]] %s7461_s1 }
   0x2   :  { %7492 = sst [smem:[#allocation83_spill]] %s7462_s2 }
   0x3   :  { %7493 = sst [smem:[#allocation84_spill]] %s7463_s3 }
   0x4   :  { %17 = vsyncpa [#allocation3], 0 }
   0x5   :  { %18 = vsyncpa [#allocation5], 0 }
   0x6   :  { %19 = vsyncpa [#allocation8], 0 }
   0x7   :  { %20 = vsyncpa [#allocation11], 0 }
   0x8   :  { %21 = vsyncpa [#allocation14], 0 }
   0x9   :  { %22 = vsyncpa [#allocation17], 0  ;;  %s5797_s21 = smov 0  }
   0xa LB: > { %s7494_s2 = sld [smem:[#allocation83_spill]]  ;;  %s5806_s25 = sadd.s32 4294967295, %s5715_s21   ;;  %s5715_s21 = sphi %s5797_s21, %s28_s21  }
   0xb   : > { %p4772_p0 = scmp.ge.s32.totalorder %s5715_s21, 1  ;;  %p316_p1 = scmp.lt.s32.totalorder %s5715_s21, 3 }
   0xc   : > { %p5308_p2 = scmp.eq.s32.totalorder %s5806_s25, 0  ;;  %s5717_s27 = smov [#allocation4]  }
   0xd   : > { %p5811_p3 = pnand %p4772_p0, %p316_p1  ;;  %s344_s28 = sshll.u32 %s5717_s27, 4  ;;  %s345_s28 = int_to_ptr.vmem [resolvable:$true] %s344_s28 }
   0xe   : > { %s367_s13 = sshll.u32 %s7464_s4, 4  ;;  %s5718_s15 = smov [#allocation7]   ;;  %s368_s13 = int_to_ptr.hbm [resolvable:$true] %s367_s13 }
   0xf   : > { %p5274_p4 = pneg %p5811_p3  ;;  %s369_s16 = sshll.u32 %s5718_s15, 4  ;;  %s370_s16 = int_to_ptr.vmem [resolvable:$true] %s369_s16 }
  0x10   : > { %s342_s24 = sshll.u32 %s7494_s2, 4  ;;  %s396_s19 = sshll.u32 %s7466_s6, 4  ;;  %s343_s24 = int_to_ptr.hbm [resolvable:$true] %s342_s24  ;;  %s397_s19 = int_to_ptr.hbm [resolvable:$true] %s396_s19 }
  0x11   : > { %p5822_p5 = pnand %p5308_p2, %p5274_p4  ;;  %s5719_s20 = smov 128  }
  0x12   : > { %s5720_s22 = smov 8   ;;  %s5721_s23 = smov [#allocation10]  }
  0x13   : > { %5280 = dma.hbm_to_vmem [thread:$0]  (!%p5822_p5), %s343_s24, 32, %s345_s28, [#allocation5]  }
  0x14   : > { %5286 = dma.hbm_to_vmem [thread:$0]  (!%p5822_p5), %s368_s13, 4608, %s370_s16, [#allocation8], %s5719_s20, %s5719_s20, %s5720_s22  }
  0x15   : > { %s398_s27 = sshll.u32 %s5721_s23, 4  ;;  %s421_s15 = sshll.u32 %s7468_s8, 4  ;;  %s399_s27 = int_to_ptr.vmem [resolvable:$true] %s398_s27  ;;  %s422_s15 = int_to_ptr.hbm [resolvable:$true] %s421_s15 }
  0x16   : > { %5292 = dma.hbm_to_vmem [thread:$0]  (!%p5822_p5), %s397_s19, 32, %s399_s27, [#allocation11]  }
  0x17   : > { %s447_s17 = sshll.u32 %s7470_s10, 4  ;;  %s5722_s18 = smov [#allocation13]   ;;  %s448_s17 = int_to_ptr.hbm [resolvable:$true] %s447_s17 }
  0x18   : > { %s423_s2 = sshll.u32 %s5722_s18, 4  ;;  %s5723_s13 = smov [#allocation16]   ;;  %s424_s2 = int_to_ptr.vmem [resolvable:$true] %s423_s2 }
  0x19   : > { %5298 = dma.hbm_to_vmem [thread:$0]  (!%p5822_p5), %s422_s15, 16384, %s424_s2, [#allocation14], %s5719_s20, %s5719_s20, %s5720_s22  }
  0x1a   : > { %s449_s16 = sshll.u32 %s5723_s13, 4  ;;  %s7497_s1 = sld [smem:[#allocation82_spill]]  ;;  %s450_s16 = int_to_ptr.vmem [resolvable:$true] %s449_s16 }
  0x1b   : > { %5304 = dma.hbm_to_vmem [thread:$0]  (!%p5822_p5), %s448_s17, 2048, %s450_s16, [#allocation17], %s5719_s20, %s5719_s20, %s5720_s22  }
  0x1c   : > { %s5724_s27 = smov [#allocation2]   ;;  %s7498_s3 = sld [smem:[#allocation84_spill]] }
  0x1d   : > { %s329_s30 = sshll.u32 %s5724_s27, 4  ;;  %s5725_s15 = smov 256   ;;  %s330_s30 = int_to_ptr.vmem [resolvable:$true] %s329_s30 }
  0x1e   : > { %s5726_s18 = smov 16   ;;  %s5727_s13 = smov [#allocation6]  }
  0x1f   : > { %s355_s23 = sshll.u32 %s5727_s13, 4  ;;  %s381_s17 = sshll.u32 %s7465_s5, 4  ;;  %s356_s23 = int_to_ptr.vmem [resolvable:$true] %s355_s23  ;;  %s382_s17 = int_to_ptr.hbm [resolvable:$true] %s381_s17 }
  0x20   : > { %s327_s19 = sshll.u32 %s7497_s1, 4  ;;  %s407_s24 = sshll.u32 %s7467_s7, 4  ;;  %s328_s19 = int_to_ptr.hbm [resolvable:$true] %s327_s19  ;;  %s408_s24 = int_to_ptr.hbm [resolvable:$true] %s407_s24 }
  0x21   : > { %5277 = dma.hbm_to_vmem [thread:$0]  (!%p5822_p5), %s328_s19, 4608, %s330_s30, [#allocation3], %s5725_s15, %s5725_s15, %s5726_s18  }
  0x22   : > { %s353_s2 = sshll.u32 %s7498_s3, 4  ;;  %s5728_s19 = smov [#allocation9]   ;;  %s354_s2 = int_to_ptr.hbm [resolvable:$true] %s353_s2 }
  0x23   : > { %5283 = dma.hbm_to_vmem [thread:$0]  (!%p5822_p5), %s354_s2, 2048, %s356_s23, [#allocation5], %s5719_s20, %s5719_s20, %s5720_s22  }
  0x24   : > { %s383_s30 = sshll.u32 %s5728_s19, 4  ;;  %s5729_s1 = smov [#allocation12]   ;;  %s384_s30 = int_to_ptr.vmem [resolvable:$true] %s383_s30 }
  0x25   : > { %5289 = dma.hbm_to_vmem [thread:$0]  (!%p5822_p5), %s382_s17, 36864, %s384_s30, [#allocation8], %s5725_s15, %s5725_s15, %s5726_s18  }
  0x26   : > { %s409_s28 = sshll.u32 %s5729_s1, 4  ;;  %s436_s3 = sshll.u32 %s7469_s9, 4  ;;  %s410_s28 = int_to_ptr.vmem [resolvable:$true] %s409_s28  ;;  %s437_s3 = int_to_ptr.hbm [resolvable:$true] %s436_s3 }
  0x27   : > { %5295 = dma.hbm_to_vmem [thread:$0]  (!%p5822_p5), %s408_s24, 512, %s410_s28, [#allocation11], %s5719_s20, %s5719_s20, %s5720_s22  }
  0x28   : > { %s462_s16 = sshll.u32 %s7471_s11, 4  ;;  %s5730_s27 = smov [#allocation15]   ;;  %s463_s16 = int_to_ptr.hbm [resolvable:$true] %s462_s16 }
  0x29   : > { %s438_s15 = sshll.u32 %s5730_s27, 4  ;;  %s5731_s18 = smov [#allocation18]   ;;  %s439_s15 = int_to_ptr.vmem [resolvable:$true] %s438_s15 }
  0x2a   : > { %5301 = dma.hbm_to_vmem [thread:$0]  (!%p5822_p5), %s437_s3, 16, %s439_s15, [#allocation14]  }
  0x2b   : > { %s464_s17 = sshll.u32 %s5731_s18, 4  ;;  %485 = sbr.rel (%p5811_p3) target bundleno = 2465 (0x9a1), region = 68  ;;  %s465_s17 = int_to_ptr.vmem [resolvable:$true] %s464_s17 }
  0x2c   : > { %5307 = dma.hbm_to_vmem [thread:$0]  (!%p5822_p5), %s463_s16, 16, %s465_s17, [#allocation17]  }
  0x30   : > { %5690 = dma.done.wait (%p5308_p2), [#allocation3], 4608  }
  0x31   : > { %5692 = vsyncadd (%p5308_p2), [#allocation3], 4294962688 }
  0x32   : > { %5694 = dma.done.wait (%p5308_p2), [#allocation5], 2080  }
  0x33   : > { %5696 = vsyncadd (%p5308_p2), [#allocation5], 4294965216 }
  0x34   : > { %5698 = dma.done.wait (%p5308_p2), [#allocation8], 41472  }
  0x35   : > { %5700 = vsyncadd (%p5308_p2), [#allocation8], 4294925824 }
  0x36   : > { %5702 = dma.done.wait (%p5308_p2), [#allocation11], 544  }
  0x37   : > { %5704 = vsyncadd (%p5308_p2), [#allocation11], 4294966752 }
  0x38   : > { %5706 = dma.done.wait (%p5308_p2), [#allocation14], 16400  }
  0x39   : > { %5708 = vsyncadd (%p5308_p2), [#allocation14], 4294950896 }
  0x3a   : > { %5710 = dma.done.wait (%p5308_p2), [#allocation17], 2064  }
  0x3b   : > { %5712 = vsyncadd (%p5308_p2), [#allocation17], 4294965232  ;;  %p577_p6 = scmp.lt.s32.totalorder %s5806_s25, 1  ;;  %v625_v0 = vld [vmem:[#allocation2 + $0x30] sm:$0xff]  ;;  %v623_v2 = vld [vmem:[#allocation2 + $0x20] sm:$0xff]  ;;  %vm627_vm0 = vcmask 130048  }
  0x3c   : > { %v604_v1 = vld [vmem:[#allocation2 + $0x10] sm:$0xff]  ;;  %690 = vmatpush.msra.mxu0 %v625_v0  ;;  %5225 = vmatpush.msra.mxu1 %v625_v0  ;;  %v602_v3 = vld [vmem:[#allocation2] sm:$0xff]  ;;  %v626_v7 = vld [vmem:[#allocation2 + $0x38] sm:$0xff]  ;;  %vm2840_vm1 = vcmask 261120  }
  0x3d   : > { %s7680_s25 = smov (!%p577_p6, %s5806_s25), 1  ;;  %868 = vmatpush.msra.mxu2 %v604_v1  ;;  %v605_v8 = vld [vmem:[#allocation2 + $0x18] sm:$0xff]  ;;  %v624_v9 = vld [vmem:[#allocation2 + $0x28] sm:$0xff]  ;;  %v1003_v30 = vld [vmem:[#allocation2 + $0x50] sm:$0xff] }
  0x3e   : > { %s5229_s3 = smul.u32 240, %s7680_s25  ;;  %691 = vmatpush.msra.mxu0 %v623_v2  ;;  %5226 = vmatpush.msra.mxu1 %v623_v2  ;;  %v603_v10 = vld [vmem:[#allocation2 + $0x8] sm:$0xff]  ;;  %v1001_v31 = vld [vmem:[#allocation2 + $0x40] sm:$0xff]  ;;  %v1004_v34 = vld [vmem:[#allocation2 + $0x58] sm:$0xff]  ;;  %s4798_s22 = sshll.u32 %s7680_s25, 3 }
  0x3f   : > { %869 = vmatpush.msra.mxu2 %v602_v3  ;;  %5227 = vmatpush.msra.mxu3 %v605_v8  ;;  %v1235_v41 = vld [vmem:[#allocation2 + $0x70] sm:$0xff]  ;;  %v1233_v42 = vld [vmem:[#allocation2 + $0x60] sm:$0xff]  ;;  %v1236_v43 = vld [vmem:[#allocation2 + $0x78] sm:$0xff]  ;;  %s585_s30 = scalar_lea.vmem %s7472_s12, %s4798_s22 }
  0x40   : > { %s5924_s20 = scalar_lea.vmem %s7460_s0, %s5229_s3  ;;  %755 = vmatpush.msrb.mxu1 %v626_v7  ;;  %1067 = vmatpush.msrb.mxu0 %v1003_v30  ;;  %v1234_v44 = vld [vmem:[#allocation2 + $0x68] sm:$0xff] }
  0x41   : > { %v606_v4 = vld [vmem:[%s5924_s20 + $0x1] sm:$0xff]  ;;  %v5928_v5 = vld [vmem:[%s5924_s20 + $0xa9] sm:$0xff]  ;;  %933 = vmatpush.msrb.mxu2 %v605_v8  ;;  %5228 = vmatpush.msra.mxu3 %v603_v10  ;;  %v5942_v13 = vld [vmem:[%s5924_s20 + $0xb1] sm:$0xff] }
  0x42   : > { %7499 = vst [vmem:[#allocation25_spill] sm:$0xff] %v5928_v5  ;;  %v5931_v6 = vld [vmem:[%s5924_s20] sm:$0xff]  ;;  %4799 = vmatmul.msk.f32.vlgmr.msra.gmra.mxu0 %vm627_vm0, %v606_v4  ;;  %4813 = vmatmul.msk.f32.vlgmr.msra.gmra.mxu1 %vm627_vm0, %v5928_v5  ;;  %v587_v11 = vld [vmem:[%s5924_s20 + $0x8] sm:$0xff]  ;;  %v5949_v14 = vld [vmem:[%s5924_s20 + $0x18] sm:$0xff] }
  0x43   : > { %4831 = vmatmul.msk.f32.vlgmr.msra.gmra.mxu2 %vm627_vm0, %v5931_v6  ;;  %756 = vmatpush.msrb.mxu1 %v624_v9  ;;  %v607_v12 = vld [vmem:[%s5924_s20 + $0x9] sm:$0xff]  ;;  %7500 = vst [vmem:[#allocation26_spill] sm:$0xff] %v5942_v13  ;;  %v5952_v15 = vld [vmem:[%s5924_s20 + $0x19] sm:$0xff]  ;;  %v5965_v17 = vld [vmem:[%s5924_s20 + $0x21] sm:$0xff] }
  0x44   : > { %4848 = vmatmul.msk.f32.vlgmr.msra.gmra.mxu3 %vm627_vm0, %v587_v11  ;;  %934 = vmatpush.msrb.mxu2 %v603_v10  ;;  %v5962_v16 = vld [vmem:[%s5924_s20 + $0x20] sm:$0xff]  ;;  %v5975_v18 = vld [vmem:[%s5924_s20 + $0x30] sm:$0xff]  ;;  %v5989_v20 = vld [vmem:[%s5924_s20 + $0x38] sm:$0xff] }
  0x45   : > { %7501 = vst [vmem:[#allocation27_spill] sm:$0xff] %v5975_v18  ;;  %v5978_v19 = vld [vmem:[%s5924_s20 + $0x31] sm:$0xff]  ;;  %v5992_v21 = vld [vmem:[%s5924_s20 + $0x39] sm:$0xff]  ;;  %v6003_v22 = vld [vmem:[%s5924_s20 + $0x48] sm:$0xff]  ;;  %1068 = vmatpush.msrb.mxu0 %v1001_v31  ;;  %1132 = vmatpush.msra.mxu1 %v1004_v34 }
  0x46   : > { %7502 = vst [vmem:[#allocation28_spill] sm:$0xff] %v5989_v20  ;;  %v6006_v23 = vld [vmem:[%s5924_s20 + $0x49] sm:$0xff]  ;;  %v6020_v25 = vld [vmem:[%s5924_s20 + $0x51] sm:$0xff]  ;;  %v6031_v26 = vld [vmem:[%s5924_s20 + $0x60] sm:$0xff]  ;;  %1299 = vmatpush.msra.mxu2 %v1235_v41  ;;  %1364 = vmatpush.msrb.mxu3 %v1236_v43 }
  0x47   : > { %v6017_v24 = vld [vmem:[%s5924_s20 + $0x50] sm:$0xff]  ;;  %v6034_v27 = vld [vmem:[%s5924_s20 + $0x61] sm:$0xff]  ;;  %v6059_v32 = vld [vmem:[%s5924_s20 + $0x78] sm:$0xff] }
  0x48   : > { %v6045_v28 = vld [vmem:[%s5924_s20 + $0x68] sm:$0xff]  ;;  %v6062_v33 = vld [vmem:[%s5924_s20 + $0x79] sm:$0xff]  ;;  %v6087_v37 = vld [vmem:[%s5924_s20 + $0x90] sm:$0xff]  ;;  %1300 = vmatpush.msra.mxu2 %v1233_v42  ;;  %1365 = vmatpush.msrb.mxu3 %v1234_v44 }
  0x49   : > { %v6048_v29 = vld [vmem:[%s5924_s20 + $0x69] sm:$0xff]  ;;  %v6073_v35 = vld [vmem:[%s5924_s20 + $0x80] sm:$0xff]  ;;  %v6090_v38 = vld [vmem:[%s5924_s20 + $0x91] sm:$0xff] }
  0x4a   : > { %4800 = vmatmul.msk.f32.gmra.mxu0 %vm627_vm0, %v607_v12  ;;  %4814 = vmatmul.msk.f32.gmra.mxu1 %vm627_vm0, %v5942_v13  ;;  %v6076_v36 = vld [vmem:[%s5924_s20 + $0x81] sm:$0xff]  ;;  %v6101_v39 = vld [vmem:[%s5924_s20 + $0x98] sm:$0xff]  ;;  %v6126_v48 = vld [vmem:[%s5924_s20 + $0xb0] sm:$0xff] }
  0x4b   : > { %4832 = vmatmul.msk.f32.gmra.mxu2 %vm627_vm0, %v587_v11  ;;  %v6104_v40 = vld [vmem:[%s5924_s20 + $0x99] sm:$0xff]  ;;  %v6115_v45 = vld [vmem:[%s5924_s20 + $0xa8] sm:$0xff] }
  0x4c   : > { %4849 = vmatmul.msk.f32.gmra.mxu3 %vm627_vm0, %v5949_v14  ;;  %v984_v46 = vld [vmem:[%s5924_s20 + $0x2] sm:$0xff]  ;;  %v985_v49 = vld [vmem:[%s5924_s20 + $0xa] sm:$0xff]  ;;  %v6137_v51 = vld [vmem:[%s5924_s20 + $0x1a] sm:$0xff] }
  0x4d   : > { %v1002_v47 = vld [vmem:[#allocation2 + $0x48] sm:$0xff]  ;;  %v6169_v62 = vld [vmem:[%s5924_s20 + $0x32] sm:$0xff] }
  0x4e   : > { %1133 = vmatpush.msra.mxu1 %v1002_v47  ;;  %v6152_v56 = vld [vmem:[%s5924_s20 + $0x22] sm:$0xff]  ;;  %v6201_v11 = vld [vmem:[%s5924_s20 + $0x4a] sm:$0xff]  ;;  %v6218_v34 = vld [vmem:[%s5924_s20 + $0x52] sm:$0xff] }
  0x4f   : > { %v6235_v47 = vld [vmem:[%s5924_s20 + $0x62] sm:$0xff] }
  0x52   : > { %4801 = vmatmul.msk.f32.gmra.mxu0 %vm627_vm0, %v5952_v15  ;;  %4815 = vmatmul.msk.f32.vlgmr.msrb.gmra.mxu1 %vm627_vm0, %v606_v4  ;;  %v6185_v4 = vld [vmem:[%s5924_s20 + $0x3a] sm:$0xff] }
  0x53   : > { %4833 = vmatmul.msk.f32.gmra.mxu2 %vm627_vm0, %v5949_v14 }
  0x54   : > { %4850 = vmatmul.msk.f32.gmra.mxu3 %vm627_vm0, %v5962_v16 }
  0x5a   : > { %4802 = vmatmul.msk.f32.gmra.mxu0 %vm627_vm0, %v5965_v17  ;;  %4816 = vmatmul.msk.f32.gmra.mxu1 %vm627_vm0, %v607_v12 }
  0x5b   : > { %4834 = vmatmul.msk.f32.gmra.mxu2 %vm627_vm0, %v5962_v16 }
  0x5c   : > { %4851 = vmatmul.msk.f32.gmra.mxu3 %vm627_vm0, %v5975_v18 }
  0x62   : > { %4803 = vmatmul.msk.f32.gmra.mxu0 %vm627_vm0, %v5978_v19  ;;  %4817 = vmatmul.msk.f32.gmra.mxu1 %vm627_vm0, %v5952_v15 }
  0x63   : > { %4835 = vmatmul.msk.f32.gmra.mxu2 %vm627_vm0, %v5975_v18 }
  0x64   : > { %4852 = vmatmul.msk.f32.gmra.mxu3 %vm627_vm0, %v5989_v20 }
  0x6a   : > { %4804 = vmatmul.msk.f32.gmra.mxu0 %vm627_vm0, %v5992_v21  ;;  %4818 = vmatmul.msk.f32.gmra.mxu1 %vm627_vm0, %v5965_v17 }
  0x6b   : > { %4836 = vmatmul.msk.f32.gmra.mxu2 %vm627_vm0, %v5989_v20 }
  0x6c   : > { %4853 = vmatmul.msk.f32.gmra.mxu3 %vm627_vm0, %v6003_v22 }
  0x72   : > { %4805 = vmatmul.msk.f32.gmra.mxu0 %vm627_vm0, %v6006_v23  ;;  %4819 = vmatmul.msk.f32.gmra.mxu1 %vm627_vm0, %v5978_v19 }
  0x73   : > { %4837 = vmatmul.msk.f32.gmra.mxu2 %vm627_vm0, %v6003_v22 }
  0x74   : > { %4854 = vmatmul.msk.f32.gmra.mxu3 %vm627_vm0, %v6017_v24 }
  0x7a   : > { %4806 = vmatmul.msk.f32.gmra.mxu0 %vm627_vm0, %v6020_v25  ;;  %4820 = vmatmul.msk.f32.gmra.mxu1 %vm627_vm0, %v5992_v21 }
  0x7b   : > { %4838 = vmatmul.msk.f32.gmra.mxu2 %vm627_vm0, %v6017_v24 }
  0x7c   : > { %4855 = vmatmul.msk.f32.gmra.mxu3 %vm627_vm0, %v6031_v26 }
  0x82   : > { %4807 = vmatmul.msk.f32.gmra.mxu0 %vm627_vm0, %v6034_v27  ;;  %4821 = vmatmul.msk.f32.gmra.mxu1 %vm627_vm0, %v6006_v23 }
  0x83   : > { %4839 = vmatmul.msk.f32.gmra.mxu2 %vm627_vm0, %v6031_v26 }
  0x84   : > { %4856 = vmatmul.msk.f32.gmra.mxu3 %vm627_vm0, %v6045_v28 }
  0x8a   : > { %4808 = vmatmul.msk.f32.gmra.mxu0 %vm627_vm0, %v6048_v29  ;;  %4822 = vmatmul.msk.f32.gmra.mxu1 %vm627_vm0, %v6020_v25 }
  0x8b   : > { %4840 = vmatmul.msk.f32.gmra.mxu2 %vm627_vm0, %v6045_v28 }
  0x8c   : > { %4857 = vmatmul.msk.f32.gmra.mxu3 %vm627_vm0, %v6059_v32 }
  0x92   : > { %4809 = vmatmul.msk.f32.gmra.mxu0 %vm627_vm0, %v6062_v33  ;;  %4823 = vmatmul.msk.f32.gmra.mxu1 %vm627_vm0, %v6034_v27 }
  0x93   : > { %4841 = vmatmul.msk.f32.gmra.mxu2 %vm627_vm0, %v6059_v32 }
  0x94   : > { %4858 = vmatmul.msk.f32.gmra.mxu3 %vm627_vm0, %v6073_v35 }
  0x9a   : > { %4810 = vmatmul.msk.f32.gmra.mxu0 %vm627_vm0, %v6076_v36  ;;  %4824 = vmatmul.msk.f32.gmra.mxu1 %vm627_vm0, %v6048_v29 }
  0x9b   : > { %4842 = vmatmul.msk.f32.gmra.mxu2 %vm627_vm0, %v6073_v35 }
  0x9c   : > { %4859 = vmatmul.msk.f32.gmra.mxu3 %vm627_vm0, %v6087_v37 }
  0xa2   : > { %4811 = vmatmul.msk.f32.gmra.mxu0 %vm627_vm0, %v6090_v38  ;;  %4825 = vmatmul.msk.f32.gmra.mxu1 %vm627_vm0, %v6062_v33 }
  0xa3   : > { %4843 = vmatmul.msk.f32.gmra.mxu2 %vm627_vm0, %v6087_v37 }
  0xa4   : > { %4860 = vmatmul.msk.f32.gmra.mxu3 %vm627_vm0, %v6101_v39 }
  0xaa   : > { %4812 = vmatmul.msk.f32.gmra.mxu0 %vm627_vm0, %v6104_v40  ;;  %4826 = vmatmul.msk.f32.gmra.mxu1 %vm627_vm0, %v6076_v36 }
  0xab   : > { %4844 = vmatmul.msk.f32.gmra.mxu2 %vm627_vm0, %v6101_v39 }
  0xac   : > { %4861 = vmatmul.msk.f32.gmra.mxu3 %vm627_vm0, %v6115_v45 }
  0xb2   : > { %4863 = vmatmul.msk.f32.vlgmr.msrb.gmra.mxu0 %vm627_vm0, %v984_v46  ;;  %4827 = vmatmul.msk.f32.gmra.mxu1 %vm627_vm0, %v6090_v38 }
  0xb3   : > { %4845 = vmatmul.msk.f32.gmra.mxu2 %vm627_vm0, %v6115_v45 }
  0xb4   : > { %4862 = vmatmul.msk.f32.gmra.mxu3 %vm627_vm0, %v6126_v48 }
  0xba   : > { %4864 = vmatmul.msk.f32.gmra.mxu0 %vm627_vm0, %v985_v49  ;;  %4828 = vmatmul.msk.f32.gmra.mxu1 %vm627_vm0, %v6104_v40 }
  0xbb   : > { %4846 = vmatmul.msk.f32.gmra.mxu2 %vm627_vm0, %v6126_v48 }
  0xbc   : > { %4927 = vmatmul.msk.f32.vlgmr.msrb.gmra.mxu3 %vm627_vm0, %v5949_v14 }
  0xbf   : > { %v693_v50 = vpop.f32.mrf.mxu0  ;;  %v6141_v52 = vpop.f32.mrf.mxu1 }
  0xc0   : > { %7503 = vst [vmem:[#allocation29_spill] sm:$0xff] %v6141_v52  ;;  %v1466_v52 = vld [vmem:[#allocation2 + $0x90] sm:$0xff] }
  0xc1   : > { %1530 = vmatpush.msra.mxu0 %v1466_v52 }
  0xc2   : > { %4865 = vmatmul.msk.f32.gmra.mxu0 %vm627_vm0, %v6137_v51  ;;  %4829 = vmatmul.msk.f32.gmra.mxu1 %vm627_vm0, %v5928_v5 }
  0xc3   : > { %4847 = vmatmul.msk.f32.vlgmr.msrb.gmra.mxu2 %vm627_vm0, %v5931_v6 }
  0xc4   : > { %4928 = vmatmul.msk.f32.gmra.mxu3 %vm627_vm0, %v5962_v16 }
  0xc6   : > { %v871_v53 = vpop.f32.mrf.mxu2 }
  0xc7   : > { %v6149_v54 = vadd.f32 %v871_v53, %v693_v50  ;;  %v696_v55 = vpop.f32.mrf.mxu0  ;;  %v6156_v57 = vpop.f32.mrf.mxu1 }
  0xc8   : > { %7504 = vst [vmem:[#allocation30_spill] sm:$0xff] %v6156_v57  ;;  %v6160_v58 = vpop.f32.mrf.mxu3  ;;  %v6303_v57 = vld [vmem:[%s5924_s20 + $0x92] sm:$0xff] }
  0xc9   : > { %7507 = vst [vmem:[#allocation33_spill] sm:$0xff] %v6303_v57 }
  0xca   : > { %4866 = vmatmul.msk.f32.gmra.mxu0 %vm627_vm0, %v6152_v56  ;;  %4830 = vmatmul.msk.f32.gmra.mxu1 %vm627_vm0, %v5942_v13 }
  0xcb   : > { %4911 = vmatmul.msk.f32.vlgmr.msra.gmra.mxu2 %vm627_vm0, %v5949_v14 }
  0xcc   : > { %4929 = vmatmul.msk.f32.gmra.mxu3 %vm627_vm0, %v5975_v18 }
  0xce   : > { %v874_v59 = vpop.f32.mrf.mxu2 }
  0xcf   : > { %v6166_v60 = vadd.f32 %v874_v59, %v696_v55  ;;  %v699_v61 = vpop.f32.mrf.mxu0  ;;  %v6173_v63 = vpop.f32.mrf.mxu1  ;;  %v6252_v59 = vld [vmem:[%s5924_s20 + $0x6a] sm:$0xff] }
  0xd0   : > { %v6177_v0 = vpop.f32.mrf.mxu3 }
  0xd2   : > { %4867 = vmatmul.msk.f32.gmra.mxu0 %vm627_vm0, %v6169_v62  ;;  %4879 = vmatmul.msk.f32.vlgmr.msra.gmra.mxu1 %vm627_vm0, %v984_v46 }
  0xd3   : > { %4912 = vmatmul.msk.f32.gmra.mxu2 %vm627_vm0, %v5962_v16 }
  0xd4   : > { %4930 = vmatmul.msk.f32.gmra.mxu3 %vm627_vm0, %v5989_v20 }
  0xd6   : > { %v877_v1 = vpop.f32.mrf.mxu2 }
  0xd7   : > { %v6182_v2 = vadd.f32 %v877_v1, %v699_v61  ;;  %v702_v3 = vpop.f32.mrf.mxu0  ;;  %v6189_v6 = vpop.f32.mrf.mxu1 }
  0xd8   : > { %v6193_v7 = vpop.f32.mrf.mxu3 }
  0xda   : > { %4868 = vmatmul.msk.f32.gmra.mxu0 %vm627_vm0, %v6185_v4  ;;  %4880 = vmatmul.msk.f32.gmra.mxu1 %vm627_vm0, %v985_v49 }
  0xdb   : > { %4913 = vmatmul.msk.f32.gmra.mxu2 %vm627_vm0, %v5975_v18  ;;  %v1464_v18 = vld [vmem:[#allocation2 + $0x80] sm:$0xff] }
  0xdc   : > { %4931 = vmatmul.msk.f32.gmra.mxu3 %vm627_vm0, %v6003_v22  ;;  %1531 = vmatpush.msra.mxu0 %v1464_v18 }
  0xde   : > { %v880_v8 = vpop.f32.mrf.mxu2 }
  0xdf   : > { %v6198_v9 = vadd.f32 %v880_v8, %v702_v3  ;;  %v705_v10 = vpop.f32.mrf.mxu0  ;;  %v6205_v12 = vpop.f32.mrf.mxu1 }
  0xe0   : > { %v6209_v14 = vpop.f32.mrf.mxu3 }
  0xe2   : > { %4869 = vmatmul.msk.f32.gmra.mxu0 %vm627_vm0, %v6201_v11  ;;  %4881 = vmatmul.msk.f32.gmra.mxu1 %vm627_vm0, %v6137_v51 }
  0xe3   : > { %4914 = vmatmul.msk.f32.gmra.mxu2 %vm627_vm0, %v5989_v20 }
  0xe4   : > { %4932 = vmatmul.msk.f32.gmra.mxu3 %vm627_vm0, %v6017_v24 }
  0xe6   : > { %v883_v16 = vpop.f32.mrf.mxu2 }
  0xe7   : > { %v6215_v30 = vadd.f32 %v883_v16, %v705_v10  ;;  %v708_v31 = vpop.f32.mrf.mxu0  ;;  %v6222_v41 = vpop.f32.mrf.mxu1  ;;  %v6269_v10 = vld [vmem:[%s5924_s20 + $0x7a] sm:$0xff] }
  0xe8   : > { %v6226_v42 = vpop.f32.mrf.mxu3 }
  0xea   : > { %4870 = vmatmul.msk.f32.gmra.mxu0 %vm627_vm0, %v6218_v34  ;;  %4882 = vmatmul.msk.f32.gmra.mxu1 %vm627_vm0, %v6152_v56 }
  0xeb   : > { %4915 = vmatmul.msk.f32.gmra.mxu2 %vm627_vm0, %v6003_v22 }
  0xec   : > { %4933 = vmatmul.msk.f32.gmra.mxu3 %vm627_vm0, %v6031_v26 }
  0xee   : > { %v886_v43 = vpop.f32.mrf.mxu2 }
  0xef   : > { %v6232_v44 = vadd.f32 %v886_v43, %v708_v31  ;;  %v711_v46 = vpop.f32.mrf.mxu0  ;;  %v6239_v49 = vpop.f32.mrf.mxu1 }
  0xf0   : > { %v6243_v50 = vpop.f32.mrf.mxu3 }
  0xf2   : > { %4871 = vmatmul.msk.f32.gmra.mxu0 %vm627_vm0, %v6235_v47  ;;  %4883 = vmatmul.msk.f32.gmra.mxu1 %vm627_vm0, %v6169_v62 }
  0xf3   : > { %4916 = vmatmul.msk.f32.gmra.mxu2 %vm627_vm0, %v6017_v24 }
  0xf4   : > { %4934 = vmatmul.msk.f32.gmra.mxu3 %vm627_vm0, %v6045_v28 }
  0xf6   : > { %v889_v22 = vpop.f32.mrf.mxu2 }
  0xf7   : > { %v6249_v53 = vadd.f32 %v889_v22, %v711_v46  ;;  %v714_v55 = vpop.f32.mrf.mxu0  ;;  %v6256_v61 = vpop.f32.mrf.mxu1  ;;  %v6286_v22 = vld [vmem:[%s5924_s20 + $0x82] sm:$0xff] }
  0xf8   : > { %v6260_v1 = vpop.f32.mrf.mxu3 }
  0xfa   : > { %4872 = vmatmul.msk.f32.gmra.mxu0 %vm627_vm0, %v6252_v59  ;;  %4884 = vmatmul.msk.f32.gmra.mxu1 %vm627_vm0, %v6185_v4 }
  0xfb   : > { %4917 = vmatmul.msk.f32.gmra.mxu2 %vm627_vm0, %v6031_v26 }
  0xfc   : > { %4935 = vmatmul.msk.f32.gmra.mxu3 %vm627_vm0, %v6059_v32 }
  0xfe   : > { %v892_v24 = vpop.f32.mrf.mxu2 }
  0xff   : > { %v6266_v3 = vadd.f32 %v892_v24, %v714_v55  ;;  %v717_v8 = vpop.f32.mrf.mxu0  ;;  %v6273_v16 = vpop.f32.mrf.mxu1 }
 0x100   : > { %v6277_v31 = vpop.f32.mrf.mxu3 }
 0x102   : > { %4873 = vmatmul.msk.f32.gmra.mxu0 %vm627_vm0, %v6269_v10  ;;  %4885 = vmatmul.msk.f32.gmra.mxu1 %vm627_vm0, %v6201_v11 }
 0x103   : > { %4918 = vmatmul.msk.f32.gmra.mxu2 %vm627_vm0, %v6045_v28 }
 0x104   : > { %4936 = vmatmul.msk.f32.gmra.mxu3 %vm627_vm0, %v6073_v35 }
 0x106   : > { %v895_v26 = vpop.f32.mrf.mxu2 }
 0x107   : > { %v6283_v43 = vadd.f32 %v895_v26, %v717_v8  ;;  %v720_v46 = vpop.f32.mrf.mxu0  ;;  %v6290_v55 = vpop.f32.mrf.mxu1 }
 0x108   : > { %v6294_v24 = vpop.f32.mrf.mxu3 }
 0x109   : > { %7505 = vst [vmem:[#allocation31_spill] sm:$0xff] %v6294_v24  ;;  %v6320_v24 = vld [vmem:[%s5924_s20 + $0x9a] sm:$0xff] }
 0x10a   : > { %4874 = vmatmul.msk.f32.gmra.mxu0 %vm627_vm0, %v6286_v22  ;;  %4886 = vmatmul.msk.f32.gmra.mxu1 %vm627_vm0, %v6218_v34  ;;  %7510 = vst [vmem:[#allocation36_spill] sm:$0xff] %v6320_v24 }
 0x10b   : > { %4919 = vmatmul.msk.f32.gmra.mxu2 %vm627_vm0, %v6059_v32  ;;  %v1467_v32 = vld [vmem:[#allocation2 + $0x98] sm:$0xff] }
 0x10c   : > { %4937 = vmatmul.msk.f32.gmra.mxu3 %vm627_vm0, %v6087_v37  ;;  %1595 = vmatpush.msrb.mxu1 %v1467_v32  ;;  %v6337_v32 = vld [vmem:[%s5924_s20 + $0xaa] sm:$0xff] }
 0x10d   : > { %7514 = vst [vmem:[#allocation40_spill] sm:$0xff] %v6337_v32 }
 0x10e   : > { %v898_v28 = vpop.f32.mrf.mxu2 }
 0x10f   : > { %v6300_v8 = vadd.f32 %v898_v28, %v720_v46  ;;  %v723_v26 = vpop.f32.mrf.mxu0  ;;  %v6307_v20 = vpop.f32.mrf.mxu1 }
 0x110   : > { %v6311_v13 = vpop.f32.mrf.mxu3 }
 0x111   : > { %7506 = vst [vmem:[#allocation32_spill] sm:$0xff] %v6300_v8 }
 0x112   : > { %4875 = vmatmul.msk.f32.gmra.mxu0 %vm627_vm0, %v6303_v57  ;;  %7508 = vst [vmem:[#allocation34_spill] sm:$0xff] %v6311_v13  ;;  %4887 = vmatmul.msk.f32.gmra.mxu1 %vm627_vm0, %v6235_v47 }
 0x113   : > { %4920 = vmatmul.msk.f32.gmra.mxu2 %vm627_vm0, %v6073_v35 }
 0x114   : > { %4938 = vmatmul.msk.f32.gmra.mxu3 %vm627_vm0, %v6101_v39 }
 0x116   : > { %v901_v46 = vpop.f32.mrf.mxu2 }
 0x117   : > { %v6317_v28 = vadd.f32 %v901_v46, %v723_v26  ;;  %v726_v52 = vpop.f32.mrf.mxu0  ;;  %v6324_v13 = vpop.f32.mrf.mxu1 }
 0x118   : > { %7511 = vst [vmem:[#allocation37_spill] sm:$0xff] %v6324_v13  ;;  %v6328_v8 = vpop.f32.mrf.mxu3 }
 0x119   : > { %7509 = vst [vmem:[#allocation35_spill] sm:$0xff] %v6317_v28 }
 0x11a   : > { %4876 = vmatmul.msk.f32.gmra.mxu0 %vm627_vm0, %v6320_v24  ;;  %7512 = vst [vmem:[#allocation38_spill] sm:$0xff] %v6328_v8  ;;  %4888 = vmatmul.msk.f32.gmra.mxu1 %vm627_vm0, %v6252_v59 }
 0x11b   : > { %4921 = vmatmul.msk.f32.gmra.mxu2 %vm627_vm0, %v6087_v37 }
 0x11c   : > { %4939 = vmatmul.msk.f32.gmra.mxu3 %vm627_vm0, %v6115_v45 }
 0x11e   : > { %v904_v18 = vpop.f32.mrf.mxu2 }
 0x11f   : > { %v6334_v35 = vadd.f32 %v904_v18, %v726_v52  ;;  %v729_v26 = vpop.f32.mrf.mxu0  ;;  %v6341_v46 = vpop.f32.mrf.mxu1 }
 0x120   : > { %7515 = vst [vmem:[#allocation41_spill] sm:$0xff] %v6341_v46  ;;  %v6345_v8 = vpop.f32.mrf.mxu3  ;;  %v1697_v46 = vld [vmem:[#allocation2 + $0xb0] sm:$0xff] }
 0x121   : > { %7513 = vst [vmem:[#allocation39_spill] sm:$0xff] %v6334_v35  ;;  %v6354_v35 = vld [vmem:[%s5924_s20 + $0xb2] sm:$0xff]  ;;  %1761 = vmatpush.msrb.mxu2 %v1697_v46 }
 0x122   : > { %4877 = vmatmul.msk.f32.gmra.mxu0 %vm627_vm0, %v6337_v32  ;;  %7516 = vst [vmem:[#allocation42_spill] sm:$0xff] %v6345_v8  ;;  %4889 = vmatmul.msk.f32.gmra.mxu1 %vm627_vm0, %v6269_v10  ;;  %v1695_v8 = vld [vmem:[#allocation2 + $0xa0] sm:$0xff] }
 0x123   : > { %4922 = vmatmul.msk.f32.gmra.mxu2 %vm627_vm0, %v6101_v39  ;;  %7518 = vst [vmem:[#allocation44_spill] sm:$0xff] %v6354_v35  ;;  %v1698_v39 = vld [vmem:[#allocation2 + $0xb8] sm:$0xff] }
 0x124   : > { %4940 = vmatmul.msk.f32.gmra.mxu3 %vm627_vm0, %v6126_v48  ;;  %1762 = vmatpush.msrb.mxu2 %v1695_v8 }
 0x125   : > { %1826 = vmatpush.msra.mxu3 %v1698_v39  ;;  %v6388_v39 = vld [vmem:[%s5924_s20 + $0xc8] sm:$0xff] }
 0x126   : > { %v907_v37 = vpop.f32.mrf.mxu2  ;;  %7526 = vst [vmem:[#allocation52_spill] sm:$0xff] %v6388_v39 }
 0x127   : > { %v6351_v52 = vadd.f32 %v907_v37, %v729_v26  ;;  %v732_v18 = vpop.f32.mrf.mxu0  ;;  %v6358_v28 = vpop.f32.mrf.mxu1  ;;  %v1696_v26 = vld [vmem:[#allocation2 + $0xa8] sm:$0xff] }
 0x128   : > { %7519 = vst [vmem:[#allocation45_spill] sm:$0xff] %v6358_v28  ;;  %v6362_v13 = vpop.f32.mrf.mxu3  ;;  %1827 = vmatpush.msra.mxu3 %v1696_v26 }
 0x129   : > { %7517 = vst [vmem:[#allocation43_spill] sm:$0xff] %v6351_v52  ;;  %v6369_v52 = vld [vmem:[%s5924_s20 + $0xc0] sm:$0xff] }
 0x12a   : > { %4878 = vmatmul.msk.f32.gmra.mxu0 %vm627_vm0, %v6354_v35  ;;  %7520 = vst [vmem:[#allocation46_spill] sm:$0xff] %v6362_v13  ;;  %4890 = vmatmul.msk.f32.gmra.mxu1 %vm627_vm0, %v6286_v22  ;;  %v1465_v13 = vld [vmem:[#allocation2 + $0x88] sm:$0xff] }
 0x12b   : > { %4923 = vmatmul.msk.f32.gmra.mxu2 %vm627_vm0, %v6115_v45  ;;  %7521 = vst [vmem:[#allocation47_spill] sm:$0xff] %v6369_v52  ;;  %1596 = vmatpush.msrb.mxu1 %v1465_v13 }
 0x12c   : > { %4941 = vmatmul.msk.f32.gmra.mxu3 %vm627_vm0, %v6369_v52 }
 0x12e   : > { %v910_v37 = vpop.f32.mrf.mxu2 }
 0x12f   : > { %v6371_v46 = vadd.f32 %v910_v37, %v732_v18  ;;  %v1070_v28 = vpop.f32.mrf.mxu0  ;;  %v6375_v8 = vpop.f32.mrf.mxu1 }
 0x130   : > { %7523 = vst [vmem:[#allocation49_spill] sm:$0xff] %v6375_v8  ;;  %v6379_v45 = vpop.f32.mrf.mxu3 }
 0x131   : > { %7522 = vst [vmem:[#allocation48_spill] sm:$0xff] %v6371_v46  ;;  %v1183_v46 = vadd.f32 %v1070_v28, %v6149_v54 }
 0x132   : > { %4959 = vmatmul.msk.f32.vlgmr.msra.gmra.mxu0 %vm627_vm0, %v5952_v15  ;;  %7524 = vst [vmem:[#allocation50_spill] sm:$0xff] %v6379_v45  ;;  %4891 = vmatmul.msk.f32.gmra.mxu1 %vm627_vm0, %v6303_v57 }
 0x133   : > { %4924 = vmatmul.msk.f32.gmra.mxu2 %vm627_vm0, %v6126_v48 }
 0x134   : > { %4942 = vmatmul.msk.f32.gmra.mxu3 %vm627_vm0, %v6388_v39 }
 0x136   : > { %v6385_v18 = vpop.f32.mrf.mxu2 }
 0x137   : > { %7525 = vst [vmem:[#allocation51_spill] sm:$0xff] %v6385_v18  ;;  %v1073_v26 = vpop.f32.mrf.mxu0  ;;  %v6392_v37 = vpop.f32.mrf.mxu1 }
 0x138   : > { %7527 = vst [vmem:[#allocation53_spill] sm:$0xff] %v6392_v37  ;;  %v6396_v13 = vpop.f32.mrf.mxu3 }
 0x139   : > { %7528 = vst [vmem:[#allocation54_spill] sm:$0xff] %v6396_v13 }
 0x13a   : > { %4960 = vmatmul.msk.f32.gmra.mxu0 %vm627_vm0, %v5965_v17  ;;  %4892 = vmatmul.msk.f32.gmra.mxu1 %vm627_vm0, %v6320_v24 }
 0x13b   : > { %4925 = vmatmul.msk.f32.gmra.mxu2 %vm627_vm0, %v6369_v52 }
 0x13c   : > { %5023 = vmatmul.msk.f32.vlgmr.msra.gmra.mxu3 %vm627_vm0, %v6137_v51 }
 0x13e   : > { %v6402_v48 = vpop.f32.mrf.mxu2 }
 0x13f   : > { %7529 = vst [vmem:[#allocation55_spill] sm:$0xff] %v6402_v48  ;;  %v1076_v45 = vpop.f32.mrf.mxu0  ;;  %v6406_v18 = vpop.f32.mrf.mxu1 }
 0x140   : > { %7530 = vst [vmem:[#allocation56_spill] sm:$0xff] %v6406_v18  ;;  %v1367_v37 = vpop.f32.mrf.mxu3 }
 0x142   : > { %4961 = vmatmul.msk.f32.gmra.mxu0 %vm627_vm0, %v5978_v19  ;;  %4893 = vmatmul.msk.f32.gmra.mxu1 %vm627_vm0, %v6337_v32 }
 0x143   : > { %4926 = vmatmul.msk.f32.gmra.mxu2 %vm627_vm0, %v6388_v39 }
 0x144   : > { %5024 = vmatmul.msk.f32.gmra.mxu3 %vm627_vm0, %v6152_v56 }
 0x146   : > { %v936_v13 = vpop.f32.mrf.mxu2 }
 0x147   : > { %v1079_v52 = vpop.f32.mrf.mxu0  ;;  %v6416_v48 = vpop.f32.mrf.mxu1  ;;  %v937_v8 = vadd.f32 %v936_v13, %v6173_v63  ;;  %v940_v63 = vadd.f32 %v6160_v58, %v6189_v6 }
 0x148   : > { %7531 = vst [vmem:[#allocation57_spill] sm:$0xff] %v6416_v48  ;;  %v1370_v18 = vpop.f32.mrf.mxu3 }
 0x14a   : > { %4962 = vmatmul.msk.f32.gmra.mxu0 %vm627_vm0, %v5992_v21  ;;  %4894 = vmatmul.msk.f32.gmra.mxu1 %vm627_vm0, %v6354_v35 }
 0x14b   : > { %5007 = vmatmul.msk.f32.vlgmr.msrb.gmra.mxu2 %vm627_vm0, %v6137_v51  ;;  %v1185_v51 = vadd.f32 %v1073_v26, %v6166_v60  ;;  %v943_v60 = vadd.f32 %v6177_v0, %v6205_v12 }
 0x14c   : > { %5025 = vmatmul.msk.f32.gmra.mxu3 %vm627_vm0, %v6169_v62 }
 0x14e   : > { %v1302_v39 = vpop.f32.mrf.mxu2 }
 0x14f   : > { %v6426_v32 = vadd.f32 %v1302_v39, %v1183_v46  ;;  %v1082_v24 = vpop.f32.mrf.mxu0  ;;  %v1135_v48 = vpop.f32.mrf.mxu1 }
 0x150   : > { %v1184_v5 = vadd.f32 %v1135_v48, %v937_v8  ;;  %v1373_v35 = vpop.f32.mrf.mxu3 }
 0x152   : > { %4963 = vmatmul.msk.f32.gmra.mxu0 %vm627_vm0, %v6006_v23  ;;  %v6432_v57 = vadd.f32 %v1367_v37, %v1184_v5  ;;  %4975 = vmatmul.msk.f32.vlgmr.msrb.gmra.mxu1 %vm627_vm0, %v5952_v15 }
 0x153   : > { %5008 = vmatmul.msk.f32.gmra.mxu2 %vm627_vm0, %v6152_v56  ;;  %v1187_v56 = vadd.f32 %v1076_v45, %v6182_v2  ;;  %v946_v2 = vadd.f32 %v6193_v7, %v6222_v41 }
 0x154   : > { %5026 = vmatmul.msk.f32.gmra.mxu3 %vm627_vm0, %v6185_v4 }
 0x156   : > { %v1305_v54 = vpop.f32.mrf.mxu2 }
 0x157   : > { %v6441_v28 = vadd.f32 %v1305_v54, %v1185_v51  ;;  %v1085_v46 = vpop.f32.mrf.mxu0  ;;  %v1138_v5 = vpop.f32.mrf.mxu1 }
 0x158   : > { %v1186_v8 = vadd.f32 %v1138_v5, %v940_v63  ;;  %v1376_v15 = vpop.f32.mrf.mxu3 }
 0x15a   : > { %4964 = vmatmul.msk.f32.gmra.mxu0 %vm627_vm0, %v6020_v25  ;;  %v6447_v39 = vadd.f32 %v1370_v18, %v1186_v8  ;;  %4976 = vmatmul.msk.f32.gmra.mxu1 %vm627_vm0, %v5965_v17 }
 0x15b   : > { %5009 = vmatmul.msk.f32.gmra.mxu2 %vm627_vm0, %v6169_v62  ;;  %v1189_v62 = vadd.f32 %v1079_v52, %v6198_v9  ;;  %v949_v9 = vadd.f32 %v6209_v14, %v6239_v49 }
 0x15c   : > { %5027 = vmatmul.msk.f32.gmra.mxu3 %vm627_vm0, %v6201_v11 }
 0x15e   : > { %v1308_v58 = vpop.f32.mrf.mxu2 }
 0x15f   : > { %v6456_v6 = vadd.f32 %v1308_v58, %v1187_v56  ;;  %v1088_v26 = vpop.f32.mrf.mxu0  ;;  %v1141_v18 = vpop.f32.mrf.mxu1 }
 0x160   : > { %v1188_v37 = vadd.f32 %v1141_v18, %v943_v60  ;;  %v1379_v17 = vpop.f32.mrf.mxu3 }
 0x162   : > { %4965 = vmatmul.msk.f32.gmra.mxu0 %vm627_vm0, %v6034_v27  ;;  %v6462_v13 = vadd.f32 %v1373_v35, %v1188_v37  ;;  %4977 = vmatmul.msk.f32.gmra.mxu1 %vm627_vm0, %v5978_v19 }
 0x163   : > { %5010 = vmatmul.msk.f32.gmra.mxu2 %vm627_vm0, %v6185_v4  ;;  %v1191_v4 = vadd.f32 %v1082_v24, %v6215_v30  ;;  %v952_v30 = vadd.f32 %v6226_v42, %v6256_v61 }
 0x164   : > { %5028 = vmatmul.msk.f32.gmra.mxu3 %vm627_vm0, %v6218_v34 }
 0x166   : > { %v1311_v0 = vpop.f32.mrf.mxu2 }
 0x167   : > { %v6471_v12 = vadd.f32 %v1311_v0, %v1189_v62  ;;  %v1091_v45 = vpop.f32.mrf.mxu0  ;;  %v1144_v35 = vpop.f32.mrf.mxu1 }
 0x168   : > { %v1190_v48 = vadd.f32 %v1144_v35, %v946_v2  ;;  %v1382_v19 = vpop.f32.mrf.mxu3  ;;  %v7532_v2 = vld [vmem:[#allocation33_spill] sm:$0xff] }
 0x16a   : > { %4966 = vmatmul.msk.f32.gmra.mxu0 %vm627_vm0, %v6048_v29  ;;  %v6477_v51 = vadd.f32 %v1376_v15, %v1190_v48  ;;  %4978 = vmatmul.msk.f32.gmra.mxu1 %vm627_vm0, %v5992_v21 }
 0x16b   : > { %5011 = vmatmul.msk.f32.gmra.mxu2 %vm627_vm0, %v6201_v11  ;;  %v1193_v11 = vadd.f32 %v1085_v46, %v6232_v44  ;;  %v955_v44 = vadd.f32 %v6243_v50, %v6273_v16 }
 0x16c   : > { %5029 = vmatmul.msk.f32.gmra.mxu3 %vm627_vm0, %v6235_v47 }
 0x16e   : > { %v1314_v7 = vpop.f32.mrf.mxu2 }
 0x16f   : > { %v6486_v41 = vadd.f32 %v1314_v7, %v1191_v4  ;;  %v1094_v52 = vpop.f32.mrf.mxu0  ;;  %v1147_v54 = vpop.f32.mrf.mxu1 }
 0x170   : > { %v1192_v63 = vadd.f32 %v1147_v54, %v949_v9  ;;  %v1385_v21 = vpop.f32.mrf.mxu3  ;;  %v7535_v9 = vld [vmem:[#allocation37_spill] sm:$0xff] }
 0x172   : > { %4967 = vmatmul.msk.f32.gmra.mxu0 %vm627_vm0, %v6062_v33  ;;  %v6492_v5 = vadd.f32 %v1379_v17, %v1192_v63  ;;  %4979 = vmatmul.msk.f32.gmra.mxu1 %vm627_vm0, %v6006_v23 }
 0x173   : > { %5012 = vmatmul.msk.f32.gmra.mxu2 %vm627_vm0, %v6218_v34  ;;  %v1195_v34 = vadd.f32 %v1088_v26, %v6249_v53  ;;  %v958_v53 = vadd.f32 %v6260_v1, %v6290_v55 }
 0x174   : > { %5030 = vmatmul.msk.f32.gmra.mxu3 %vm627_vm0, %v6252_v59 }
 0x176   : > { %v1317_v14 = vpop.f32.mrf.mxu2 }
 0x177   : > { %v6501_v49 = vadd.f32 %v1317_v14, %v1193_v11  ;;  %v1097_v24 = vpop.f32.mrf.mxu0  ;;  %v1150_v8 = vpop.f32.mrf.mxu1  ;;  %v7538_v11 = vld [vmem:[#allocation36_spill] sm:$0xff] }
 0x178   : > { %v1194_v15 = vadd.f32 %v1150_v8, %v952_v30  ;;  %v1388_v23 = vpop.f32.mrf.mxu3  ;;  %v7539_v30 = vld [vmem:[#allocation26_spill] sm:$0xff] }
 0x17a   : > { %4968 = vmatmul.msk.f32.gmra.mxu0 %vm627_vm0, %v6076_v36  ;;  %v6507_v56 = vadd.f32 %v1382_v19, %v1194_v15  ;;  %4980 = vmatmul.msk.f32.gmra.mxu1 %vm627_vm0, %v6020_v25  ;;  %v7533_v19 = vld [vmem:[#allocation25_spill] sm:$0xff] }
 0x17b   : > { %5013 = vmatmul.msk.f32.gmra.mxu2 %vm627_vm0, %v6235_v47  ;;  %v1197_v47 = vadd.f32 %v1091_v45, %v6266_v3  ;;  %v961_v3 = vadd.f32 %v6277_v31, %v6307_v20  ;;  %v1929_v45 = vld [vmem:[#allocation2 + $0xd0] sm:$0xff]  ;;  %v1930_v20 = vld [vmem:[#allocation2 + $0xd8] sm:$0xff]  ;;  %v7534_v31 = vld [vmem:[#allocation32_spill] sm:$0xff] }
 0x17c   : > { %5031 = vmatmul.msk.f32.gmra.mxu3 %vm627_vm0, %v6269_v10  ;;  %1993 = vmatpush.msrb.mxu0 %v1929_v45  ;;  %v1201_v4 = vadd.f32 %v1097_v24, %v7534_v31  ;;  %v7541_v24 = vld [vmem:[#allocation35_spill] sm:$0xff] }
 0x17d   : > { %2058 = vmatpush.msra.mxu1 %v1930_v20  ;;  %v2158_v20 = vld [vmem:[#allocation2 + $0xe0] sm:$0xff] }
 0x17e   : > { %v1320_v42 = vpop.f32.mrf.mxu2 }
 0x17f   : > { %v6516_v61 = vadd.f32 %v1320_v42, %v1195_v34  ;;  %v1100_v46 = vpop.f32.mrf.mxu0  ;;  %v1153_v58 = vpop.f32.mrf.mxu1  ;;  %v7542_v34 = vld [vmem:[#allocation41_spill] sm:$0xff]  ;;  %v7543_v42 = vld [vmem:[#allocation34_spill] sm:$0xff] }
 0x180   : > { %v1196_v60 = vadd.f32 %v1153_v58, %v955_v44  ;;  %v1391_v25 = vpop.f32.mrf.mxu3  ;;  %v1203_v15 = vadd.f32 %v1100_v46, %v7541_v24  ;;  %v967_v44 = vadd.f32 %v7543_v42, %v7542_v34  ;;  %v1928_v34 = vld [vmem:[#allocation2 + $0xc8] sm:$0xff]  ;;  %v7557_v42 = vld [vmem:[#allocation27_spill] sm:$0xff] }
 0x181   : > { %2059 = vmatpush.msra.mxu1 %v1928_v34  ;;  %v7571_v34 = vld [vmem:[#allocation55_spill] sm:$0xff] }
 0x182   : > { %4969 = vmatmul.msk.f32.gmra.mxu0 %vm627_vm0, %v6090_v38  ;;  %v6522_v18 = vadd.f32 %v1385_v21, %v1196_v60  ;;  %4981 = vmatmul.msk.f32.gmra.mxu1 %vm627_vm0, %v6034_v27 }
 0x183   : > { %5014 = vmatmul.msk.f32.gmra.mxu2 %vm627_vm0, %v6252_v59  ;;  %v1199_v59 = vadd.f32 %v1094_v52, %v6283_v43  ;;  %v7536_v52 = vld [vmem:[#allocation31_spill] sm:$0xff] }
 0x184   : > { %5032 = vmatmul.msk.f32.gmra.mxu3 %vm627_vm0, %v6286_v22  ;;  %v964_v54 = vadd.f32 %v7536_v52, %v7535_v9  ;;  %v2159_v52 = vld [vmem:[#allocation2 + $0xe8] sm:$0xff] }
 0x186   : > { %v1323_v50 = vpop.f32.mrf.mxu2 }
 0x187   : > { %v6531_v16 = vadd.f32 %v1323_v50, %v1197_v47  ;;  %v1103_v26 = vpop.f32.mrf.mxu0  ;;  %v1156_v37 = vpop.f32.mrf.mxu1  ;;  %v7545_v47 = vld [vmem:[#allocation40_spill] sm:$0xff] }
 0x188   : > { %v1198_v17 = vadd.f32 %v1156_v37, %v958_v53  ;;  %v1394_v27 = vpop.f32.mrf.mxu3  ;;  %v7547_v37 = vld [vmem:[#allocation39_spill] sm:$0xff] }
 0x18a   : > { %4970 = vmatmul.msk.f32.gmra.mxu0 %vm627_vm0, %v6104_v40  ;;  %v6537_v62 = vadd.f32 %v1388_v23, %v1198_v17  ;;  %4982 = vmatmul.msk.f32.gmra.mxu1 %vm627_vm0, %v6048_v29  ;;  %v1927_v29 = vld [vmem:[#allocation2 + $0xc0] sm:$0xff]  ;;  %v1205_v17 = vadd.f32 %v1103_v26, %v7547_v37  ;;  %v6633_v37 = vld [vmem:[%s5924_s20 + $0xca] sm:$0xff] }
 0x18b   : > { %5015 = vmatmul.msk.f32.gmra.mxu2 %vm627_vm0, %v6269_v10  ;;  %1994 = vmatpush.msrb.mxu0 %v1927_v29  ;;  %v2160_v29 = vld [vmem:[#allocation2 + $0xf0] sm:$0xff] }
 0x18c   : > { %5033 = vmatmul.msk.f32.gmra.mxu3 %vm627_vm0, %v7532_v2  ;;  %2224 = vmatpush.msra.mxu2 %v2160_v29  ;;  %v7563_v29 = vld [vmem:[#allocation28_spill] sm:$0xff] }
 0x18e   : > { %v1326_v1 = vpop.f32.mrf.mxu2  ;;  %2225 = vmatpush.msra.mxu2 %v2158_v20 }
 0x18f   : > { %v6546_v55 = vadd.f32 %v1326_v1, %v1199_v59  ;;  %v1106_v0 = vpop.f32.mrf.mxu0  ;;  %v1159_v35 = vpop.f32.mrf.mxu1  ;;  %v7548_v59 = vld [vmem:[#allocation45_spill] sm:$0xff]  ;;  %v7549_v1 = vld [vmem:[#allocation38_spill] sm:$0xff] }
 0x190   : > { %v1200_v48 = vadd.f32 %v1159_v35, %v961_v3  ;;  %v1397_v10 = vpop.f32.mrf.mxu3  ;;  %v970_v3 = vadd.f32 %v7549_v1, %v7548_v59  ;;  %v6601_v35 = vld [vmem:[%s5924_s20 + $0xc9] sm:$0xff] }
 0x192   : > { %4971 = vmatmul.msk.f32.gmra.mxu0 %vm627_vm0, %v7533_v19  ;;  %v6552_v43 = vadd.f32 %v1391_v25, %v1200_v48  ;;  %4983 = vmatmul.msk.f32.gmra.mxu1 %vm627_vm0, %v6062_v33  ;;  %v6581_v25 = vld [vmem:[%s5924_s20 + $0xc1] sm:$0xff] }
 0x193   : > { %5016 = vmatmul.msk.f32.gmra.mxu2 %vm627_vm0, %v6286_v22  ;;  %v7551_v48 = vld [vmem:[#allocation44_spill] sm:$0xff] }
 0x194   : > { %5034 = vmatmul.msk.f32.gmra.mxu3 %vm627_vm0, %v7538_v11 }
 0x196   : > { %v1329_v7 = vpop.f32.mrf.mxu2 }
 0x197   : > { %v6561_v63 = vadd.f32 %v1329_v7, %v1201_v4  ;;  %v1109_v21 = vpop.f32.mrf.mxu0  ;;  %v1162_v33 = vpop.f32.mrf.mxu1  ;;  %v2161_v4 = vld [vmem:[#allocation2 + $0xf8] sm:$0xff] }
 0x198   : > { %v1202_v14 = vadd.f32 %v1162_v33, %v964_v54  ;;  %v1400_v22 = vpop.f32.mrf.mxu3  ;;  %2289 = vmatpush.msrb.mxu3 %v2161_v4  ;;  %v7553_v7 = vld [vmem:[#allocation43_spill] sm:$0xff]  ;;  %v7554_v33 = vld [vmem:[#allocation49_spill] sm:$0xff] }
 0x199   : > { %7537 = vst [vmem:[#allocation33_spill] sm:$0xff] %v6561_v63  ;;  %v1207_v9 = vadd.f32 %v1106_v0, %v7553_v7 }
 0x19a   : > { %4972 = vmatmul.msk.f32.gmra.mxu0 %vm627_vm0, %v7539_v30  ;;  %v6567_v8 = vadd.f32 %v1394_v27, %v1202_v14  ;;  %4984 = vmatmul.msk.f32.gmra.mxu1 %vm627_vm0, %v6076_v36  ;;  %v7555_v14 = vld [vmem:[#allocation42_spill] sm:$0xff] }
 0x19b   : > { %5017 = vmatmul.msk.f32.gmra.mxu2 %vm627_vm0, %v7532_v2  ;;  %2290 = vmatpush.msrb.mxu3 %v2159_v52  ;;  %v7567_v52 = vld [vmem:[#allocation56_spill] sm:$0xff] }
 0x19c   : > { %7540 = vst [vmem:[#allocation25_spill] sm:$0xff] %v6567_v8  ;;  %5035 = vmatmul.msk.f32.gmra.mxu3 %vm627_vm0, %v7545_v47 }
 0x19e   : > { %v1332_v23 = vpop.f32.mrf.mxu2 }
 0x19f   : > { %v6576_v58 = vadd.f32 %v1332_v23, %v1203_v15  ;;  %v6578_v60 = vpop.f32.mrf.mxu0  ;;  %v1165_v36 = vpop.f32.mrf.mxu1 }
 0x1a0   : > { %v1204_v50 = vadd.f32 %v1165_v36, %v967_v44  ;;  %v1403_v46 = vpop.f32.mrf.mxu3 }
 0x1a1   : > { %7544 = vst [vmem:[#allocation32_spill] sm:$0xff] %v6576_v58 }
 0x1a2   : > { %4973 = vmatmul.msk.f32.gmra.mxu0 %vm627_vm0, %v6581_v25  ;;  %v6587_v53 = vadd.f32 %v1397_v10, %v1204_v50  ;;  %4985 = vmatmul.msk.f32.gmra.mxu1 %vm627_vm0, %v6090_v38 }
 0x1a3   : > { %5018 = vmatmul.msk.f32.gmra.mxu2 %vm627_vm0, %v7538_v11  ;;  %v6615_v11 = vld [vmem:[%s5924_s20 + $0xc2] sm:$0xff] }
 0x1a4   : > { %7546 = vst [vmem:[#allocation37_spill] sm:$0xff] %v6587_v53  ;;  %5036 = vmatmul.msk.f32.gmra.mxu3 %vm627_vm0, %v7551_v48 }
 0x1a6   : > { %v1335_v27 = vpop.f32.mrf.mxu2 }
 0x1a7   : > { %v6596_v2 = vadd.f32 %v1335_v27, %v1205_v17  ;;  %v6598_v45 = vpop.f32.mrf.mxu0  ;;  %v1168_v38 = vpop.f32.mrf.mxu1  ;;  %v7560_v17 = vld [vmem:[#allocation53_spill] sm:$0xff]  ;;  %v7561_v27 = vld [vmem:[#allocation46_spill] sm:$0xff] }
 0x1a8   : > { %v1206_v10 = vadd.f32 %v1168_v38, %v970_v3  ;;  %v1406_v26 = vpop.f32.mrf.mxu3  ;;  %v976_v59 = vadd.f32 %v7561_v27, %v7560_v17  ;;  %v7565_v38 = vld [vmem:[#allocation51_spill] sm:$0xff]  ;;  %v7573_v27 = vld [vmem:[#allocation57_spill] sm:$0xff] }
 0x1a9   : > { %7550 = vst [vmem:[#allocation31_spill] sm:$0xff] %v6596_v2  ;;  %v5088_v17 = vld [vmem:[%s5924_s20 + $0x39] sm:$0xff] }
 0x1aa   : > { %4974 = vmatmul.msk.f32.gmra.mxu0 %vm627_vm0, %v6601_v35  ;;  %v6607_v31 = vadd.f32 %v1400_v22, %v1206_v10  ;;  %4986 = vmatmul.msk.f32.gmra.mxu1 %vm627_vm0, %v6104_v40  ;;  %v973_v22 = vadd.f32 %v7555_v14, %v7554_v33 }
 0x1ab   : > { %5019 = vmatmul.msk.f32.gmra.mxu2 %vm627_vm0, %v7545_v47  ;;  %v7559_v47 = vld [vmem:[#allocation48_spill] sm:$0xff] }
 0x1ac   : > { %7552 = vst [vmem:[#allocation36_spill] sm:$0xff] %v6607_v31  ;;  %5037 = vmatmul.msk.f32.gmra.mxu3 %vm627_vm0, %v6615_v11  ;;  %v1209_v36 = vadd.f32 %v1109_v21, %v7559_v47  ;;  %v5145_v31 = vld [vmem:[%s5924_s20 + $0xaa] sm:$0xff] }
 0x1ae   : > { %v1338_v54 = vpop.f32.mrf.mxu2 }
 0x1af   : > { %v6619_v24 = vadd.f32 %v1338_v54, %v1207_v9  ;;  %v1533_v15 = vpop.f32.mrf.mxu0  ;;  %v1171_v40 = vpop.f32.mrf.mxu1  ;;  %v5087_v9 = vld [vmem:[%s5924_s20 + $0x31] sm:$0xff] }
 0x1b0   : > { %v1208_v23 = vadd.f32 %v1171_v40, %v973_v22  ;;  %v1409_v0 = vpop.f32.mrf.mxu3  ;;  %v7568_v54 = vld [vmem:[#allocation50_spill] sm:$0xff]  ;;  %v6658_v40 = vld [vmem:[%s5924_s20 + $0x48] sm:$0xff] }
 0x1b1   : > { %7556 = vst [vmem:[#allocation26_spill] sm:$0xff] %v6619_v24  ;;  %v979_v33 = vadd.f32 %v7568_v54, %v7567_v52  ;;  %v5089_v52 = vld [vmem:[%s5924_s20 + $0x49] sm:$0xff] }
 0x1b2   : > { %5055 = vmatmul.msk.f32.vlgmr.msrb.gmra.mxu0 %vm627_vm0, %v7557_v42  ;;  %v6625_v44 = vadd.f32 %v1403_v46, %v1208_v23  ;;  %4987 = vmatmul.msk.f32.gmra.mxu1 %vm627_vm0, %v7533_v19  ;;  %v7570_v23 = vld [vmem:[#allocation30_spill] sm:$0xff] }
 0x1b3   : > { %5020 = vmatmul.msk.f32.gmra.mxu2 %vm627_vm0, %v7551_v48  ;;  %v7564_v48 = vld [vmem:[#allocation29_spill] sm:$0xff]  ;;  %v917_v42 = vadd.f32 %v7571_v34, %v7570_v23 }
 0x1b4   : > { %7558 = vst [vmem:[#allocation35_spill] sm:$0xff] %v6625_v44  ;;  %5038 = vmatmul.msk.f32.gmra.mxu3 %vm627_vm0, %v6633_v37  ;;  %v914_v10 = vadd.f32 %v7565_v38, %v7564_v48  ;;  %v5144_v44 = vld [vmem:[%s5924_s20 + $0x9a] sm:$0xff] }
 0x1b6   : > { %v1341_v50 = vpop.f32.mrf.mxu2  ;;  %v1211_v4 = vadd.f32 %v6578_v60, %v914_v10 }
 0x1b7   : > { %v6637_v1 = vadd.f32 %v1341_v50, %v1209_v36  ;;  %v1536_v3 = vpop.f32.mrf.mxu0  ;;  %v1174_v19 = vpop.f32.mrf.mxu1  ;;  %v1213_v36 = vadd.f32 %v6598_v45, %v917_v42  ;;  %v5090_v42 = vld [vmem:[%s5924_s20 + $0x51] sm:$0xff] }
 0x1b8   : > { %v1210_v46 = vadd.f32 %v1174_v19, %v976_v59  ;;  %v1412_v21 = vpop.f32.mrf.mxu3  ;;  %v7574_v59 = vld [vmem:[#allocation54_spill] sm:$0xff] }
 0x1b9   : > { %7562 = vst [vmem:[#allocation41_spill] sm:$0xff] %v6637_v1  ;;  %v982_v19 = vadd.f32 %v7574_v59, %v7573_v27 }
 0x1ba   : > { %5056 = vmatmul.msk.f32.gmra.mxu0 %vm627_vm0, %v7563_v29  ;;  %v6645_v20 = vadd.f32 %v1406_v26, %v1210_v46  ;;  %4988 = vmatmul.msk.f32.gmra.mxu1 %vm627_vm0, %v7539_v30 }
 0x1bb   : > { %5021 = vmatmul.msk.f32.gmra.mxu2 %vm627_vm0, %v6615_v11 }
 0x1bc   : > { %7566 = vst [vmem:[#allocation34_spill] sm:$0xff] %v6645_v20  ;;  %5119 = vmatmul.msk.f32.vlgmr.msrb.gmra.mxu3 %vm627_vm0, %v5087_v9 }
 0x1be   : > { %v1344_v7 = vpop.f32.mrf.mxu2 }
 0x1bf   : > { %v6655_v14 = vadd.f32 %v1344_v7, %v1211_v4  ;;  %v1539_v22 = vpop.f32.mrf.mxu0  ;;  %v1177_v30 = vpop.f32.mrf.mxu1  ;;  %v1646_v4 = vadd.f32 %v1533_v15, %v6426_v32  ;;  %v5353_v32 = vld [vmem:[%s5924_s20 + $0x30] sm:$0xff]  ;;  %v1648_v15 = vadd.f32 %v1536_v3, %v6441_v28 }
 0x1c0   : > { %v1212_v26 = vadd.f32 %v1177_v30, %v979_v33  ;;  %v1829_v60 = vpop.f32.mrf.mxu3  ;;  %v6693_v30 = vld [vmem:[%s5924_s20 + $0x60] sm:$0xff]  ;;  %v1650_v28 = vadd.f32 %v1539_v22, %v6456_v6 }
 0x1c1   : > { %7569 = vst [vmem:[#allocation40_spill] sm:$0xff] %v6655_v14 }
 0x1c2   : > { %5057 = vmatmul.msk.f32.gmra.mxu0 %vm627_vm0, %v6658_v40  ;;  %v6665_v47 = vadd.f32 %v1409_v0, %v1212_v26  ;;  %4989 = vmatmul.msk.f32.gmra.mxu1 %vm627_vm0, %v6581_v25  ;;  %v6678_v0 = vld [vmem:[%s5924_s20 + $0x50] sm:$0xff] }
 0x1c3   : > { %5022 = vmatmul.msk.f32.gmra.mxu2 %vm627_vm0, %v6633_v37 }
 0x1c4   : > { %7572 = vst [vmem:[#allocation39_spill] sm:$0xff] %v6665_v47  ;;  %5120 = vmatmul.msk.f32.gmra.mxu3 %vm627_vm0, %v5088_v17 }
 0x1c6   : > { %v1347_v50 = vpop.f32.mrf.mxu2 }
 0x1c7   : > { %v6675_v46 = vadd.f32 %v1347_v50, %v1213_v36  ;;  %v1542_v29 = vpop.f32.mrf.mxu0  ;;  %v1180_v48 = vpop.f32.mrf.mxu1  ;;  %v5044_v50 = vld [vmem:[%s5924_s20 + $0x68] sm:$0xff] }
 0x1c8   : > { %v1214_v38 = vadd.f32 %v1180_v48, %v982_v19  ;;  %v1832_v10 = vpop.f32.mrf.mxu3  ;;  %v5091_v19 = vld [vmem:[%s5924_s20 + $0x61] sm:$0xff]  ;;  %v1652_v6 = vadd.f32 %v1542_v29, %v6471_v12 }
 0x1c9   : > { %7575 = vst [vmem:[#allocation45_spill] sm:$0xff] %v6675_v46  ;;  %v5141_v46 = vld [vmem:[%s5924_s20 + $0x7a] sm:$0xff] }
 0x1ca   : > { %5058 = vmatmul.msk.f32.gmra.mxu0 %vm627_vm0, %v6678_v0  ;;  %v6683_v45 = vadd.f32 %v1412_v21, %v1214_v38  ;;  %4990 = vmatmul.msk.f32.gmra.mxu1 %vm627_vm0, %v6601_v35 }
 0x1cb   : > { %5103 = vmatmul.msk.f32.vlgmr.msra.gmra.mxu2 %vm627_vm0, %v5087_v9 }
 0x1cc   : > { %7576 = vst [vmem:[#allocation38_spill] sm:$0xff] %v6683_v45  ;;  %5121 = vmatmul.msk.f32.gmra.mxu3 %vm627_vm0, %v5089_v52 }
 0x1ce   : > { %v1764_v7 = vpop.f32.mrf.mxu2 }
 0x1cf   : > { %v6690_v54 = vadd.f32 %v1764_v7, %v1646_v4  ;;  %v1545_v33 = vpop.f32.mrf.mxu0  ;;  %v1598_v21 = vpop.f32.mrf.mxu1  ;;  %v5045_v4 = vld [vmem:[%s5924_s20 + $0x78] sm:$0xff] }
 0x1d0   : > { %v1647_v26 = vadd.f32 %v1598_v21, %v6432_v57  ;;  %v1835_v34 = vpop.f32.mrf.mxu3  ;;  %v1654_v12 = vadd.f32 %v1545_v33, %v6486_v41 }
 0x1d2   : > { %5059 = vmatmul.msk.f32.gmra.mxu0 %vm627_vm0, %v6693_v30  ;;  %v6699_v9 = vadd.f32 %v1829_v60, %v1647_v26  ;;  %5071 = vmatmul.msk.f32.vlgmr.msra.gmra.mxu1 %vm627_vm0, %v5353_v32 }
 0x1d3   : > { %5104 = vmatmul.msk.f32.gmra.mxu2 %vm627_vm0, %v5088_v17  ;;  %v5354_v17 = vld [vmem:[%s5924_s20 + $0x38] sm:$0xff] }
 0x1d4   : > { %5122 = vmatmul.msk.f32.gmra.mxu3 %vm627_vm0, %v5090_v42 }
 0x1d6   : > { %v1767_v23 = vpop.f32.mrf.mxu2 }
 0x1d7   : > { %v6706_v36 = vadd.f32 %v1767_v23, %v1648_v15  ;;  %v1548_v57 = vpop.f32.mrf.mxu0  ;;  %v1601_v60 = vpop.f32.mrf.mxu1  ;;  %v5046_v15 = vld [vmem:[%s5924_s20 + $0x80] sm:$0xff] }
 0x1d8   : > { %v1649_v27 = vadd.f32 %v1601_v60, %v6447_v39  ;;  %v1656_v33 = vadd.f32 %v1548_v57, %v6501_v49 }
 0x1da   : > { %5060 = vmatmul.msk.f32.gmra.mxu0 %vm627_vm0, %v5044_v50  ;;  %v6712_v59 = vadd.f32 %v1832_v10, %v1649_v27  ;;  %5072 = vmatmul.msk.f32.gmra.mxu1 %vm627_vm0, %v5354_v17  ;;  %v1838_v10 = vpop.f32.mrf.mxu3 }
 0x1db   : > { %5105 = vmatmul.msk.f32.gmra.mxu2 %vm627_vm0, %v5089_v52  ;;  %v5092_v52 = vld [vmem:[%s5924_s20 + $0x69] sm:$0xff] }
 0x1dc   : > { %5123 = vmatmul.msk.f32.gmra.mxu3 %vm627_vm0, %v5091_v19 }
 0x1de   : > { %v1770_v3 = vpop.f32.mrf.mxu2 }
 0x1df   : > { %v6719_v48 = vadd.f32 %v1770_v3, %v1650_v28  ;;  %v1551_v38 = vpop.f32.mrf.mxu0  ;;  %v1604_v39 = vpop.f32.mrf.mxu1 }
 0x1e0   : > { %v1651_v7 = vadd.f32 %v1604_v39, %v6462_v13  ;;  %v1658_v49 = vadd.f32 %v1551_v38, %v6516_v61 }
 0x1e2   : > { %5061 = vmatmul.msk.f32.gmra.mxu0 %vm627_vm0, %v5045_v4  ;;  %v6725_v21 = vadd.f32 %v1835_v34, %v1651_v7  ;;  %5073 = vmatmul.msk.f32.gmra.mxu1 %vm627_vm0, %v6658_v40  ;;  %v1841_v40 = vpop.f32.mrf.mxu3 }
 0x1e3   : > { %5106 = vmatmul.msk.f32.gmra.mxu2 %vm627_vm0, %v5090_v42  ;;  %v5093_v42 = vld [vmem:[%s5924_s20 + $0x79] sm:$0xff] }
 0x1e4   : > { %5124 = vmatmul.msk.f32.gmra.mxu3 %vm627_vm0, %v5092_v52 }
 0x1e6   : > { %v1773_v22 = vpop.f32.mrf.mxu2 }
 0x1e7   : > { %v6732_v26 = vadd.f32 %v1773_v22, %v1652_v6  ;;  %v1554_v32 = vpop.f32.mrf.mxu0  ;;  %v1607_v13 = vpop.f32.mrf.mxu1 }
 0x1e8   : > { %v1653_v23 = vadd.f32 %v1607_v13, %v6477_v51  ;;  %v5047_v51 = vld [vmem:[%s5924_s20 + $0x90] sm:$0xff]  ;;  %v1660_v61 = vadd.f32 %v1554_v32, %v6531_v16 }
 0x1e9   : > { %v5097_v16 = vld [vmem:[%s5924_s20 + $0xa9] sm:$0xff] }
 0x1ea   : > { %5062 = vmatmul.msk.f32.gmra.mxu0 %vm627_vm0, %v5046_v15  ;;  %v6738_v34 = vadd.f32 %v1838_v10, %v1653_v23  ;;  %5074 = vmatmul.msk.f32.gmra.mxu1 %vm627_vm0, %v6678_v0  ;;  %v1844_v41 = vpop.f32.mrf.mxu3 }
 0x1eb   : > { %5107 = vmatmul.msk.f32.gmra.mxu2 %vm627_vm0, %v5091_v19  ;;  %v5094_v19 = vld [vmem:[%s5924_s20 + $0x81] sm:$0xff] }
 0x1ec   : > { %5125 = vmatmul.msk.f32.gmra.mxu3 %vm627_vm0, %v5093_v42 }
 0x1ee   : > { %v1776_v29 = vpop.f32.mrf.mxu2 }
 0x1ef   : > { %v6745_v60 = vadd.f32 %v1776_v29, %v1654_v12  ;;  %v6747_v27 = vpop.f32.mrf.mxu0  ;;  %v1610_v17 = vpop.f32.mrf.mxu1  ;;  %v5096_v29 = vld [vmem:[%s5924_s20 + $0x99] sm:$0xff] }
 0x1f0   : > { %v1655_v28 = vadd.f32 %v1610_v17, %v6492_v5  ;;  %v5048_v5 = vld [vmem:[%s5924_s20 + $0x98] sm:$0xff] }
 0x1f2   : > { %5063 = vmatmul.msk.f32.gmra.mxu0 %vm627_vm0, %v5047_v51  ;;  %v6753_v0 = vadd.f32 %v1841_v40, %v1655_v28  ;;  %5075 = vmatmul.msk.f32.gmra.mxu1 %vm627_vm0, %v6693_v30  ;;  %v1847_v22 = vpop.f32.mrf.mxu3  ;;  %v5050_v28 = vld [vmem:[%s5924_s20 + $0xb0] sm:$0xff] }
 0x1f3   : > { %5108 = vmatmul.msk.f32.gmra.mxu2 %vm627_vm0, %v5092_v52  ;;  %v5095_v52 = vld [vmem:[%s5924_s20 + $0x91] sm:$0xff] }
 0x1f4   : > { %5126 = vmatmul.msk.f32.gmra.mxu3 %vm627_vm0, %v5094_v19 }
 0x1f6   : > { %v1779_v3 = vpop.f32.mrf.mxu2 }
 0x1f7   : > { %v6760_v39 = vadd.f32 %v1779_v3, %v1656_v33  ;;  %v6762_v10 = vpop.f32.mrf.mxu0  ;;  %v1613_v7 = vpop.f32.mrf.mxu1  ;;  %v2391_v3 = vld [vmem:[#allocation2 + $0x110] sm:$0xff] }
 0x1f8   : > { %7577 = vst [vmem:[#allocation44_spill] sm:$0xff] %v6762_v10  ;;  %v1657_v6 = vadd.f32 %v1613_v7, %v6507_v56  ;;  %v5049_v56 = vld [vmem:[%s5924_s20 + $0xa8] sm:$0xff]  ;;  %2455 = vmatpush.msra.mxu0 %v2391_v3  ;;  %v7581_v7 = vld [vmem:[#allocation47_spill] sm:$0xff] }
 0x1fa   : > { %5064 = vmatmul.msk.f32.gmra.mxu0 %vm627_vm0, %v5048_v5  ;;  %v6768_v30 = vadd.f32 %v1844_v41, %v1657_v6  ;;  %5076 = vmatmul.msk.f32.gmra.mxu1 %vm627_vm0, %v5044_v50  ;;  %v1850_v41 = vpop.f32.mrf.mxu3  ;;  %v5098_v6 = vld [vmem:[%s5924_s20 + $0xb1] sm:$0xff] }
 0x1fb   : > { %5109 = vmatmul.msk.f32.gmra.mxu2 %vm627_vm0, %v5093_v42 }
 0x1fc   : > { %5127 = vmatmul.msk.f32.gmra.mxu3 %vm627_vm0, %v5095_v52 }
 0x1fe   : > { %v1782_v57 = vpop.f32.mrf.mxu2 }
 0x1ff   : > { %v6774_v13 = vadd.f32 %v1782_v57, %v1658_v49  ;;  %v6776_v23 = vpop.f32.mrf.mxu0  ;;  %v1616_v40 = vpop.f32.mrf.mxu1 }
 0x200   : > { %7578 = vst [vmem:[#allocation43_spill] sm:$0xff] %v6776_v23  ;;  %v1659_v12 = vadd.f32 %v1616_v40, %v6522_v18 }
 0x202   : > { %5065 = vmatmul.msk.f32.gmra.mxu0 %vm627_vm0, %v5049_v56  ;;  %v6782_v50 = vadd.f32 %v1847_v22, %v1659_v12  ;;  %5077 = vmatmul.msk.f32.gmra.mxu1 %vm627_vm0, %v5045_v4  ;;  %v7584_v22 = vld [vmem:[#allocation52_spill] sm:$0xff] }
 0x203   : > { %5110 = vmatmul.msk.f32.gmra.mxu2 %vm627_vm0, %v5094_v19 }
 0x204   : > { %5128 = vmatmul.msk.f32.gmra.mxu3 %vm627_vm0, %v5096_v29 }
 0x206   : > { %v1785_v38 = vpop.f32.mrf.mxu2 }
 0x207   : > { %v6788_v42 = vadd.f32 %v1785_v38, %v1660_v61  ;;  %v6790_v17 = vpop.f32.mrf.mxu0  ;;  %v1619_v18 = vpop.f32.mrf.mxu1 }
 0x208   : > { %7579 = vst [vmem:[#allocation49_spill] sm:$0xff] %v6790_v17  ;;  %v1661_v33 = vadd.f32 %v1619_v18, %v6537_v62  ;;  %v2389_v62 = vld [vmem:[#allocation2 + $0x100] sm:$0xff] }
 0x209   : > { %2456 = vmatpush.msra.mxu0 %v2389_v62 }
 0x20a   : > { %5066 = vmatmul.msk.f32.gmra.mxu0 %vm627_vm0, %v5050_v28  ;;  %v6796_v4 = vadd.f32 %v1850_v41, %v1661_v33  ;;  %5078 = vmatmul.msk.f32.gmra.mxu1 %vm627_vm0, %v5046_v15  ;;  %v2392_v15 = vld [vmem:[#allocation2 + $0x118] sm:$0xff]  ;;  %v2390_v41 = vld [vmem:[#allocation2 + $0x108] sm:$0xff] }
 0x20b   : > { %5111 = vmatmul.msk.f32.gmra.mxu2 %vm627_vm0, %v5095_v52  ;;  %2520 = vmatpush.msrb.mxu1 %v2392_v15  ;;  %v5053_v52 = vld [vmem:[%s5924_s20 + $0xd8] sm:$0xff] }
 0x20c   : > { %5129 = vmatmul.msk.f32.gmra.mxu3 %vm627_vm0, %v5097_v16  ;;  %v5136_v33 = vld [vmem:[%s5924_s20 + $0x3a] sm:$0xff]  ;;  %v5138_v15 = vld [vmem:[%s5924_s20 + $0x52] sm:$0xff] }
 0x20d   : > { %2521 = vmatpush.msrb.mxu1 %v2390_v41 }
 0x20f   : > { %v6801_v32 = vpop.f32.mrf.mxu0  ;;  %v6804_v19 = vpop.f32.mrf.mxu1 }
 0x210   : > { %7580 = vst [vmem:[#allocation42_spill] sm:$0xff] %v6801_v32 }
 0x212   : > { %5067 = vmatmul.msk.f32.gmra.mxu0 %vm627_vm0, %v7581_v7  ;;  %5079 = vmatmul.msk.f32.gmra.mxu1 %vm627_vm0, %v5047_v51 }
 0x213   : > { %5112 = vmatmul.msk.f32.gmra.mxu2 %vm627_vm0, %v5096_v29  ;;  %v5135_v29 = vld [vmem:[%s5924_s20 + $0x32] sm:$0xff] }
 0x214   : > { %5130 = vmatmul.msk.f32.gmra.mxu3 %vm627_vm0, %v5098_v6 }
 0x217   : > { %v6811_v49 = vpop.f32.mrf.mxu0  ;;  %v6814_v57 = vpop.f32.mrf.mxu1 }
 0x218   : > { %7582 = vst [vmem:[#allocation27_spill] sm:$0xff] %v6811_v49 }
 0x219   : > { %7583 = vst [vmem:[#allocation48_spill] sm:$0xff] %v6814_v57 }
 0x21a   : > { %5068 = vmatmul.msk.f32.gmra.mxu0 %vm627_vm0, %v7584_v22  ;;  %5080 = vmatmul.msk.f32.gmra.mxu1 %vm627_vm0, %v5048_v5  ;;  %v5054_v5 = vld [vmem:[%s5924_s20 + $0xe0] sm:$0xff] }
 0x21b   : > { %5113 = vmatmul.msk.f32.gmra.mxu2 %vm627_vm0, %v5097_v16 }
 0x21c   : > { %5131 = vmatmul.msk.f32.gmra.mxu3 %vm627_vm0, %v6581_v25 }
 0x21f   : > { %v6820_v51 = vpop.f32.mrf.mxu0  ;;  %v6825_v40 = vpop.f32.mrf.mxu1 }
 0x220   : > { %7585 = vst [vmem:[#allocation53_spill] sm:$0xff] %v6820_v51  ;;  %v5142_v51 = vld [vmem:[%s5924_s20 + $0x82] sm:$0xff] }
 0x221   : > { %7586 = vst [vmem:[#allocation46_spill] sm:$0xff] %v6825_v40 }
 0x222   : > { %5069 = vmatmul.msk.f32.gmra.mxu0 %vm627_vm0, %v5053_v52  ;;  %5081 = vmatmul.msk.f32.gmra.mxu1 %vm627_vm0, %v5049_v56  ;;  %v5101_v56 = vld [vmem:[%s5924_s20 + $0xd9] sm:$0xff] }
 0x223   : > { %5114 = vmatmul.msk.f32.gmra.mxu2 %vm627_vm0, %v5098_v6 }
 0x224   : > { %5132 = vmatmul.msk.f32.gmra.mxu3 %vm627_vm0, %v6601_v35 }
 0x227   : > { %v6830_v12 = vpop.f32.mrf.mxu0  ;;  %v6835_v61 = vpop.f32.mrf.mxu1 }
 0x228   : > { %7587 = vst [vmem:[#allocation28_spill] sm:$0xff] %v6830_v12 }
 0x229   : > { %7588 = vst [vmem:[#allocation29_spill] sm:$0xff] %v6835_v61 }
 0x22a   : > { %5070 = vmatmul.msk.f32.gmra.mxu0 %vm627_vm0, %v5054_v5  ;;  %5082 = vmatmul.msk.f32.gmra.mxu1 %vm627_vm0, %v5050_v28 }
 0x22b   : > { %5115 = vmatmul.msk.f32.gmra.mxu2 %vm627_vm0, %v6581_v25  ;;  %v5102_v25 = vld [vmem:[%s5924_s20 + $0xe1] sm:$0xff] }
 0x22c   : > { %5133 = vmatmul.msk.f32.gmra.mxu3 %vm627_vm0, %v5101_v56 }
 0x22f   : > { %v6842_v38 = vpop.f32.mrf.mxu0  ;;  %v6846_v18 = vpop.f32.mrf.mxu1 }
 0x230   : > { %7589 = vst [vmem:[#allocation51_spill] sm:$0xff] %v6846_v18 }
 0x232   : > { %5151 = vmatmul.msk.f32.vlgmr.msra.gmra.mxu0 %vm627_vm0, %v5135_v29  ;;  %5083 = vmatmul.msk.f32.gmra.mxu1 %vm627_vm0, %v7581_v7 }
 0x233   : > { %5116 = vmatmul.msk.f32.gmra.mxu2 %vm627_vm0, %v6601_v35  ;;  %v5137_v35 = vld [vmem:[%s5924_s20 + $0x4a] sm:$0xff] }
 0x234   : > { %5134 = vmatmul.msk.f32.gmra.mxu3 %vm627_vm0, %v5102_v25 }
 0x237   : > { %v6854_v28 = vpop.f32.mrf.mxu0  ;;  %v6858_v16 = vpop.f32.mrf.mxu1 }
 0x238   : > { %7590 = vst [vmem:[#allocation56_spill] sm:$0xff] %v6858_v16 }
 0x23a   : > { %5152 = vmatmul.msk.f32.gmra.mxu0 %vm627_vm0, %v5136_v33  ;;  %5084 = vmatmul.msk.f32.gmra.mxu1 %vm627_vm0, %v7584_v22 }
 0x23b   : > { %5117 = vmatmul.msk.f32.gmra.mxu2 %vm627_vm0, %v5101_v56  ;;  %v5139_v56 = vld [vmem:[%s5924_s20 + $0x62] sm:$0xff] }
 0x23f   : > { %v6864_v3 = vpop.f32.mrf.mxu0  ;;  %v6867_v62 = vpop.f32.mrf.mxu1 }
 0x240   : > { %7591 = vst [vmem:[#allocation50_spill] sm:$0xff] %v6867_v62 }
 0x242   : > { %5153 = vmatmul.msk.f32.gmra.mxu0 %vm627_vm0, %v5137_v35  ;;  %5085 = vmatmul.msk.f32.gmra.mxu1 %vm627_vm0, %v5053_v52 }
 0x243   : > { %5118 = vmatmul.msk.f32.gmra.mxu2 %vm627_vm0, %v5102_v25  ;;  %v5140_v25 = vld [vmem:[%s5924_s20 + $0x6a] sm:$0xff] }
 0x247   : > { %v6872_v7 = vpop.f32.mrf.mxu0  ;;  %v6875_v6 = vpop.f32.mrf.mxu1 }
 0x248   : > { %7592 = vst [vmem:[#allocation30_spill] sm:$0xff] %v6875_v6  ;;  %v6891_v6 = vpop.f32.mrf.mxu2 }
 0x24a   : > { %5154 = vmatmul.msk.f32.gmra.mxu0 %vm627_vm0, %v5138_v15  ;;  %5086 = vmatmul.msk.f32.gmra.mxu1 %vm627_vm0, %v5054_v5  ;;  %v6895_v5 = vpop.f32.mrf.mxu3 }
 0x24f   : > { %v6879_v22 = vpop.f32.mrf.mxu0  ;;  %v6882_v41 = vpop.f32.mrf.mxu1 }
 0x252   : > { %5155 = vmatmul.msk.f32.gmra.mxu0 %vm627_vm0, %v5139_v56  ;;  %5167 = vmatmul.msk.f32.vlgmr.msrb.gmra.mxu1 %vm627_vm0, %v5135_v29  ;;  %v6904_v29 = vpop.f32.mrf.mxu2  ;;  %v6909_v14 = vpop.f32.mrf.mxu3 }
 0x253   : > { %7593 = vst [vmem:[#allocation55_spill] sm:$0xff] %v6904_v29 }
 0x254   : > { %7594 = vst [vmem:[#allocation57_spill] sm:$0xff] %v6909_v14 }
 0x257   : > { %v6886_v52 = vpop.f32.mrf.mxu0  ;;  %v6889_v45 = vpop.f32.mrf.mxu1 }
 0x25a   : > { %5156 = vmatmul.msk.f32.gmra.mxu0 %vm627_vm0, %v5140_v25  ;;  %5168 = vmatmul.msk.f32.gmra.mxu1 %vm627_vm0, %v5136_v33  ;;  %v6915_v16 = vpop.f32.mrf.mxu2  ;;  %v6922_v1 = vpop.f32.mrf.mxu3 }
 0x25b   : > { %7595 = vst [vmem:[#allocation54_spill] sm:$0xff] %v6915_v16 }
 0x25c   : > { %7596 = vst [vmem:[#allocation47_spill] sm:$0xff] %v6922_v1  ;;  %v5146_v1 = vld [vmem:[%s5924_s20 + $0xb2] sm:$0xff] }
 0x25f   : > { %v6897_v12 = vpop.f32.mrf.mxu0  ;;  %v6900_v62 = vpop.f32.mrf.mxu1 }
 0x262   : > { %5157 = vmatmul.msk.f32.gmra.mxu0 %vm627_vm0, %v5141_v46  ;;  %5169 = vmatmul.msk.f32.gmra.mxu1 %vm627_vm0, %v5137_v35  ;;  %v5143_v35 = vld [vmem:[%s5924_s20 + $0x92] sm:$0xff]  ;;  %v6929_v32 = vpop.f32.mrf.mxu2  ;;  %v6935_v24 = vpop.f32.mrf.mxu3 }
 0x263   : > { %7598 = vst [vmem:[#allocation58_spill] sm:$0xff] %v6929_v32 }
 0x264   : > { %7599 = vst [vmem:[#allocation59_spill] sm:$0xff] %v6935_v24 }
 0x267   : > { %v6906_v47 = vpop.f32.mrf.mxu0  ;;  %v6911_v33 = vpop.f32.mrf.mxu1 }
 0x26a   : > { %5158 = vmatmul.msk.f32.gmra.mxu0 %vm627_vm0, %v5142_v51  ;;  %5170 = vmatmul.msk.f32.gmra.mxu1 %vm627_vm0, %v5138_v15  ;;  %v6946_v32 = vpop.f32.mrf.mxu3 }
 0x26b   : > { %7602 = vst [vmem:[#allocation62_spill] sm:$0xff] %v6946_v32 }
 0x26f   : > { %v6917_v20 = vpop.f32.mrf.mxu0  ;;  %v6920_v49 = vpop.f32.mrf.mxu1 }
 0x272   : > { %5159 = vmatmul.msk.f32.gmra.mxu0 %vm627_vm0, %v5143_v35  ;;  %5171 = vmatmul.msk.f32.gmra.mxu1 %vm627_vm0, %v5139_v56  ;;  %v6942_v56 = vpop.f32.mrf.mxu2 }
 0x273   : > { %7601 = vst [vmem:[#allocation61_spill] sm:$0xff] %v6942_v56  ;;  %v6959_v56 = vpop.f32.mrf.mxu3 }
 0x274   : > { %7606 = vst [vmem:[#allocation66_spill] sm:$0xff] %v6959_v56 }
 0x277   : > { %v6926_v18 = vpop.f32.mrf.mxu0  ;;  %v6931_v15 = vpop.f32.mrf.mxu1 }
 0x278   : > { %7597 = vst [vmem:[#allocation52_spill] sm:$0xff] %v6926_v18  ;;  %v2603_v18 = vld [vmem:[#allocation4] sm:$0x3] }
 0x279   : > { %v7013_v57 = vperm.slane %v2603_v18, 0 }
 0x27a   : > { %5160 = vmatmul.msk.f32.gmra.mxu0 %vm627_vm0, %v5144_v44  ;;  %5172 = vmatmul.msk.f32.gmra.mxu1 %vm627_vm0, %v5140_v25  ;;  %v6955_v25 = vpop.f32.mrf.mxu2 }
 0x27b   : > { %7604 = vst [vmem:[#allocation64_spill] sm:$0xff] %v6955_v25  ;;  %v5149_v25 = vld [vmem:[%s5924_s20 + $0xda] sm:$0xff] }
 0x27f   : > { %v6937_v61 = vpop.f32.mrf.mxu0  ;;  %v6940_v17 = vpop.f32.mrf.mxu1 }
 0x280   : > { %7600 = vst [vmem:[#allocation60_spill] sm:$0xff] %v6937_v61 }
 0x282   : > { %5161 = vmatmul.msk.f32.gmra.mxu0 %vm627_vm0, %v5145_v31  ;;  %5173 = vmatmul.msk.f32.gmra.mxu1 %vm627_vm0, %v5141_v46  ;;  %v6966_v46 = vpop.f32.mrf.mxu2 }
 0x283   : > { %7608 = vst [vmem:[#allocation68_spill] sm:$0xff] %v6966_v46 }
 0x287   : > { %v6948_v2 = vpop.f32.mrf.mxu0  ;;  %v6951_v16 = vpop.f32.mrf.mxu1 }
 0x288   : > { %7603 = vst [vmem:[#allocation63_spill] sm:$0xff] %v6948_v2 }
 0x28a   : > { %5162 = vmatmul.msk.f32.gmra.mxu0 %vm627_vm0, %v5146_v1  ;;  %5174 = vmatmul.msk.f32.gmra.mxu1 %vm627_vm0, %v5142_v51  ;;  %v6972_v51 = vpop.f32.mrf.mxu3 }
 0x28b   : > { %7611 = vst [vmem:[#allocation71_spill] sm:$0xff] %v6972_v51  ;;  %v5150_v51 = vld [vmem:[%s5924_s20 + $0xe2] sm:$0xff] }
 0x28f   : > { %v6957_v24 = vpop.f32.mrf.mxu0  ;;  %v6961_v61 = vpop.f32.mrf.mxu1 }
 0x290   : > { %7605 = vst [vmem:[#allocation65_spill] sm:$0xff] %v6957_v24  ;;  %v6980_v24 = vpop.f32.mrf.mxu2 }
 0x291   : > { %7607 = vst [vmem:[#allocation67_spill] sm:$0xff] %v6961_v61 }
 0x292   : > { %5163 = vmatmul.msk.f32.gmra.mxu0 %vm627_vm0, %v6615_v11  ;;  %5175 = vmatmul.msk.f32.gmra.mxu1 %vm627_vm0, %v5143_v35  ;;  %7613 = vst [vmem:[#allocation73_spill] sm:$0xff] %v6980_v24  ;;  %v6986_v35 = vpop.f32.mrf.mxu3 }
 0x293   : > { %7615 = vst [vmem:[#allocation75_spill] sm:$0xff] %v6986_v35 }
 0x297   : > { %v6968_v32 = vpop.f32.mrf.mxu0  ;;  %v6970_v2 = vpop.f32.mrf.mxu1 }
 0x298   : > { %7609 = vst [vmem:[#allocation69_spill] sm:$0xff] %v6968_v32  ;;  %v2227_v53 = vpop.f32.mrf.mxu2 }
 0x299   : > { %7610 = vst [vmem:[#allocation70_spill] sm:$0xff] %v6970_v2 }
 0x29a   : > { %5164 = vmatmul.msk.f32.gmra.mxu0 %vm627_vm0, %v6633_v37  ;;  %5176 = vmatmul.msk.f32.gmra.mxu1 %vm627_vm0, %v5144_v44  ;;  %v2292_v44 = vpop.f32.mrf.mxu3 }
 0x29f   : > { %v6977_v56 = vpop.f32.mrf.mxu0  ;;  %v6982_v40 = vpop.f32.mrf.mxu1 }
 0x2a0   : > { %7612 = vst [vmem:[#allocation72_spill] sm:$0xff] %v6977_v56 }
 0x2a1   : > { %7614 = vst [vmem:[#allocation74_spill] sm:$0xff] %v6982_v40 }
 0x2a2   : > { %5165 = vmatmul.msk.f32.gmra.mxu0 %vm627_vm0, %v5149_v25  ;;  %5177 = vmatmul.msk.f32.gmra.mxu1 %vm627_vm0, %v5145_v31  ;;  %v2230_v31 = vpop.f32.mrf.mxu2  ;;  %v2295_v35 = vpop.f32.mrf.mxu3 }
 0x2a7   : > { %v6988_v46 = vpop.f32.mrf.mxu0  ;;  %v6991_v32 = vpop.f32.mrf.mxu1 }
 0x2a8   : > { %7616 = vst [vmem:[#allocation76_spill] sm:$0xff] %v6988_v46 }
 0x2a9   : > { %7617 = vst [vmem:[#allocation77_spill] sm:$0xff] %v6991_v32 }
 0x2aa   : > { %5166 = vmatmul.msk.f32.gmra.mxu0 %vm627_vm0, %v5150_v51  ;;  %5178 = vmatmul.msk.f32.gmra.mxu1 %vm627_vm0, %v5146_v1  ;;  %v2233_v46 = vpop.f32.mrf.mxu2  ;;  %v2298_v1 = vpop.f32.mrf.mxu3 }
 0x2af   : > { %v2458_v24 = vpop.f32.mrf.mxu0  ;;  %v6995_v56 = vpop.f32.mrf.mxu1 }
 0x2b0   : > { %7618 = vst [vmem:[#allocation78_spill] sm:$0xff] %v6995_v56 }
 0x2b2   : > { %5179 = vmatmul.msk.f32.gmra.mxu1 %vm627_vm0, %v6615_v11  ;;  %v2236_v2 = vpop.f32.mrf.mxu2  ;;  %v2109_v11 = vadd.f32 %v6842_v38, %v6690_v54 }
 0x2b4   : > { %v2340_v29 = vadd.f32 %v2227_v53, %v2109_v11 }
 0x2b7   : > { %v2461_v40 = vpop.f32.mrf.mxu0  ;;  %v6999_v23 = vpop.f32.mrf.mxu1 }
 0x2b8   : > { %7619 = vst [vmem:[#allocation79_spill] sm:$0xff] %v6999_v23  ;;  %v2110_v23 = vadd.f32 %v6882_v41, %v6699_v9  ;;  %v2112_v9 = vadd.f32 %v6889_v45, %v6712_v59  ;;  %v2114_v45 = vadd.f32 %v6900_v62, %v6725_v21  ;;  %v2116_v21 = vadd.f32 %v6911_v33, %v6738_v34 }
 0x2b9   : > { %v2118_v34 = vadd.f32 %v6920_v49, %v6753_v0  ;;  %v2120_v0 = vadd.f32 %v6931_v15, %v6768_v30  ;;  %v2122_v30 = vadd.f32 %v6940_v17, %v6782_v50  ;;  %v2124_v50 = vadd.f32 %v6951_v16, %v6796_v4 }
 0x2ba   : > { %5180 = vmatmul.msk.f32.gmra.mxu1 %vm627_vm0, %v6633_v37  ;;  %v2301_v37 = vpop.f32.mrf.mxu3  ;;  %v2341_v8 = vadd.f32 %v2292_v44, %v2110_v23  ;;  %v2239_v53 = vpop.f32.mrf.mxu2  ;;  %v2343_v44 = vadd.f32 %v2295_v35, %v2112_v9 }
 0x2bf   : > { %v7003_v32 = vpop.f32.mrf.mxu1  ;;  %v2464_v58 = vpop.f32.mrf.mxu0 }
 0x2c0   : > { %7620 = vst [vmem:[#allocation80_spill] sm:$0xff] %v7003_v32  ;;  %v2571_v32 = vadd.f32 %v2458_v24, %v2340_v29 }
 0x2c2   : > { %5181 = vmatmul.msk.f32.gmra.mxu1 %vm627_vm0, %v5149_v25  ;;  %v7015_v25 = vperm.slane %v2603_v18, 1  ;;  %v2609_v54 = vadd.f32 %v7013_v57, %v2571_v32  ;;  %v2304_v18 = vpop.f32.mrf.mxu3 }
 0x2c4   : > { %v2641_v29 = vmax.f32 %v2609_v54, 0.0  ;;  %v2345_v54 = vadd.f32 %v2298_v1, %v2114_v45  ;;  %v2349_v45 = vadd.f32 %v2304_v18, %v2118_v34 }
 0x2c7   : > { %v7006_v56 = vpop.f32.mrf.mxu1  ;;  %v2467_v14 = vpop.f32.mrf.mxu0 }
 0x2c8   : > { %7621 = vst [vmem:[#allocation81_spill] sm:$0xff] %v7006_v56  ;;  %v2111_v56 = vadd.f32 %v6854_v28, %v6706_v36  ;;  %v2113_v36 = vadd.f32 %v6864_v3, %v6719_v48  ;;  %v2242_v28 = vpop.f32.mrf.mxu2  ;;  %v2115_v48 = vadd.f32 %v6872_v7, %v6732_v26  ;;  %v2117_v26 = vadd.f32 %v6879_v22, %v6745_v60 }
 0x2c9   : > { %v2119_v60 = vadd.f32 %v6886_v52, %v6760_v39  ;;  %v2121_v39 = vadd.f32 %v6897_v12, %v6774_v13  ;;  %v2123_v13 = vadd.f32 %v6906_v47, %v6788_v42 }
 0x2ca   : > { %5182 = vmatmul.msk.f32.gmra.mxu1 %vm627_vm0, %v5150_v51  ;;  %v2342_v11 = vadd.f32 %v2230_v31, %v2111_v56  ;;  %v2344_v32 = vadd.f32 %v2233_v46, %v2113_v36  ;;  %v2346_v46 = vadd.f32 %v2236_v2, %v2115_v48 }
 0x2cc   : > { %v2573_v51 = vadd.f32 %v2461_v40, %v2342_v11  ;;  %v2575_v56 = vadd.f32 %v2464_v58, %v2344_v32  ;;  %v2307_v11 = vpop.f32.mrf.mxu3 }
 0x2cf   : > { %v2523_v10 = vpop.f32.mrf.mxu1  ;;  %v2470_v24 = vpop.f32.mrf.mxu0 }
 0x2d0   : > { %v2572_v38 = vadd.f32 %v2523_v10, %v2341_v8  ;;  %v2611_v8 = vadd.f32 %v7013_v57, %v2573_v51  ;;  %v2245_v1 = vpop.f32.mrf.mxu2  ;;  %v2347_v51 = vadd.f32 %v2301_v37, %v2116_v21 }
 0x2d2   : > { %v2610_v41 = vadd.f32 %v7015_v25, %v2572_v38  ;;  %v2643_v40 = vmax.f32 %v2611_v8, 0.0 }
 0x2d4   : > { %v2642_v23 = vmax.f32 %v2610_v41, 0.0  ;;  %v2577_v41 = vadd.f32 %v2467_v14, %v2346_v46  ;;  %v2310_v8 = vpop.f32.mrf.mxu3 }
 0x2d6   : > { %v7023_v63 = vmax.f32 %v2641_v29, %v2642_v23  ;;  %v2615_v7 = vadd.f32 %v7013_v57, %v2577_v41 }
 0x2d7   : > { %v2526_v61 = vpop.f32.mrf.mxu1  ;;  %v2473_v35 = vpop.f32.mrf.mxu0 }
 0x2d8   : > { %v2574_v10 = vadd.f32 %v2526_v61, %v2343_v44  ;;  %v2613_v61 = vadd.f32 %v7013_v57, %v2575_v56  ;;  %v2647_v33 = vmax.f32 %v2615_v7, 0.0 }
 0x2da   : > { %v2612_v59 = vadd.f32 %v7015_v25, %v2574_v10  ;;  %v2645_v58 = vmax.f32 %v2613_v61, 0.0  ;;  %v2348_v10 = vadd.f32 %v2239_v53, %v2117_v26  ;;  %v2351_v61 = vadd.f32 %v2307_v11, %v2120_v0 }
 0x2dc   : > { %v2644_v31 = vmax.f32 %v2612_v59, 0.0  ;;  %v2579_v32 = vadd.f32 %v2470_v24, %v2348_v10  ;;  %v2313_v24 = vpop.f32.mrf.mxu3 }
 0x2de   : > { %v7031_v38 = vmax.f32 %v2643_v40, %v2644_v31  ;;  %v2248_v40 = vpop.f32.mrf.mxu2  ;;  %v2617_v22 = vadd.f32 %v7013_v57, %v2579_v32 }
 0x2df   : > { %v2529_v9 = vpop.f32.mrf.mxu1  ;;  %v2476_v44 = vpop.f32.mrf.mxu0  ;;  %v2354_v7 = vadd.f32 %v2248_v40, %v2123_v13  ;;  %v7633_v13 = vld [vmem:[#allocation37_spill] sm:$0xff] }
 0x2e0   : > { %v2576_v3 = vadd.f32 %v2529_v9, %v2345_v54  ;;  %v2350_v54 = vadd.f32 %v2242_v28, %v2119_v60  ;;  %v2649_v9 = vmax.f32 %v2617_v22, 0.0  ;;  %v7623_v60 = vld [vmem:[#allocation33_spill] sm:$0xff]  ;;  %v7624_v22 = vld [vmem:[#allocation44_spill] sm:$0xff] }
 0x2e2   : > { %v2614_v62 = vadd.f32 %v7015_v25, %v2576_v3  ;;  %v2581_v18 = vadd.f32 %v2473_v35, %v2350_v54 }
 0x2e4   : > { %v2646_v29 = vmax.f32 %v2614_v62, 0.0  ;;  %v2619_v52 = vadd.f32 %v7013_v57, %v2581_v18  ;;  %v2352_v62 = vadd.f32 %v2245_v1, %v2121_v39  ;;  %v7628_v39 = vld [vmem:[#allocation57_spill] sm:$0xff] }
 0x2e6   : > { %v7039_v23 = vmax.f32 %v2645_v58, %v2646_v29  ;;  %v2251_v28 = vpop.f32.mrf.mxu2  ;;  %v2651_v35 = vmax.f32 %v2619_v52, 0.0  ;;  %v2583_v41 = vadd.f32 %v2476_v44, %v2352_v62  ;;  %v2316_v29 = vpop.f32.mrf.mxu3  ;;  %v1662_v44 = vadd.f32 %v6747_v27, %v6546_v55 }
 0x2e7   : > { %v2532_v36 = vpop.f32.mrf.mxu1  ;;  %v2479_v53 = vpop.f32.mrf.mxu0 }
 0x2e8   : > { %v2578_v2 = vadd.f32 %v2532_v36, %v2347_v51  ;;  %v2353_v51 = vadd.f32 %v2310_v8, %v2122_v30  ;;  %v2621_v12 = vadd.f32 %v7013_v57, %v2583_v41  ;;  %v1663_v8 = vadd.f32 %v6804_v19, %v6552_v43  ;;  %v7622_v43 = vld [vmem:[#allocation67_spill] sm:$0xff]  ;;  %v7630_v41 = vld [vmem:[#allocation70_spill] sm:$0xff] }
 0x2e9   : > { %v2585_v34 = vadd.f32 %v2479_v53, %v2354_v7  ;;  %v1893_v42 = vadd.f32 %v6891_v6, %v1662_v44  ;;  %v1664_v6 = vadd.f32 %v7624_v22, %v7623_v60  ;;  %v7626_v53 = vld [vmem:[#allocation48_spill] sm:$0xff]  ;;  %v7635_v44 = vld [vmem:[#allocation54_spill] sm:$0xff]  ;;  %v7640_v60 = vld [vmem:[#allocation49_spill] sm:$0xff] }
 0x2ea   : > { %v2616_v14 = vadd.f32 %v7015_v25, %v2578_v2  ;;  %v2653_v10 = vmax.f32 %v2621_v12, 0.0  ;;  %v1894_v16 = vadd.f32 %v6895_v5, %v1663_v8  ;;  %v7634_v12 = vld [vmem:[#allocation46_spill] sm:$0xff] }
 0x2eb   : > { %v2623_v55 = vadd.f32 %v7013_v57, %v2585_v34 }
 0x2ec   : > { %v2648_v37 = vmax.f32 %v2616_v14, 0.0  ;;  %v2126_v19 = vadd.f32 %v7622_v43, %v1894_v16  ;;  %v7638_v43 = vld [vmem:[#allocation74_spill] sm:$0xff] }
 0x2ed   : > { %v2655_v0 = vmax.f32 %v2623_v55, 0.0 }
 0x2ee   : > { %v7047_v59 = vmax.f32 %v2647_v33, %v2648_v37  ;;  %v2254_v2 = vpop.f32.mrf.mxu2  ;;  %v2355_v33 = vadd.f32 %v2313_v24, %v2124_v50  ;;  %v2319_v37 = vpop.f32.mrf.mxu3  ;;  %v2357_v18 = vadd.f32 %v2316_v29, %v2126_v19 }
 0x2ef   : > { %v2535_v56 = vpop.f32.mrf.mxu1  ;;  %v2482_v58 = vpop.f32.mrf.mxu0 }
 0x2f0   : > { %v2580_v31 = vadd.f32 %v2535_v56, %v2349_v45  ;;  %v2125_v45 = vadd.f32 %v6917_v20, %v1893_v42  ;;  %v7636_v42 = vld [vmem:[#allocation47_spill] sm:$0xff] }
 0x2f2   : > { %v2618_v49 = vadd.f32 %v7015_v25, %v2580_v31  ;;  %v2356_v40 = vadd.f32 %v2251_v28, %v2125_v45  ;;  %v7625_v31 = vld [vmem:[#allocation25_spill] sm:$0xff] }
 0x2f3   : > { %v1665_v54 = vadd.f32 %v7626_v53, %v7625_v31  ;;  %v7642_v31 = vld [vmem:[#allocation29_spill] sm:$0xff] }
 0x2f4   : > { %v2650_v48 = vmax.f32 %v2618_v49, 0.0  ;;  %v2587_v49 = vadd.f32 %v2482_v58, %v2356_v40 }
 0x2f5   : > { %v1896_v52 = vadd.f32 %v7628_v39, %v1665_v54 }
 0x2f6   : > { %v7055_v3 = vmax.f32 %v2649_v9, %v2650_v48  ;;  %v2257_v5 = vpop.f32.mrf.mxu2  ;;  %v7627_v9 = vld [vmem:[#allocation55_spill] sm:$0xff]  ;;  %v2625_v62 = vadd.f32 %v7013_v57, %v2587_v49 }
 0x2f7   : > { %v2538_v46 = vpop.f32.mrf.mxu1  ;;  %v2485_v47 = vpop.f32.mrf.mxu0  ;;  %v1895_v20 = vadd.f32 %v7627_v9, %v1664_v6  ;;  %v2128_v58 = vadd.f32 %v7630_v41, %v1896_v52  ;;  %v7641_v6 = vld [vmem:[#allocation36_spill] sm:$0xff]  ;;  %v7645_v52 = vld [vmem:[#allocation63_spill] sm:$0xff]  ;;  %v7646_v41 = vld [vmem:[#allocation77_spill] sm:$0xff] }
 0x2f8   : > { %v2582_v21 = vadd.f32 %v2538_v46, %v2351_v61  ;;  %v2657_v7 = vmax.f32 %v2625_v62, 0.0  ;;  %v1669_v53 = vadd.f32 %v7642_v31, %v7641_v6  ;;  %v7658_v6 = vld [vmem:[#allocation56_spill] sm:$0xff] }
 0x2fa   : > { %v2620_v15 = vadd.f32 %v7015_v25, %v2582_v21  ;;  %v7629_v21 = vld [vmem:[#allocation52_spill] sm:$0xff] }
 0x2fb   : > { %v2127_v28 = vadd.f32 %v7629_v21, %v1895_v20 }
 0x2fc   : > { %v2652_v11 = vmax.f32 %v2620_v15, 0.0  ;;  %v2322_v15 = vpop.f32.mrf.mxu3 }
 0x2fe   : > { %v7063_v36 = vmax.f32 %v2651_v35, %v2652_v11  ;;  %v2358_v35 = vadd.f32 %v2254_v2, %v2127_v28 }
 0x2ff   : > { %v2541_v26 = vpop.f32.mrf.mxu1  ;;  %v2488_v61 = vpop.f32.mrf.mxu0 }
 0x300   : > { %v2584_v1 = vadd.f32 %v2541_v26, %v2353_v51  ;;  %v7631_v51 = vld [vmem:[#allocation32_spill] sm:$0xff]  ;;  %v7632_v26 = vld [vmem:[#allocation43_spill] sm:$0xff]  ;;  %v2589_v50 = vadd.f32 %v2485_v47, %v2358_v35 }
 0x301   : > { %v1666_v29 = vadd.f32 %v7632_v26, %v7631_v51  ;;  %v7648_v51 = vld [vmem:[#allocation42_spill] sm:$0xff] }
 0x302   : > { %v2622_v17 = vadd.f32 %v7015_v25, %v2584_v1  ;;  %v1667_v1 = vadd.f32 %v7634_v12, %v7633_v13  ;;  %v2627_v45 = vadd.f32 %v7013_v57, %v2589_v50  ;;  %v7650_v13 = vld [vmem:[#allocation51_spill] sm:$0xff] }
 0x303   : > { %v1897_v8 = vadd.f32 %v7635_v44, %v1666_v29  ;;  %v7649_v29 = vld [vmem:[#allocation35_spill] sm:$0xff]  ;;  %v7651_v44 = vld [vmem:[#allocation61_spill] sm:$0xff] }
 0x304   : > { %v2654_v14 = vmax.f32 %v2622_v17, 0.0  ;;  %v2325_v22 = vpop.f32.mrf.mxu3  ;;  %v2659_v54 = vmax.f32 %v2627_v45, 0.0  ;;  %v1671_v12 = vadd.f32 %v7650_v13, %v7649_v29  ;;  %v7665_v29 = vld [vmem:[#allocation39_spill] sm:$0xff]  ;;  %v7666_v13 = vld [vmem:[#allocation50_spill] sm:$0xff] }
 0x306   : > { %v7076_v32 = vmax.f32 %v2653_v10, %v2654_v14  ;;  %v2359_v10 = vadd.f32 %v2319_v37, %v2128_v58  ;;  %v2260_v14 = vpop.f32.mrf.mxu2 }
 0x307   : > { %v2544_v4 = vpop.f32.mrf.mxu1 }
 0x308   : > { %v2586_v27 = vadd.f32 %v2544_v4, %v2355_v33  ;;  %v1898_v33 = vadd.f32 %v7636_v42, %v1667_v1  ;;  %v7637_v4 = vld [vmem:[#allocation60_spill] sm:$0xff]  ;;  %v7652_v42 = vld [vmem:[#allocation62_spill] sm:$0xff] }
 0x309   : > { %v2129_v16 = vadd.f32 %v7637_v4, %v1897_v8  ;;  %v7653_v4 = vld [vmem:[#allocation65_spill] sm:$0xff] }
 0x30a   : > { %v2624_v56 = vadd.f32 %v7015_v25, %v2586_v27  ;;  %v2491_v27 = vpop.f32.mrf.mxu0  ;;  %v2130_v19 = vadd.f32 %v7638_v43, %v1898_v33  ;;  %v1902_v33 = vadd.f32 %v7652_v42, %v1671_v12  ;;  %v7654_v43 = vld [vmem:[#allocation78_spill] sm:$0xff]  ;;  %v1675_v12 = vadd.f32 %v7666_v13, %v7665_v29 }
 0x30b   : > { %v2360_v40 = vadd.f32 %v2257_v5, %v2129_v16 }
 0x30c   : > { %v2656_v24 = vmax.f32 %v2624_v56, 0.0  ;;  %v7639_v56 = vld [vmem:[#allocation31_spill] sm:$0xff]  ;;  %v2361_v20 = vadd.f32 %v2322_v15, %v2130_v19  ;;  %v2134_v19 = vadd.f32 %v7654_v43, %v1902_v33 }
 0x30d   : > { %v1668_v37 = vadd.f32 %v7640_v60, %v7639_v56  ;;  %v7656_v56 = vld [vmem:[#allocation27_spill] sm:$0xff] }
 0x30e   : > { %v7088_v48 = vmax.f32 %v2655_v0, %v2656_v24  ;;  %v2591_v0 = vadd.f32 %v2488_v61, %v2360_v40  ;;  %v7643_v24 = vld [vmem:[#allocation58_spill] sm:$0xff] }
 0x30f   : > { %v2547_v46 = vpop.f32.mrf.mxu1  ;;  %v1899_v9 = vadd.f32 %v7643_v24, %v1668_v37  ;;  %v7659_v24 = vld [vmem:[#allocation64_spill] sm:$0xff] }
 0x310   : > { %v2588_v30 = vadd.f32 %v2547_v46, %v2357_v18  ;;  %v7644_v46 = vld [vmem:[#allocation59_spill] sm:$0xff]  ;;  %v2629_v28 = vadd.f32 %v7013_v57, %v2591_v0 }
 0x311   : > { %v1900_v39 = vadd.f32 %v7644_v46, %v1669_v53  ;;  %v2131_v21 = vadd.f32 %v7645_v52, %v1899_v9  ;;  %v7660_v52 = vld [vmem:[#allocation66_spill] sm:$0xff] }
 0x312   : > { %v2626_v11 = vadd.f32 %v7015_v25, %v2588_v30  ;;  %v2263_v30 = vpop.f32.mrf.mxu2  ;;  %v2494_v15 = vpop.f32.mrf.mxu0  ;;  %v2661_v1 = vmax.f32 %v2629_v28, 0.0  ;;  %v7661_v28 = vld [vmem:[#allocation69_spill] sm:$0xff] }
 0x313   : > { %v2362_v35 = vadd.f32 %v2260_v14, %v2131_v21  ;;  %v2132_v58 = vadd.f32 %v7646_v41, %v1900_v39 }
 0x314   : > { %v2658_v17 = vmax.f32 %v2626_v11, 0.0  ;;  %v7647_v11 = vld [vmem:[#allocation26_spill] sm:$0xff] }
 0x315   : > { %v1670_v26 = vadd.f32 %v7648_v51, %v7647_v11  ;;  %v7663_v51 = vld [vmem:[#allocation40_spill] sm:$0xff] }
 0x316   : > { %v7100_v34 = vmax.f32 %v2657_v7, %v2658_v17  ;;  %v2593_v7 = vadd.f32 %v2491_v27, %v2362_v35  ;;  %v2328_v17 = vpop.f32.mrf.mxu3 }
 0x317   : > { %v2550_v2 = vpop.f32.mrf.mxu1  ;;  %v1901_v8 = vadd.f32 %v7651_v44, %v1670_v26  ;;  %v7664_v26 = vld [vmem:[#allocation53_spill] sm:$0xff]  ;;  %v7667_v44 = vld [vmem:[#allocation68_spill] sm:$0xff] }
 0x318   : > { %v2590_v55 = vadd.f32 %v2550_v2, %v2359_v10  ;;  %v2363_v10 = vadd.f32 %v2325_v22, %v2132_v58  ;;  %v2631_v45 = vadd.f32 %v7013_v57, %v2593_v7  ;;  %v7657_v22 = vld [vmem:[#allocation34_spill] sm:$0xff]  ;;  %v7662_v58 = vld [vmem:[#allocation79_spill] sm:$0xff] }
 0x319   : > { %v2133_v16 = vadd.f32 %v7653_v4, %v1901_v8  ;;  %v1673_v31 = vadd.f32 %v7658_v6, %v7657_v22  ;;  %v7668_v4 = vld [vmem:[#allocation71_spill] sm:$0xff]  ;;  %v7672_v22 = vld [vmem:[#allocation28_spill] sm:$0xff] }
 0x31a   : > { %v2628_v47 = vadd.f32 %v7015_v25, %v2590_v55  ;;  %v2266_v37 = vpop.f32.mrf.mxu2  ;;  %v2663_v53 = vmax.f32 %v2631_v45, 0.0  ;;  %v7669_v45 = vld [vmem:[#allocation72_spill] sm:$0xff] }
 0x31b   : > { %v2364_v40 = vadd.f32 %v2263_v30, %v2133_v16  ;;  %v1904_v21 = vadd.f32 %v7660_v52, %v1673_v31  ;;  %v1906_v16 = vadd.f32 %v7668_v4, %v1675_v12  ;;  %v7673_v31 = vld [vmem:[#allocation38_spill] sm:$0xff] }
 0x31c   : > { %v2660_v49 = vmax.f32 %v2628_v47, 0.0  ;;  %v7655_v47 = vld [vmem:[#allocation41_spill] sm:$0xff] }
 0x31d   : > { %v1672_v60 = vadd.f32 %v7656_v56, %v7655_v47  ;;  %v7670_v47 = vld [vmem:[#allocation80_spill] sm:$0xff] }
 0x31e   : > { %v7112_v18 = vmax.f32 %v2659_v54, %v2660_v49  ;;  %v2595_v54 = vadd.f32 %v2494_v15, %v2364_v40  ;;  %v2497_v49 = vpop.f32.mrf.mxu0  ;;  %v2331_v46 = vpop.f32.mrf.mxu3  ;;  %v1674_v15 = vadd.f32 %v7664_v26, %v7663_v51  ;;  %v2138_v56 = vadd.f32 %v7670_v47, %v1906_v16  ;;  %v7678_v51 = vld [vmem:[#allocation81_spill] sm:$0xff]  ;;  %v2905_v47 = vld [vmem:[#allocation9 + $0xb8] sm:$0xff] }
 0x31f   : > { %v2553_v5 = vpop.f32.mrf.mxu1  ;;  %v1903_v9 = vadd.f32 %v7659_v24, %v1672_v60  ;;  %v2690_v16 = vld [vmem:[#allocation6 + $0x8] sm:$0xff] }
 0x320   : > { %v2592_v62 = vadd.f32 %v2553_v5, %v2361_v20  ;;  %v2365_v20 = vadd.f32 %v2328_v17, %v2134_v19  ;;  %v2633_v30 = vadd.f32 %v7013_v57, %v2595_v54  ;;  %v1905_v8 = vadd.f32 %v7667_v44, %v1674_v15 }
 0x322   : > { %v2630_v61 = vadd.f32 %v7015_v25, %v2592_v62  ;;  %v2135_v62 = vadd.f32 %v7661_v28, %v1903_v9  ;;  %v2269_v17 = vpop.f32.mrf.mxu2  ;;  %v7675_v9 = vld [vmem:[#allocation73_spill] sm:$0xff]  ;;  %v7676_v28 = vld [vmem:[#allocation75_spill] sm:$0xff] }
 0x324   : > { %v2662_v50 = vmax.f32 %v2630_v61, 0.0  ;;  %v2366_v41 = vadd.f32 %v2266_v37, %v2135_v62  ;;  %v2136_v61 = vadd.f32 %v7662_v58, %v1904_v21  ;;  %v7671_v37 = vld [vmem:[#allocation45_spill] sm:$0xff] }
 0x325   : > { %v1676_v6 = vadd.f32 %v7672_v22, %v7671_v37  ;;  %v2901_v22 = vld [vmem:[#allocation9 + $0x98] sm:$0xff] }
 0x326   : > { %v7124_v2 = vmax.f32 %v2661_v1, %v2662_v50  ;;  %v2665_v1 = vmax.f32 %v2633_v30, 0.0  ;;  %v2597_v7 = vadd.f32 %v2497_v49, %v2366_v41  ;;  %v2500_v42 = vpop.f32.mrf.mxu0  ;;  %v2334_v19 = vpop.f32.mrf.mxu3  ;;  %v7677_v30 = vld [vmem:[#allocation76_spill] sm:$0xff] }
 0x327   : > { %v2556_v14 = vpop.f32.mrf.mxu1 }
 0x328   : > { %v2594_v55 = vadd.f32 %v2556_v14, %v2363_v10  ;;  %v2367_v10 = vadd.f32 %v2331_v46, %v2136_v61  ;;  %v2635_v40 = vadd.f32 %v7013_v57, %v2597_v7  ;;  %v2369_v46 = vadd.f32 %v2334_v19, %v2138_v56 }
 0x32a   : > { %v2632_v27 = vadd.f32 %v7015_v25, %v2594_v55  ;;  %v2137_v55 = vadd.f32 %v7669_v45, %v1905_v8  ;;  %v2272_v52 = vpop.f32.mrf.mxu2  ;;  %v2724_v45 = vld [vmem:[#allocation6 + $0x28] sm:$0xff] }
 0x32c   : > { %v2664_v0 = vmax.f32 %v2632_v27, 0.0  ;;  %v2368_v27 = vadd.f32 %v2269_v17, %v2137_v55  ;;  %v2691_v55 = vld [vmem:[#allocation6 + $0x10] sm:$0xff] }
 0x32e   : > { %v7136_v5 = vmax.f32 %v2663_v53, %v2664_v0  ;;  %v7674_v53 = vld [vmem:[#allocation30_spill] sm:$0xff]  ;;  %v2667_v0 = vmax.f32 %v2635_v40, 0.0  ;;  %v2599_v49 = vadd.f32 %v2500_v42, %v2368_v27  ;;  %v2503_v61 = vpop.f32.mrf.mxu0  ;;  %v2337_v29 = vpop.f32.mrf.mxu3 }
 0x32f   : > { %v2559_v39 = vpop.f32.mrf.mxu1  ;;  %v1677_v54 = vadd.f32 %v7674_v53, %v7673_v31  ;;  %v2725_v40 = vld [vmem:[#allocation6 + $0x30] sm:$0xff]  ;;  %v2907_v27 = vld [vmem:[#allocation9 + $0xc8] sm:$0xff]  ;;  %v2897_v31 = vld [vmem:[#allocation9 + $0x78] sm:$0xff] }
 0x330   : > { %v2596_v35 = vadd.f32 %v2559_v39, %v2365_v20  ;;  %v1907_v20 = vadd.f32 %v7675_v9, %v1676_v6  ;;  %v2637_v41 = vadd.f32 %v7013_v57, %v2599_v49  ;;  %v2899_v6 = vld [vmem:[#allocation9 + $0x88] sm:$0xff]  ;;  %v2893_v49 = vld [vmem:[#allocation9 + $0x58] sm:$0xff] }
 0x331   : > { %v1908_v62 = vadd.f32 %v7676_v28, %v1677_v54  ;;  %v2895_v54 = vld [vmem:[#allocation9 + $0x68] sm:$0xff]  ;;  %v2889_v9 = vld [vmem:[#allocation9 + $0x38] sm:$0xff] }
 0x332   : > { %v2634_v11 = vadd.f32 %v7015_v25, %v2596_v35  ;;  %v2139_v35 = vadd.f32 %v7677_v30, %v1907_v20  ;;  %v2669_v13 = vmax.f32 %v2637_v41, 0.0 }
 0x333   : > { %v2140_v26 = vadd.f32 %v7678_v51, %v1908_v62 }
 0x334   : > { %v2666_v50 = vmax.f32 %v2634_v11, 0.0  ;;  %v2370_v11 = vadd.f32 %v2272_v52, %v2139_v35  ;;  %v2885_v52 = vld [vmem:[#allocation9 + $0x18] sm:$0xff] }
 0x335   : > { %v2371_v7 = vadd.f32 %v2337_v29, %v2140_v26 }
 0x336   : > { %v7148_v14 = vmax.f32 %v2665_v1, %v2666_v50  ;;  %v2601_v12 = vadd.f32 %v2503_v61, %v2370_v11 }
 0x337   : > { %v2562_v33 = vpop.f32.mrf.mxu1 }
 0x338   : > { %v2598_v43 = vadd.f32 %v2562_v33, %v2367_v10  ;;  %v2639_v44 = vadd.f32 %v7013_v57, %v2601_v12  ;;  %v2689_v57 = vld [vmem:[#allocation6] sm:$0xff] }
 0x33a   : > { %v2636_v60 = vadd.f32 %v7015_v25, %v2598_v43  ;;  %v2671_v42 = vmax.f32 %v2639_v44, 0.0  ;;  %v2911_v43 = vld [vmem:[#allocation9 + $0xe8] sm:$0xff] }
 0x33c   : > { %v2668_v24 = vmax.f32 %v2636_v60, 0.0  ;;  %v2903_v60 = vld [vmem:[#allocation9 + $0xa8] sm:$0xff] }
 0x33e   : > { %v7160_v39 = vmax.f32 %v2667_v0, %v2668_v24  ;;  %v2891_v24 = vld [vmem:[#allocation9 + $0x48] sm:$0xff] }
 0x33f   : > { %v2565_v21 = vpop.f32.mrf.mxu1 }
 0x340   : > { %v2600_v58 = vadd.f32 %v2565_v21, %v2369_v46  ;;  %v2887_v46 = vld [vmem:[#allocation9 + $0x28] sm:$0xff] }
 0x341   : > { %v2883_v21 = vld [vmem:[#allocation9 + $0x8] sm:$0xff] }
 0x342   : > { %v2638_v15 = vadd.f32 %v7015_v25, %v2600_v58 }
 0x344   : > { %v2670_v1 = vmax.f32 %v2638_v15, 0.0 }
 0x346   : > { %v2687_v50 = vmax.f32 %v2669_v13, %v2670_v1 }
 0x347   : > { %v2568_v17 = vpop.f32.mrf.mxu1 }
 0x348   : > { %v2602_v8 = vadd.f32 %v2568_v17, %v2371_v7 }
 0x34a   : > { %v2640_v10 = vadd.f32 %v7015_v25, %v2602_v8  ;;  %v2723_v25 = vld [vmem:[#allocation6 + $0x20] sm:$0xff] }
 0x34c   : > { %v2672_v33 = vmax.f32 %v2640_v10, 0.0  ;;  %v2836_v10 = vld [vmem:[#allocation7] sm:$0xff] }
 0x34e   : > { %v2688_v4 = vmax.f32 %v2671_v42, %v2672_v33  ;;  %v2915_v42 = vld [vmem:[#allocation7 + $0x20] sm:$0xff]  ;;  %v2991_v33 = vld [vmem:[#allocation9 + $0x1f0] sm:$0xff] }
 0x350   : > { %2693 = vmatpush.msrb.mxu2 %v2688_v4  ;;  %2727 = vmatpush.msra.mxu3 %v2688_v4 }
 0x352   : > { %2694 = vmatpush.msrb.mxu2 %v2687_v50  ;;  %2728 = vmatpush.msra.mxu3 %v2687_v50 }
 0x354   : > { %2695 = vmatpush.msrb.mxu2 %v7160_v39  ;;  %2729 = vmatpush.msra.mxu3 %v7160_v39 }
 0x356   : > { %2696 = vmatpush.msrb.mxu2 %v7148_v14  ;;  %2730 = vmatpush.msra.mxu3 %v7148_v14 }
 0x358   : > { %2697 = vmatpush.msrb.mxu2 %v7136_v5  ;;  %2731 = vmatpush.msra.mxu3 %v7136_v5 }
 0x35a   : > { %2698 = vmatpush.msrb.mxu2 %v7124_v2  ;;  %2732 = vmatpush.msra.mxu3 %v7124_v2 }
 0x35c   : > { %2699 = vmatpush.msrb.mxu2 %v7112_v18  ;;  %2733 = vmatpush.msra.mxu3 %v7112_v18 }
 0x35e   : > { %2700 = vmatpush.msrb.mxu2 %v7100_v34  ;;  %2734 = vmatpush.msra.mxu3 %v7100_v34 }
 0x360   : > { %2701 = vmatpush.msrb.mxu2 %v7088_v48  ;;  %2735 = vmatpush.msra.mxu3 %v7088_v48 }
 0x362   : > { %2702 = vmatpush.msrb.mxu2 %v7076_v32  ;;  %2736 = vmatpush.msra.mxu3 %v7076_v32 }
 0x364   : > { %2703 = vmatpush.msrb.mxu2 %v7063_v36  ;;  %2737 = vmatpush.msra.mxu3 %v7063_v36 }
 0x366   : > { %2704 = vmatpush.msrb.mxu2 %v7055_v3  ;;  %2738 = vmatpush.msra.mxu3 %v7055_v3 }
 0x368   : > { %2705 = vmatpush.msrb.mxu2 %v7047_v59  ;;  %2739 = vmatpush.msra.mxu3 %v7047_v59 }
 0x36a   : > { %2706 = vmatpush.msrb.mxu2 %v7039_v23  ;;  %2740 = vmatpush.msra.mxu3 %v7039_v23 }
 0x36c   : > { %2707 = vmatpush.msrb.mxu2 %v7031_v38  ;;  %2741 = vmatpush.msra.mxu3 %v7031_v38 }
 0x36e   : > { %2708 = vmatpush.msrb.mxu2 %v7023_v63  ;;  %2742 = vmatpush.msra.mxu3 %v7023_v63 }
 0x36f   : > { %2709 = vmatmul.f32.vlgmr.msrb.gmra.mxu2 %v2689_v57  ;;  %2743 = vmatmul.f32.vlgmr.msra.gmra.mxu3 %v2723_v25  ;;  %v2987_v57 = vld [vmem:[#allocation9 + $0x1d0] sm:$0xff]  ;;  %v2985_v25 = vld [vmem:[#allocation9 + $0x1c0] sm:$0xff] }
 0x370   : > { %2803 = vmatpush.msrb.mxu3 %v2688_v4  ;;  %2765 = vmatpush.msra.mxu2 %v2688_v4  ;;  %v2989_v4 = vld [vmem:[#allocation9 + $0x1e0] sm:$0xff] }
 0x372   : > { %2804 = vmatpush.msrb.mxu3 %v2687_v50  ;;  %2766 = vmatpush.msra.mxu2 %v2687_v50 }
 0x374   : > { %2805 = vmatpush.msrb.mxu3 %v7160_v39  ;;  %2767 = vmatpush.msra.mxu2 %v7160_v39 }
 0x376   : > { %2806 = vmatpush.msrb.mxu3 %v7148_v14  ;;  %2768 = vmatpush.msra.mxu2 %v7148_v14 }
 0x377   : > { %2712 = vmatmul.f32.gmra.mxu2 %v2690_v16  ;;  %2746 = vmatmul.f32.gmra.mxu3 %v2724_v45  ;;  %v2837_v16 = vld [vmem:[#allocation7 + $0x8] sm:$0xff] }
 0x378   : > { %2807 = vmatpush.msrb.mxu3 %v7136_v5  ;;  %2769 = vmatpush.msra.mxu2 %v7136_v5  ;;  %v2802_v5 = vld [vmem:[#allocation6 + $0x78] sm:$0xff]  ;;  %v2916_v45 = vld [vmem:[#allocation7 + $0x28] sm:$0xff] }
 0x37a   : > { %2808 = vmatpush.msrb.mxu3 %v7124_v2  ;;  %2770 = vmatpush.msra.mxu2 %v7124_v2  ;;  %v2726_v2 = vld [vmem:[#allocation6 + $0x38] sm:$0xff] }
 0x37c   : > { %2809 = vmatpush.msrb.mxu3 %v7112_v18  ;;  %2771 = vmatpush.msra.mxu2 %v7112_v18  ;;  %v2692_v18 = vld [vmem:[#allocation6 + $0x18] sm:$0xff] }
 0x37e   : > { %2810 = vmatpush.msrb.mxu3 %v7100_v34  ;;  %2772 = vmatpush.msra.mxu2 %v7100_v34  ;;  %v2801_v34 = vld [vmem:[#allocation6 + $0x70] sm:$0xff] }
 0x37f   : > { %2715 = vmatmul.f32.gmra.mxu2 %v2691_v55  ;;  %2749 = vmatmul.f32.gmra.mxu3 %v2725_v40  ;;  %v2983_v55 = vld [vmem:[#allocation9 + $0x1b0] sm:$0xff] }
 0x380   : > { %2811 = vmatpush.msrb.mxu3 %v7088_v48  ;;  %2773 = vmatpush.msra.mxu2 %v7088_v48  ;;  %v2800_v48 = vld [vmem:[#allocation6 + $0x68] sm:$0xff]  ;;  %v2912_v40 = vld [vmem:[#allocation9 + $0xf0] sm:$0xff] }
 0x381   : > { %3051 = vmatpush.msrb.mxu0 %v2912_v40  ;;  %v2964_v40 = vld [vmem:[#allocation9 + $0x118] sm:$0xff] }
 0x382   : > { %2812 = vmatpush.msrb.mxu3 %v7076_v32  ;;  %2774 = vmatpush.msra.mxu2 %v7076_v32  ;;  %v2799_v32 = vld [vmem:[#allocation6 + $0x60] sm:$0xff] }
 0x384   : > { %2813 = vmatpush.msrb.mxu3 %v7063_v36  ;;  %2775 = vmatpush.msra.mxu2 %v7063_v36  ;;  %v2761_v36 = vld [vmem:[#allocation6 + $0x40] sm:$0xff] }
 0x386   : > { %2814 = vmatpush.msrb.mxu3 %v7055_v3  ;;  %2776 = vmatpush.msra.mxu2 %v7055_v3  ;;  %v2762_v3 = vld [vmem:[#allocation6 + $0x48] sm:$0xff] }
 0x387   : > { %2718 = vmatmul.f32.gmra.mxu2 %v2692_v18  ;;  %2752 = vmatmul.f32.gmra.mxu3 %v2726_v2  ;;  %v2910_v18 = vld [vmem:[#allocation9 + $0xe0] sm:$0xff] }
 0x388   : > { %2815 = vmatpush.msrb.mxu3 %v7047_v59  ;;  %2777 = vmatpush.msra.mxu2 %v7047_v59  ;;  %v2763_v59 = vld [vmem:[#allocation6 + $0x50] sm:$0xff]  ;;  %v2981_v2 = vld [vmem:[#allocation9 + $0x1a0] sm:$0xff] }
 0x389   : > { %3052 = vmatpush.msrb.mxu0 %v2910_v18  ;;  %v3157_v18 = vld [vmem:[#allocation9 + $0x208] sm:$0xff] }
 0x38a   : > { %2816 = vmatpush.msrb.mxu3 %v7039_v23  ;;  %2778 = vmatpush.msra.mxu2 %v7039_v23  ;;  %v2764_v23 = vld [vmem:[#allocation6 + $0x58] sm:$0xff] }
 0x38c   : > { %2817 = vmatpush.msrb.mxu3 %v7031_v38  ;;  %2779 = vmatpush.msra.mxu2 %v7031_v38  ;;  %v2913_v38 = vld [vmem:[#allocation9 + $0xf8] sm:$0xff] }
 0x38d   : > { %3080 = vmatpush.msra.mxu1 %v2913_v38  ;;  %v2902_v38 = vld [vmem:[#allocation9 + $0xa0] sm:$0xff] }
 0x38e   : > { %2818 = vmatpush.msrb.mxu3 %v7023_v63  ;;  %2780 = vmatpush.msra.mxu2 %v7023_v63  ;;  %v2909_v63 = vld [vmem:[#allocation9 + $0xd8] sm:$0xff] }
 0x38f   : > { %2781 = vmatmul.f32.vlgmr.msra.gmra.mxu2 %v2761_v36  ;;  %2819 = vmatmul.f32.vlgmr.msrb.gmra.mxu3 %v2799_v32  ;;  %v2908_v36 = vld [vmem:[#allocation9 + $0xd0] sm:$0xff] }
 0x390   : > { %3081 = vmatpush.msra.mxu1 %v2911_v43  ;;  %v2979_v32 = vld [vmem:[#allocation9 + $0x190] sm:$0xff]  ;;  %3053 = vmatpush.msrb.mxu0 %v2908_v36 }
 0x391   : > { %v2900_v43 = vld [vmem:[#allocation9 + $0x90] sm:$0xff] }
 0x392   : > { %3082 = vmatpush.msra.mxu1 %v2909_v63  ;;  %v2898_v63 = vld [vmem:[#allocation9 + $0x80] sm:$0xff] }
 0x394   : > { %3083 = vmatpush.msra.mxu1 %v2907_v27  ;;  %v2969_v27 = vld [vmem:[#allocation9 + $0x140] sm:$0xff] }
 0x396   : > { %3084 = vmatpush.msra.mxu1 %v2905_v47  ;;  %v2896_v47 = vld [vmem:[#allocation9 + $0x70] sm:$0xff] }
 0x397   : > { %2784 = vmatmul.f32.gmra.mxu2 %v2762_v3  ;;  %2822 = vmatmul.f32.gmra.mxu3 %v2800_v48  ;;  %v2906_v3 = vld [vmem:[#allocation9 + $0xc0] sm:$0xff] }
 0x398   : > { %3085 = vmatpush.msra.mxu1 %v2903_v60  ;;  %v2977_v48 = vld [vmem:[#allocation9 + $0x180] sm:$0xff]  ;;  %3054 = vmatpush.msrb.mxu0 %v2906_v3  ;;  %v2918_v60 = vld [vmem:[#allocation7 + $0x38] sm:$0xff] }
 0x39a   : > { %3086 = vmatpush.msra.mxu1 %v2901_v22  ;;  %v2894_v22 = vld [vmem:[#allocation9 + $0x60] sm:$0xff] }
 0x39c   : > { %3087 = vmatpush.msra.mxu1 %v2899_v6  ;;  %v2965_v6 = vld [vmem:[#allocation9 + $0x120] sm:$0xff] }
 0x39e   : > { %3088 = vmatpush.msra.mxu1 %v2897_v31  ;;  %v2892_v31 = vld [vmem:[#allocation9 + $0x50] sm:$0xff] }
 0x39f   : > { %2787 = vmatmul.f32.gmra.mxu2 %v2763_v59  ;;  %2825 = vmatmul.f32.gmra.mxu3 %v2801_v34  ;;  %v2904_v59 = vld [vmem:[#allocation9 + $0xb0] sm:$0xff] }
 0x3a0   : > { %3089 = vmatpush.msra.mxu1 %v2895_v54  ;;  %v2838_v34 = vld [vmem:[#allocation7 + $0x10] sm:$0xff]  ;;  %3055 = vmatpush.msrb.mxu0 %v2904_v59  ;;  %v2890_v54 = vld [vmem:[#allocation9 + $0x40] sm:$0xff] }
 0x3a2   : > { %3090 = vmatpush.msra.mxu1 %v2893_v49  ;;  %3056 = vmatpush.msrb.mxu0 %v2902_v38  ;;  %v2888_v49 = vld [vmem:[#allocation9 + $0x30] sm:$0xff] }
 0x3a3   : > { %v3331_v38 = vld [vmem:[#allocation9 + $0x3f0] sm:$0xff] }
 0x3a4   : > { %3091 = vmatpush.msra.mxu1 %v2891_v24  ;;  %3057 = vmatpush.msrb.mxu0 %v2900_v43  ;;  %v2886_v24 = vld [vmem:[#allocation9 + $0x20] sm:$0xff]  ;;  %v3186_v43 = vld [vmem:[#allocation9 + $0x2f0] sm:$0xff] }
 0x3a6   : > { %3092 = vmatpush.msra.mxu1 %v2889_v9  ;;  %3058 = vmatpush.msrb.mxu0 %v2898_v63  ;;  %v2884_v9 = vld [vmem:[#allocation9 + $0x10] sm:$0xff] }
 0x3a7   : > { %2790 = vmatmul.f32.gmra.mxu2 %v2764_v23  ;;  %2828 = vmatmul.f32.gmra.mxu3 %v2802_v5  ;;  %v2917_v23 = vld [vmem:[#allocation7 + $0x30] sm:$0xff] }
 0x3a8   : > { %3093 = vmatpush.msra.mxu1 %v2887_v46  ;;  %v2975_v5 = vld [vmem:[#allocation9 + $0x170] sm:$0xff]  ;;  %3059 = vmatpush.msrb.mxu0 %v2896_v47  ;;  %v3187_v46 = vld [vmem:[#allocation9 + $0x2f8] sm:$0xff]  ;;  %v3110_v47 = vld [vmem:[#allocation7 + $0x40] sm:$0xff] }
 0x3a9   : > { %v3327_v63 = vld [vmem:[#allocation9 + $0x3d0] sm:$0xff] }
 0x3aa   : > { %3094 = vmatpush.msra.mxu1 %v2885_v52  ;;  %3060 = vmatpush.msrb.mxu0 %v2894_v22  ;;  %v3183_v52 = vld [vmem:[#allocation9 + $0x2d8] sm:$0xff]  ;;  %v3323_v22 = vld [vmem:[#allocation9 + $0x3b0] sm:$0xff] }
 0x3ac   : > { %3095 = vmatpush.msra.mxu1 %v2883_v21  ;;  %3061 = vmatpush.msrb.mxu0 %v2892_v31  ;;  %v3181_v21 = vld [vmem:[#allocation9 + $0x2c8] sm:$0xff]  ;;  %v3321_v31 = vld [vmem:[#allocation9 + $0x3a0] sm:$0xff] }
 0x3ae   : > { %3062 = vmatpush.msrb.mxu0 %v2890_v54  ;;  %v3319_v54 = vld [vmem:[#allocation9 + $0x390] sm:$0xff] }
 0x3b0   : > { %3063 = vmatpush.msrb.mxu0 %v2888_v49  ;;  %v3174_v49 = vld [vmem:[#allocation9 + $0x290] sm:$0xff] }
 0x3b2   : > { %3064 = vmatpush.msrb.mxu0 %v2886_v24  ;;  %v3256_v24 = vld [vmem:[#allocation7 + $0x68] sm:$0xff] }
 0x3b4   : > { %3065 = vmatpush.msrb.mxu0 %v2884_v9  ;;  %v3317_v9 = vld [vmem:[#allocation9 + $0x380] sm:$0xff] }
 0x3f2   : > { %v2710_v14 = vpop.f32.mrf.mxu2  ;;  %v2744_v19 = vpop.f32.mrf.mxu3 }
 0x3f3   : > { %v2756_v12 = vmax.f32 %v2710_v14, %v2744_v19  ;;  %v2973_v14 = vld [vmem:[#allocation9 + $0x160] sm:$0xff]  ;;  %v2971_v19 = vld [vmem:[#allocation9 + $0x150] sm:$0xff] }
 0x3fa   : > { %v2713_v56 = vpop.f32.mrf.mxu2  ;;  %v2747_v37 = vpop.f32.mrf.mxu3 }
 0x3fb   : > { %v2757_v26 = vmax.f32 %v2713_v56, %v2747_v37  ;;  %v2839_v56 = vld [vmem:[#allocation7 + $0x18] sm:$0xff]  ;;  %v2967_v37 = vld [vmem:[#allocation9 + $0x130] sm:$0xff] }
 0x402   : > { %v2716_v53 = vpop.f32.mrf.mxu2  ;;  %v2750_v0 = vpop.f32.mrf.mxu3 }
 0x403   : > { %v2758_v61 = vmax.f32 %v2716_v53, %v2750_v0  ;;  %v2963_v53 = vld [vmem:[#allocation9 + $0x110] sm:$0xff]  ;;  %v2961_v0 = vld [vmem:[#allocation9 + $0x100] sm:$0xff] }
 0x40a   : > { %v2719_v20 = vpop.f32.mrf.mxu2  ;;  %v2753_v39 = vpop.f32.mrf.mxu3 }
 0x40b   : > { %v2759_v11 = vmax.f32 %v2719_v20, %v2753_v39  ;;  %v2882_v20 = vld [vmem:[#allocation9] sm:$0xff]  ;;  %v3185_v39 = vld [vmem:[#allocation9 + $0x2e8] sm:$0xff] }
 0x40c   : > { %3066 = vmatpush.msrb.mxu0 %v2882_v20  ;;  %v3172_v20 = vld [vmem:[#allocation9 + $0x280] sm:$0xff] }
 0x40e   : > { %3217 = vmatpush.msra.mxu0 %v3187_v46  ;;  %v3315_v46 = vld [vmem:[#allocation9 + $0x370] sm:$0xff] }
 0x410   : > { %3218 = vmatpush.msra.mxu0 %v3185_v39  ;;  %v3170_v39 = vld [vmem:[#allocation9 + $0x270] sm:$0xff] }
 0x412   : > { %v2782_v28 = vpop.f32.mrf.mxu2  ;;  %v2820_v62 = vpop.f32.mrf.mxu3  ;;  %3219 = vmatpush.msra.mxu0 %v3183_v52  ;;  %v3313_v52 = vld [vmem:[#allocation9 + $0x360] sm:$0xff] }
 0x413   : > { %v2794_v50 = vmax.f32 %v2756_v12, %v2782_v28  ;;  %v3179_v28 = vld [vmem:[#allocation9 + $0x2b8] sm:$0xff] }
 0x414   : > { %3220 = vmatpush.msra.mxu0 %v3181_v21  ;;  %v2988_v12 = vld [vmem:[#allocation9 + $0x1d8] sm:$0xff]  ;;  %v3168_v21 = vld [vmem:[#allocation9 + $0x260] sm:$0xff] }
 0x415   : > { %v7237_v8 = vmax.f32 %v2794_v50, %v2820_v62  ;;  %v3177_v62 = vld [vmem:[#allocation9 + $0x2a8] sm:$0xff]  ;;  %v2984_v50 = vld [vmem:[#allocation9 + $0x1b8] sm:$0xff] }
 0x416   : > { %3221 = vmatpush.msra.mxu0 %v3179_v28  ;;  %v3311_v28 = vld [vmem:[#allocation9 + $0x350] sm:$0xff] }
 0x418   : > { %3222 = vmatpush.msra.mxu0 %v3177_v62  ;;  %v3112_v62 = vld [vmem:[#allocation7 + $0x50] sm:$0xff] }
 0x41a   : > { %v2785_v30 = vpop.f32.mrf.mxu2  ;;  %v2823_v35 = vpop.f32.mrf.mxu3 }
 0x41b   : > { %v2795_v1 = vmax.f32 %v2757_v26, %v2785_v30  ;;  %v3175_v30 = vld [vmem:[#allocation9 + $0x298] sm:$0xff]  ;;  %v3161_v26 = vld [vmem:[#allocation9 + $0x228] sm:$0xff] }
 0x41c   : > { %3223 = vmatpush.msra.mxu0 %v3175_v30  ;;  %v3166_v30 = vld [vmem:[#allocation9 + $0x250] sm:$0xff] }
 0x41d   : > { %v7232_v44 = vmax.f32 %v2795_v1, %v2823_v35  ;;  %v3173_v35 = vld [vmem:[#allocation9 + $0x288] sm:$0xff] }
 0x41e   : > { %3224 = vmatpush.msra.mxu0 %v3173_v35  ;;  %v2986_v1 = vld [vmem:[#allocation9 + $0x1c8] sm:$0xff]  ;;  %v3257_v35 = vld [vmem:[#allocation7 + $0x70] sm:$0xff] }
 0x422   : > { %v2788_v41 = vpop.f32.mrf.mxu2  ;;  %v2826_v58 = vpop.f32.mrf.mxu3 }
 0x423   : > { %v2796_v15 = vmax.f32 %v2758_v61, %v2788_v41  ;;  %v3171_v41 = vld [vmem:[#allocation9 + $0x278] sm:$0xff] }
 0x424   : > { %3225 = vmatpush.msra.mxu0 %v3171_v41  ;;  %v3167_v61 = vld [vmem:[#allocation9 + $0x258] sm:$0xff]  ;;  %v3309_v41 = vld [vmem:[#allocation9 + $0x340] sm:$0xff] }
 0x425   : > { %v7227_v17 = vmax.f32 %v2796_v15, %v2826_v58  ;;  %v3169_v58 = vld [vmem:[#allocation9 + $0x268] sm:$0xff]  ;;  %v3159_v15 = vld [vmem:[#allocation9 + $0x218] sm:$0xff] }
 0x426   : > { %3226 = vmatpush.msra.mxu0 %v3169_v58  ;;  %v3164_v58 = vld [vmem:[#allocation9 + $0x240] sm:$0xff] }
 0x428   : > { %3227 = vmatpush.msra.mxu0 %v3167_v61  ;;  %v3307_v61 = vld [vmem:[#allocation9 + $0x330] sm:$0xff] }
 0x42a   : > { %v2791_v51 = vpop.f32.mrf.mxu2  ;;  %v2829_v13 = vpop.f32.mrf.mxu3 }
 0x42b   : > { %v2797_v29 = vmax.f32 %v2759_v11, %v2791_v51  ;;  %v3165_v11 = vld [vmem:[#allocation9 + $0x248] sm:$0xff]  ;;  %v3163_v51 = vld [vmem:[#allocation9 + $0x238] sm:$0xff] }
 0x42c   : > { %3228 = vmatpush.msra.mxu0 %v3165_v11  ;;  %v3305_v11 = vld [vmem:[#allocation9 + $0x320] sm:$0xff] }
 0x42d   : > { %v7225_v7 = vmax.f32 %v2797_v29, %v2829_v13  ;;  %v2992_v29 = vld [vmem:[#allocation9 + $0x1f8] sm:$0xff]  ;;  %v2990_v13 = vld [vmem:[#allocation9 + $0x1e8] sm:$0xff] }
 0x42e   : > { %3229 = vmatpush.msra.mxu0 %v3163_v51  ;;  %v3303_v51 = vld [vmem:[#allocation9 + $0x310] sm:$0xff] }
 0x42f   : > { %2865 = vmatpush.msrb.mxu2 %v7225_v7  ;;  %2943 = vmatpush.msra.mxu3 %v7225_v7 }
 0x430   : > { %3283 = vmatpush.msrb.mxu1 %v7225_v7  ;;  %3230 = vmatpush.msra.mxu0 %v3161_v26  ;;  %v3113_v26 = vld [vmem:[#allocation7 + $0x58] sm:$0xff] }
 0x431   : > { %2866 = vmatpush.msrb.mxu2 %v7227_v17  ;;  %2944 = vmatpush.msra.mxu3 %v7227_v17 }
 0x432   : > { %3284 = vmatpush.msrb.mxu1 %v7227_v17  ;;  %3231 = vmatpush.msra.mxu0 %v3159_v15  ;;  %v3258_v15 = vld [vmem:[#allocation7 + $0x78] sm:$0xff] }
 0x433   : > { %2867 = vmatpush.msrb.mxu2 %v7232_v44  ;;  %2945 = vmatpush.msra.mxu3 %v7232_v44 }
 0x434   : > { %3285 = vmatpush.msrb.mxu1 %v7232_v44  ;;  %3232 = vmatpush.msra.mxu0 %v3157_v18  ;;  %v3465_v18 = vld [vmem:[#allocation9 + $0x498] sm:$0xff] }
 0x435   : > { %2868 = vmatpush.msrb.mxu2 %v7237_v8  ;;  %2946 = vmatpush.msra.mxu3 %v7237_v8 }
 0x436   : > { %5183 = vmatmul.msk.f32.vlgmr.msrb.gmra.mxu2 %vm2840_vm1, %v2836_v10  ;;  %5187 = vmatmul.msk.f32.vlgmr.msra.gmra.mxu3 %vm2840_vm1, %v2915_v42  ;;  %v2982_v10 = vld [vmem:[#allocation9 + $0x1a8] sm:$0xff]  ;;  %v2980_v42 = vld [vmem:[#allocation9 + $0x198] sm:$0xff] }
 0x437   : > { %2993 = vmatpush.msra.mxu2 %v2991_v33  ;;  %3286 = vmatpush.msrb.mxu1 %v7237_v8  ;;  %v2978_v33 = vld [vmem:[#allocation9 + $0x188] sm:$0xff] }
 0x438   : > { %3022 = vmatpush.msrb.mxu3 %v2992_v29  ;;  %v3162_v29 = vld [vmem:[#allocation9 + $0x230] sm:$0xff] }
 0x439   : > { %2994 = vmatpush.msra.mxu2 %v2989_v4  ;;  %v2976_v4 = vld [vmem:[#allocation9 + $0x178] sm:$0xff] }
 0x43a   : > { %3023 = vmatpush.msrb.mxu3 %v2990_v13  ;;  %v3301_v13 = vld [vmem:[#allocation9 + $0x300] sm:$0xff] }
 0x43b   : > { %2995 = vmatpush.msra.mxu2 %v2987_v57  ;;  %v2974_v57 = vld [vmem:[#allocation9 + $0x168] sm:$0xff] }
 0x43c   : > { %3024 = vmatpush.msrb.mxu3 %v2988_v12  ;;  %v3477_v12 = vld [vmem:[#allocation9 + $0x4f8] sm:$0xff] }
 0x43d   : > { %2996 = vmatpush.msra.mxu2 %v2985_v25  ;;  %v2972_v25 = vld [vmem:[#allocation9 + $0x158] sm:$0xff] }
 0x43e   : > { %5184 = vmatmul.msk.f32.gmra.mxu2 %vm2840_vm1, %v2837_v16  ;;  %5188 = vmatmul.msk.f32.gmra.mxu3 %vm2840_vm1, %v2916_v45  ;;  %v2970_v16 = vld [vmem:[#allocation9 + $0x148] sm:$0xff]  ;;  %v2968_v45 = vld [vmem:[#allocation9 + $0x138] sm:$0xff] }
 0x43f   : > { %2997 = vmatpush.msra.mxu2 %v2983_v55  ;;  %3025 = vmatpush.msrb.mxu3 %v2986_v1  ;;  %v2966_v55 = vld [vmem:[#allocation9 + $0x128] sm:$0xff]  ;;  %v3160_v1 = vld [vmem:[#allocation9 + $0x220] sm:$0xff] }
 0x441   : > { %2998 = vmatpush.msra.mxu2 %v2981_v2  ;;  %3026 = vmatpush.msrb.mxu3 %v2984_v50  ;;  %v2962_v2 = vld [vmem:[#allocation9 + $0x108] sm:$0xff] }
 0x442   : > { %v3475_v50 = vld [vmem:[#allocation9 + $0x4e8] sm:$0xff] }
 0x443   : > { %2999 = vmatpush.msra.mxu2 %v2979_v32  ;;  %3027 = vmatpush.msrb.mxu3 %v2982_v10  ;;  %v3158_v10 = vld [vmem:[#allocation9 + $0x210] sm:$0xff] }
 0x445   : > { %3000 = vmatpush.msra.mxu2 %v2977_v48  ;;  %3028 = vmatpush.msrb.mxu3 %v2980_v42  ;;  %v3473_v42 = vld [vmem:[#allocation9 + $0x4d8] sm:$0xff] }
 0x446   : > { %5185 = vmatmul.msk.f32.gmra.mxu2 %vm2840_vm1, %v2838_v34  ;;  %5189 = vmatmul.msk.f32.gmra.mxu3 %vm2840_vm1, %v2917_v23 }
 0x447   : > { %3001 = vmatpush.msra.mxu2 %v2975_v5  ;;  %3029 = vmatpush.msrb.mxu3 %v2978_v33  ;;  %v3156_v33 = vld [vmem:[#allocation9 + $0x200] sm:$0xff] }
 0x449   : > { %3002 = vmatpush.msra.mxu2 %v2973_v14  ;;  %3030 = vmatpush.msrb.mxu3 %v2976_v4  ;;  %v3329_v14 = vld [vmem:[#allocation9 + $0x3e0] sm:$0xff]  ;;  %v3332_v4 = vld [vmem:[#allocation9 + $0x3f8] sm:$0xff] }
 0x44b   : > { %3003 = vmatpush.msra.mxu2 %v2971_v19  ;;  %3031 = vmatpush.msrb.mxu3 %v2974_v57  ;;  %v3184_v19 = vld [vmem:[#allocation9 + $0x2e0] sm:$0xff]  ;;  %v3471_v57 = vld [vmem:[#allocation9 + $0x4c8] sm:$0xff] }
 0x44d   : > { %3004 = vmatpush.msra.mxu2 %v2969_v27  ;;  %3032 = vmatpush.msrb.mxu3 %v2972_v25  ;;  %v3182_v27 = vld [vmem:[#allocation9 + $0x2d0] sm:$0xff]  ;;  %v3330_v25 = vld [vmem:[#allocation9 + $0x3e8] sm:$0xff] }
 0x44e   : > { %5186 = vmatmul.msk.f32.gmra.mxu2 %vm2840_vm1, %v2839_v56  ;;  %5190 = vmatmul.msk.f32.gmra.mxu3 %vm2840_vm1, %v2918_v60  ;;  %v3255_v56 = vld [vmem:[#allocation7 + $0x60] sm:$0xff] }
 0x44f   : > { %3005 = vmatpush.msra.mxu2 %v2967_v37  ;;  %3033 = vmatpush.msrb.mxu3 %v2970_v16  ;;  %v3325_v60 = vld [vmem:[#allocation9 + $0x3c0] sm:$0xff]  ;;  %v3469_v16 = vld [vmem:[#allocation9 + $0x4b8] sm:$0xff] }
 0x450   : > { %v3180_v37 = vld [vmem:[#allocation9 + $0x2c0] sm:$0xff] }
 0x451   : > { %3006 = vmatpush.msra.mxu2 %v2965_v6  ;;  %3034 = vmatpush.msrb.mxu3 %v2968_v45  ;;  %v3178_v6 = vld [vmem:[#allocation9 + $0x2b0] sm:$0xff]  ;;  %v3328_v45 = vld [vmem:[#allocation9 + $0x3d8] sm:$0xff] }
 0x453   : > { %3007 = vmatpush.msra.mxu2 %v2963_v53  ;;  %3035 = vmatpush.msrb.mxu3 %v2966_v55  ;;  %v3176_v53 = vld [vmem:[#allocation9 + $0x2a0] sm:$0xff]  ;;  %v3467_v55 = vld [vmem:[#allocation9 + $0x4a8] sm:$0xff] }
 0x455   : > { %3008 = vmatpush.msra.mxu2 %v2961_v0  ;;  %3036 = vmatpush.msrb.mxu3 %v2964_v40  ;;  %v3111_v0 = vld [vmem:[#allocation7 + $0x48] sm:$0xff] }
 0x456   : > { %v3326_v40 = vld [vmem:[#allocation9 + $0x3c8] sm:$0xff] }
 0x457   : > { %3138 = vmatpush.msrb.mxu2 %v7225_v7  ;;  %3037 = vmatpush.msrb.mxu3 %v2962_v2  ;;  %v3324_v2 = vld [vmem:[#allocation9 + $0x3b8] sm:$0xff] }
 0x459   : > { %3139 = vmatpush.msrb.mxu2 %v7227_v17  ;;  %3188 = vmatpush.msra.mxu3 %v3186_v43  ;;  %v3453_v43 = vld [vmem:[#allocation9 + $0x438] sm:$0xff] }
 0x45b   : > { %3140 = vmatpush.msrb.mxu2 %v7232_v44  ;;  %3189 = vmatpush.msra.mxu3 %v3184_v19  ;;  %v3312_v19 = vld [vmem:[#allocation9 + $0x358] sm:$0xff] }
 0x45d   : > { %3141 = vmatpush.msrb.mxu2 %v7237_v8  ;;  %3190 = vmatpush.msra.mxu3 %v3182_v27  ;;  %v3310_v27 = vld [vmem:[#allocation9 + $0x348] sm:$0xff] }
 0x45f   : > { %3191 = vmatpush.msra.mxu3 %v3180_v37  ;;  %v3447_v37 = vld [vmem:[#allocation9 + $0x408] sm:$0xff] }
 0x461   : > { %3192 = vmatpush.msra.mxu3 %v3178_v6  ;;  %v3304_v6 = vld [vmem:[#allocation9 + $0x318] sm:$0xff] }
 0x463   : > { %3193 = vmatpush.msra.mxu3 %v3176_v53  ;;  %v3302_v53 = vld [vmem:[#allocation9 + $0x308] sm:$0xff] }
 0x465   : > { %3194 = vmatpush.msra.mxu3 %v3174_v49 }
 0x467   : > { %3195 = vmatpush.msra.mxu3 %v3172_v20 }
 0x469   : > { %3196 = vmatpush.msra.mxu3 %v3170_v39 }
 0x46b   : > { %3197 = vmatpush.msra.mxu3 %v3168_v21 }
 0x46d   : > { %3198 = vmatpush.msra.mxu3 %v3166_v30 }
 0x46f   : > { %3199 = vmatpush.msra.mxu3 %v3164_v58  ;;  %v3401_v58 = vld [vmem:[#allocation7 + $0x88] sm:$0xff] }
 0x471   : > { %3200 = vmatpush.msra.mxu3 %v3162_v29  ;;  %v3470_v29 = vld [vmem:[#allocation9 + $0x4c0] sm:$0xff] }
 0x473   : > { %3201 = vmatpush.msra.mxu3 %v3160_v1  ;;  %v3466_v1 = vld [vmem:[#allocation9 + $0x4a0] sm:$0xff] }
 0x475   : > { %3202 = vmatpush.msra.mxu3 %v3158_v10  ;;  %v3462_v10 = vld [vmem:[#allocation9 + $0x480] sm:$0xff] }
 0x477   : > { %3203 = vmatpush.msra.mxu3 %v3156_v33  ;;  %v3460_v33 = vld [vmem:[#allocation9 + $0x470] sm:$0xff] }
 0x4b9   : > { %v2870_v36 = vpop.f32.mrf.mxu2  ;;  %v2948_v32 = vpop.f32.mrf.mxu3 }
 0x4ba   : > { %3009 = vmatmul.f32.vlgmr.msra.gmra.mxu2 %v2948_v32  ;;  %3067 = vmatmul.f32.vlgmr.msrb.gmra.mxu0 %v2870_v36 }
 0x4bb   : > { %3096 = vmatmul.f32.vlgmr.msra.gmra.mxu1 %v2870_v36  ;;  %3428 = vmatpush.msrb.mxu0 %v7225_v7  ;;  %v3463_v36 = vld [vmem:[#allocation9 + $0x488] sm:$0xff] }
 0x4bc   : > { %3038 = vmatmul.f32.vlgmr.msrb.gmra.mxu3 %v2948_v32  ;;  %3333 = vmatpush.msra.mxu2 %v3331_v38  ;;  %v3322_v32 = vld [vmem:[#allocation9 + $0x3a8] sm:$0xff] }
 0x4bd   : > { %3429 = vmatpush.msrb.mxu0 %v7227_v17  ;;  %3362 = vmatpush.msrb.mxu3 %v3332_v4  ;;  %v3455_v38 = vld [vmem:[#allocation9 + $0x448] sm:$0xff]  ;;  %v3458_v4 = vld [vmem:[#allocation9 + $0x460] sm:$0xff] }
 0x4be   : > { %3334 = vmatpush.msra.mxu2 %v3329_v14  ;;  %v3314_v14 = vld [vmem:[#allocation9 + $0x368] sm:$0xff] }
 0x4bf   : > { %3430 = vmatpush.msrb.mxu0 %v7232_v44  ;;  %3363 = vmatpush.msrb.mxu3 %v3330_v25  ;;  %v3454_v25 = vld [vmem:[#allocation9 + $0x440] sm:$0xff] }
 0x4c0   : > { %3335 = vmatpush.msra.mxu2 %v3327_v63  ;;  %v3451_v63 = vld [vmem:[#allocation9 + $0x428] sm:$0xff] }
 0x4c1   : > { %3431 = vmatpush.msrb.mxu0 %v7237_v8  ;;  %v2873_v3 = vpop.f32.mrf.mxu2  ;;  %v2951_v48 = vpop.f32.mrf.mxu3  ;;  %3364 = vmatpush.msrb.mxu3 %v3328_v45  ;;  %v3452_v45 = vld [vmem:[#allocation9 + $0x430] sm:$0xff] }
 0x4c2   : > { %3012 = vmatmul.f32.gmra.mxu2 %v2951_v48  ;;  %3070 = vmatmul.f32.gmra.mxu0 %v2873_v3 }
 0x4c3   : > { %3099 = vmatmul.f32.gmra.mxu1 %v2873_v3  ;;  %3336 = vmatpush.msra.mxu2 %v3325_v60  ;;  %v3461_v3 = vld [vmem:[#allocation9 + $0x478] sm:$0xff] }
 0x4c4   : > { %3041 = vmatmul.f32.gmra.mxu3 %v2951_v48  ;;  %v3320_v48 = vld [vmem:[#allocation9 + $0x398] sm:$0xff] }
 0x4c5   : > { %3337 = vmatpush.msra.mxu2 %v3323_v22  ;;  %3365 = vmatpush.msrb.mxu3 %v3326_v40  ;;  %v3308_v60 = vld [vmem:[#allocation9 + $0x338] sm:$0xff]  ;;  %v3306_v22 = vld [vmem:[#allocation9 + $0x328] sm:$0xff]  ;;  %v3448_v40 = vld [vmem:[#allocation9 + $0x410] sm:$0xff] }
 0x4c7   : > { %3338 = vmatpush.msra.mxu2 %v3321_v31  ;;  %3366 = vmatpush.msrb.mxu3 %v3324_v2 }
 0x4c9   : > { %v2876_v59 = vpop.f32.mrf.mxu2  ;;  %v2954_v34 = vpop.f32.mrf.mxu3  ;;  %3339 = vmatpush.msra.mxu2 %v3319_v54  ;;  %3367 = vmatpush.msrb.mxu3 %v3322_v32  ;;  %v3446_v32 = vld [vmem:[#allocation9 + $0x400] sm:$0xff] }
 0x4ca   : > { %3015 = vmatmul.f32.gmra.mxu2 %v2954_v34  ;;  %3073 = vmatmul.f32.gmra.mxu0 %v2876_v59 }
 0x4cb   : > { %3102 = vmatmul.f32.gmra.mxu1 %v2876_v59  ;;  %3340 = vmatpush.msra.mxu2 %v3317_v9  ;;  %v3459_v59 = vld [vmem:[#allocation9 + $0x468] sm:$0xff] }
 0x4cc   : > { %3044 = vmatmul.f32.gmra.mxu3 %v2954_v34  ;;  %v3318_v34 = vld [vmem:[#allocation9 + $0x388] sm:$0xff] }
 0x4cd   : > { %3341 = vmatpush.msra.mxu2 %v3315_v46  ;;  %3368 = vmatpush.msrb.mxu3 %v3320_v48  ;;  %v3620_v48 = vld [vmem:[#allocation9 + $0x5e8] sm:$0xff] }
 0x4cf   : > { %3342 = vmatpush.msra.mxu2 %v3313_v52  ;;  %3369 = vmatpush.msrb.mxu3 %v3318_v34  ;;  %v3618_v34 = vld [vmem:[#allocation9 + $0x5d8] sm:$0xff] }
 0x4d1   : > { %v2879_v23 = vpop.f32.mrf.mxu2  ;;  %v2957_v5 = vpop.f32.mrf.mxu3  ;;  %3343 = vmatpush.msra.mxu2 %v3311_v28 }
 0x4d2   : > { %3018 = vmatmul.f32.gmra.mxu2 %v2957_v5  ;;  %3076 = vmatmul.f32.gmra.mxu0 %v2879_v23 }
 0x4d3   : > { %3105 = vmatmul.f32.gmra.mxu1 %v2879_v23  ;;  %3344 = vmatpush.msra.mxu2 %v3309_v41  ;;  %v3457_v23 = vld [vmem:[#allocation9 + $0x458] sm:$0xff]  ;;  %v3400_v41 = vld [vmem:[#allocation7 + $0x80] sm:$0xff] }
 0x4d4   : > { %3047 = vmatmul.f32.gmra.mxu3 %v2957_v5  ;;  %v3316_v5 = vld [vmem:[#allocation9 + $0x378] sm:$0xff] }
 0x4d5   : > { %3345 = vmatpush.msra.mxu2 %v3307_v61  ;;  %3370 = vmatpush.msrb.mxu3 %v3316_v5  ;;  %v3402_v61 = vld [vmem:[#allocation7 + $0x90] sm:$0xff] }
 0x4d7   : > { %3346 = vmatpush.msra.mxu2 %v3305_v11  ;;  %3371 = vmatpush.msrb.mxu3 %v3314_v14  ;;  %v3403_v11 = vld [vmem:[#allocation7 + $0x98] sm:$0xff] }
 0x4d8   : > { %v3614_v14 = vld [vmem:[#allocation9 + $0x5b8] sm:$0xff] }
 0x4d9   : > { %3347 = vmatpush.msra.mxu2 %v3303_v51  ;;  %3372 = vmatpush.msrb.mxu3 %v3312_v19  ;;  %v3476_v51 = vld [vmem:[#allocation9 + $0x4f0] sm:$0xff]  ;;  %v3612_v19 = vld [vmem:[#allocation9 + $0x5a8] sm:$0xff] }
 0x4da   : > { %5191 = vmatmul.msk.f32.vlgmr.msrb.gmra.mxu2 %vm2840_vm1, %v3110_v47  ;;  %v3449_v47 = vld [vmem:[#allocation9 + $0x418] sm:$0xff]  ;;  %3478 = vmatpush.msra.mxu1 %v3476_v51 }
 0x4db   : > { %5195 = vmatmul.msk.f32.vlgmr.msrb.gmra.mxu1 %vm2840_vm1, %v3255_v56  ;;  %3348 = vmatpush.msra.mxu2 %v3301_v13  ;;  %v3545_v13 = vld [vmem:[#allocation7 + $0xa0] sm:$0xff] }
 0x4dc   : > { %3373 = vmatpush.msrb.mxu3 %v3310_v27 }
 0x4dd   : > { %3507 = vmatpush.msrb.mxu2 %v3477_v12  ;;  %v3468_v12 = vld [vmem:[#allocation9 + $0x4b0] sm:$0xff] }
 0x4de   : > { %3374 = vmatpush.msrb.mxu3 %v3308_v60  ;;  %v3615_v60 = vld [vmem:[#allocation9 + $0x5c0] sm:$0xff] }
 0x4df   : > { %3508 = vmatpush.msrb.mxu2 %v3475_v50  ;;  %v3464_v50 = vld [vmem:[#allocation9 + $0x490] sm:$0xff] }
 0x4e0   : > { %3375 = vmatpush.msrb.mxu3 %v3306_v22  ;;  %v3613_v22 = vld [vmem:[#allocation9 + $0x5b0] sm:$0xff] }
 0x4e1   : > { %3509 = vmatpush.msrb.mxu2 %v3473_v42  ;;  %v3546_v42 = vld [vmem:[#allocation7 + $0xa8] sm:$0xff] }
 0x4e2   : > { %5192 = vmatmul.msk.f32.gmra.mxu2 %vm2840_vm1, %v3111_v0  ;;  %3376 = vmatpush.msrb.mxu3 %v3304_v6  ;;  %v3606_v6 = vld [vmem:[#allocation9 + $0x578] sm:$0xff] }
 0x4e3   : > { %5196 = vmatmul.msk.f32.gmra.mxu1 %vm2840_vm1, %v3256_v24  ;;  %3510 = vmatpush.msrb.mxu2 %v3471_v57  ;;  %v3456_v57 = vld [vmem:[#allocation9 + $0x450] sm:$0xff] }
 0x4e4   : > { %3377 = vmatpush.msrb.mxu3 %v3302_v53  ;;  %v3611_v53 = vld [vmem:[#allocation9 + $0x5a0] sm:$0xff] }
 0x4e5   : > { %3511 = vmatpush.msrb.mxu2 %v3469_v16  ;;  %v3547_v16 = vld [vmem:[#allocation7 + $0xb0] sm:$0xff] }
 0x4e7   : > { %3512 = vmatpush.msrb.mxu2 %v3467_v55  ;;  %v3450_v55 = vld [vmem:[#allocation9 + $0x420] sm:$0xff] }
 0x4e9   : > { %3513 = vmatpush.msrb.mxu2 %v3465_v18  ;;  %v3548_v18 = vld [vmem:[#allocation7 + $0xb8] sm:$0xff] }
 0x4ea   : > { %5193 = vmatmul.msk.f32.gmra.mxu2 %vm2840_vm1, %v3112_v62 }
 0x4eb   : > { %5197 = vmatmul.msk.f32.gmra.mxu1 %vm2840_vm1, %v3257_v35  ;;  %3514 = vmatpush.msrb.mxu2 %v3463_v36 }
 0x4ed   : > { %3515 = vmatpush.msrb.mxu2 %v3461_v3  ;;  %v3622_v3 = vld [vmem:[#allocation9 + $0x5f8] sm:$0xff] }
 0x4ef   : > { %3516 = vmatpush.msrb.mxu2 %v3459_v59 }
 0x4f1   : > { %3517 = vmatpush.msrb.mxu2 %v3457_v23  ;;  %v3616_v23 = vld [vmem:[#allocation9 + $0x5c8] sm:$0xff] }
 0x4f2   : > { %5194 = vmatmul.msk.f32.gmra.mxu2 %vm2840_vm1, %v3113_v26  ;;  %v3474_v26 = vld [vmem:[#allocation9 + $0x4e0] sm:$0xff] }
 0x4f3   : > { %5198 = vmatmul.msk.f32.gmra.mxu1 %vm2840_vm1, %v3258_v15  ;;  %3518 = vmatpush.msrb.mxu2 %v3455_v38  ;;  %v3472_v15 = vld [vmem:[#allocation9 + $0x4d0] sm:$0xff] }
 0x4f4   : > { %3479 = vmatpush.msra.mxu1 %v3474_v26  ;;  %v3621_v38 = vld [vmem:[#allocation9 + $0x5f0] sm:$0xff]  ;;  %v3594_v26 = vld [vmem:[#allocation9 + $0x518] sm:$0xff] }
 0x4f5   : > { %3519 = vmatpush.msrb.mxu2 %v3453_v43  ;;  %v3619_v43 = vld [vmem:[#allocation9 + $0x5e0] sm:$0xff] }
 0x4f6   : > { %3480 = vmatpush.msra.mxu1 %v3472_v15  ;;  %v3599_v15 = vld [vmem:[#allocation9 + $0x540] sm:$0xff] }
 0x4f7   : > { %3520 = vmatpush.msrb.mxu2 %v3451_v63  ;;  %v3617_v63 = vld [vmem:[#allocation9 + $0x5d0] sm:$0xff] }
 0x4f8   : > { %3481 = vmatpush.msra.mxu1 %v3470_v29 }
 0x4f9   : > { %3521 = vmatpush.msrb.mxu2 %v3449_v47  ;;  %v3610_v47 = vld [vmem:[#allocation9 + $0x598] sm:$0xff] }
 0x4fa   : > { %3482 = vmatpush.msra.mxu1 %v3468_v12 }
 0x4fb   : > { %3522 = vmatpush.msrb.mxu2 %v3447_v37  ;;  %v3608_v37 = vld [vmem:[#allocation9 + $0x588] sm:$0xff] }
 0x4fc   : > { %3483 = vmatpush.msra.mxu1 %v3466_v1  ;;  %v3597_v1 = vld [vmem:[#allocation9 + $0x530] sm:$0xff] }
 0x4fe   : > { %3484 = vmatpush.msra.mxu1 %v3464_v50  ;;  %v3595_v50 = vld [vmem:[#allocation9 + $0x520] sm:$0xff] }
 0x500   : > { %3485 = vmatpush.msra.mxu1 %v3462_v10  ;;  %v3593_v10 = vld [vmem:[#allocation9 + $0x510] sm:$0xff] }
 0x502   : > { %3486 = vmatpush.msra.mxu1 %v3460_v33  ;;  %v3591_v33 = vld [vmem:[#allocation9 + $0x500] sm:$0xff] }
 0x504   : > { %3487 = vmatpush.msra.mxu1 %v3458_v4 }
 0x506   : > { %3488 = vmatpush.msra.mxu1 %v3456_v57  ;;  %v3767_v57 = vld [vmem:[#allocation9 + $0x6f8] sm:$0xff] }
 0x508   : > { %3489 = vmatpush.msra.mxu1 %v3454_v25  ;;  %v3765_v25 = vld [vmem:[#allocation9 + $0x6e8] sm:$0xff] }
 0x50a   : > { %3490 = vmatpush.msra.mxu1 %v3452_v45 }
 0x50c   : > { %3491 = vmatpush.msra.mxu1 %v3450_v55 }
 0x50e   : > { %3492 = vmatpush.msra.mxu1 %v3448_v40  ;;  %v3761_v40 = vld [vmem:[#allocation9 + $0x6c8] sm:$0xff] }
 0x510   : > { %3493 = vmatpush.msra.mxu1 %v3446_v32 }
 0x512   : > { %3652 = vmatpush.msrb.mxu1 %v3622_v3  ;;  %v3759_v3 = vld [vmem:[#allocation9 + $0x6b8] sm:$0xff] }
 0x514   : > { %3653 = vmatpush.msrb.mxu1 %v3620_v48 }
 0x516   : > { %3654 = vmatpush.msrb.mxu1 %v3618_v34  ;;  %v3757_v34 = vld [vmem:[#allocation9 + $0x6a8] sm:$0xff] }
 0x518   : > { %3655 = vmatpush.msrb.mxu1 %v3616_v23  ;;  %v3755_v23 = vld [vmem:[#allocation9 + $0x698] sm:$0xff] }
 0x51a   : > { %3656 = vmatpush.msrb.mxu1 %v3614_v14 }
 0x51c   : > { %3657 = vmatpush.msrb.mxu1 %v3612_v19 }
 0x51e   : > { %3658 = vmatpush.msrb.mxu1 %v3610_v47 }
 0x520   : > { %3659 = vmatpush.msrb.mxu1 %v3608_v37  ;;  %v3751_v37 = vld [vmem:[#allocation9 + $0x678] sm:$0xff] }
 0x522   : > { %3660 = vmatpush.msrb.mxu1 %v3606_v6  ;;  %v3749_v6 = vld [vmem:[#allocation9 + $0x668] sm:$0xff] }
 0x537   : > { %v7300_v2 = vpop.f32.mrf.mxu0 }
 0x538   : > { %v7269_v56 = vpop.f32.mrf.mxu1 }
 0x53d   : > { %v7271_v31 = vpop.f32.mrf.mxu2 }
 0x53f   : > { %v7303_v36 = vpop.f32.mrf.mxu3  ;;  %v7305_v59 = vpop.f32.mrf.mxu0 }
 0x540   : > { %v7273_v54 = vpop.f32.mrf.mxu1 }
 0x545   : > { %v7275_v0 = vpop.f32.mrf.mxu2 }
 0x547   : > { %v7307_v5 = vpop.f32.mrf.mxu3  ;;  %v7309_v27 = vpop.f32.mrf.mxu0 }
 0x548   : > { %v7277_v49 = vpop.f32.mrf.mxu1 }
 0x54d   : > { %v7279_v24 = vpop.f32.mrf.mxu2 }
 0x550   : > { %v7281_v9 = vpop.f32.mrf.mxu1 }
 0x555   : > { %v7283_v20 = vpop.f32.mrf.mxu2 }
 0x558   : > { %v3288_v46 = vpop.f32.mrf.mxu1 }
 0x559   : > { %3349 = vmatmul.f32.vlgmr.msra.gmra.mxu2 %v3288_v46 }
 0x55a   : > { %3718 = vmatpush.msra.mxu2 %v7225_v7 }
 0x55c   : > { %3719 = vmatpush.msra.mxu2 %v7227_v17 }
 0x55d   : > { %v3143_v39 = vpop.f32.mrf.mxu2 }
 0x55e   : > { %3720 = vmatpush.msra.mxu2 %v7232_v44  ;;  %3204 = vmatmul.f32.vlgmr.msra.gmra.mxu3 %v3143_v39 }
 0x55f   : > { %3233 = vmatmul.f32.vlgmr.msra.gmra.mxu0 %v3143_v39  ;;  %3573 = vmatpush.msra.mxu3 %v7225_v7  ;;  %v3045_v39 = vpop.f32.mrf.mxu3 }
 0x560   : > { %3721 = vmatpush.msra.mxu2 %v7237_v8  ;;  %v3291_v52 = vpop.f32.mrf.mxu1  ;;  %3623 = vmatpush.msra.mxu0 %v3621_v38  ;;  %v3075_v38 = vadd.f32 %v7309_v27, %v7279_v24  ;;  %v3745_v24 = vld [vmem:[#allocation9 + $0x648] sm:$0xff]  ;;  %v3743_v27 = vld [vmem:[#allocation9 + $0x638] sm:$0xff] }
 0x561   : > { %3574 = vmatpush.msra.mxu3 %v7227_v17  ;;  %3352 = vmatmul.f32.gmra.mxu2 %v3291_v52 }
 0x562   : > { %3624 = vmatpush.msra.mxu0 %v3619_v43 }
 0x563   : > { %3575 = vmatpush.msra.mxu3 %v7232_v44 }
 0x564   : > { %3625 = vmatpush.msra.mxu0 %v3617_v63  ;;  %v3753_v63 = vld [vmem:[#allocation9 + $0x688] sm:$0xff] }
 0x565   : > { %3576 = vmatpush.msra.mxu3 %v7237_v8  ;;  %v3146_v21 = vpop.f32.mrf.mxu2 }
 0x566   : > { %3207 = vmatmul.f32.gmra.mxu3 %v3146_v21  ;;  %3626 = vmatpush.msra.mxu0 %v3615_v60 }
 0x567   : > { %3236 = vmatmul.f32.gmra.mxu0 %v3146_v21  ;;  %v3602_v21 = vld [vmem:[#allocation9 + $0x558] sm:$0xff]  ;;  %v3048_v51 = vpop.f32.mrf.mxu3 }
 0x568   : > { %v3294_v28 = vpop.f32.mrf.mxu1  ;;  %3627 = vmatpush.msra.mxu0 %v3613_v22  ;;  %v3107_v47 = vadd.f32 %v7281_v9, %v3048_v51  ;;  %v3741_v9 = vld [vmem:[#allocation9 + $0x628] sm:$0xff] }
 0x569   : > { %3355 = vmatmul.f32.gmra.mxu2 %v3294_v28 }
 0x56a   : > { %3628 = vmatpush.msra.mxu0 %v3611_v53  ;;  %v3747_v53 = vld [vmem:[#allocation9 + $0x658] sm:$0xff] }
 0x56d   : > { %v3149_v62 = vpop.f32.mrf.mxu2 }
 0x56e   : > { %3210 = vmatmul.f32.gmra.mxu3 %v3149_v62 }
 0x56f   : > { %3239 = vmatmul.f32.gmra.mxu0 %v3149_v62  ;;  %v7311_v62 = vpop.f32.mrf.mxu0 }
 0x570   : > { %v3297_v30 = vpop.f32.mrf.mxu1 }
 0x571   : > { %3358 = vmatmul.f32.gmra.mxu2 %v3297_v30 }
 0x575   : > { %v3152_v35 = vpop.f32.mrf.mxu2 }
 0x576   : > { %3213 = vmatmul.f32.gmra.mxu3 %v3152_v35 }
 0x577   : > { %3242 = vmatmul.f32.gmra.mxu0 %v3152_v35  ;;  %v3605_v35 = vld [vmem:[#allocation9 + $0x570] sm:$0xff] }
 0x57e   : > { %3378 = vmatmul.f32.vlgmr.msrb.gmra.mxu3 %v3288_v46  ;;  %v3604_v46 = vld [vmem:[#allocation9 + $0x568] sm:$0xff] }
 0x57f   : > { %5199 = vmatmul.msk.f32.vlgmr.msrb.gmra.mxu0 %vm2840_vm1, %v3400_v41  ;;  %3661 = vmatpush.msrb.mxu1 %v3604_v46  ;;  %v3598_v41 = vld [vmem:[#allocation9 + $0x538] sm:$0xff] }
 0x581   : > { %3662 = vmatpush.msrb.mxu1 %v3602_v21  ;;  %v3739_v21 = vld [vmem:[#allocation9 + $0x618] sm:$0xff] }
 0x586   : > { %3381 = vmatmul.f32.gmra.mxu3 %v3291_v52  ;;  %v3609_v52 = vld [vmem:[#allocation9 + $0x590] sm:$0xff] }
 0x587   : > { %5200 = vmatmul.msk.f32.gmra.mxu0 %vm2840_vm1, %v3401_v58  ;;  %v3603_v58 = vld [vmem:[#allocation9 + $0x560] sm:$0xff] }
 0x588   : > { %3629 = vmatpush.msra.mxu0 %v3609_v52  ;;  %v3098_v52 = vadd.f32 %v7269_v56, %v7303_v36  ;;  %v3101_v56 = vadd.f32 %v7273_v54, %v7307_v5  ;;  %v3691_v5 = vld [vmem:[#allocation7 + $0xc8] sm:$0xff] }
 0x58e   : > { %3384 = vmatmul.f32.gmra.mxu3 %v3294_v28  ;;  %v3607_v28 = vld [vmem:[#allocation9 + $0x580] sm:$0xff] }
 0x58f   : > { %5201 = vmatmul.msk.f32.gmra.mxu0 %vm2840_vm1, %v3402_v61  ;;  %v3596_v61 = vld [vmem:[#allocation9 + $0x528] sm:$0xff] }
 0x590   : > { %3630 = vmatpush.msra.mxu0 %v3607_v28 }
 0x592   : > { %3631 = vmatpush.msra.mxu0 %v3605_v35  ;;  %v3737_v35 = vld [vmem:[#allocation9 + $0x608] sm:$0xff] }
 0x594   : > { %3632 = vmatpush.msra.mxu0 %v3603_v58 }
 0x596   : > { %3387 = vmatmul.f32.gmra.mxu3 %v3297_v30  ;;  %v3600_v30 = vld [vmem:[#allocation9 + $0x548] sm:$0xff] }
 0x597   : > { %5202 = vmatmul.msk.f32.gmra.mxu0 %vm2840_vm1, %v3403_v11  ;;  %3663 = vmatpush.msrb.mxu1 %v3600_v30  ;;  %v3601_v11 = vld [vmem:[#allocation9 + $0x550] sm:$0xff] }
 0x598   : > { %3633 = vmatpush.msra.mxu0 %v3601_v11 }
 0x599   : > { %3664 = vmatpush.msrb.mxu1 %v3598_v41 }
 0x59a   : > { %3634 = vmatpush.msra.mxu0 %v3599_v15 }
 0x59b   : > { %3665 = vmatpush.msrb.mxu1 %v3596_v61 }
 0x59c   : > { %3635 = vmatpush.msra.mxu0 %v3597_v1 }
 0x59d   : > { %3666 = vmatpush.msrb.mxu1 %v3594_v26 }
 0x59e   : > { %5203 = vmatmul.msk.f32.vlgmr.msra.gmra.mxu3 %vm2840_vm1, %v3545_v13  ;;  %v3592_v13 = vld [vmem:[#allocation9 + $0x508] sm:$0xff]  ;;  %3636 = vmatpush.msra.mxu0 %v3595_v50  ;;  %v3690_v50 = vld [vmem:[#allocation7 + $0xc0] sm:$0xff] }
 0x59f   : > { %3667 = vmatpush.msrb.mxu1 %v3592_v13 }
 0x5a0   : > { %3637 = vmatpush.msra.mxu0 %v3593_v10 }
 0x5a2   : > { %3638 = vmatpush.msra.mxu0 %v3591_v33  ;;  %v3692_v33 = vld [vmem:[#allocation7 + $0xd0] sm:$0xff] }
 0x5a4   : > { %3797 = vmatpush.msrb.mxu0 %v3767_v57  ;;  %v3693_v57 = vld [vmem:[#allocation7 + $0xd8] sm:$0xff] }
 0x5a6   : > { %5204 = vmatmul.msk.f32.gmra.mxu3 %vm2840_vm1, %v3546_v42  ;;  %3798 = vmatpush.msrb.mxu0 %v3765_v25  ;;  %v3838_v25 = vld [vmem:[#allocation7 + $0xf8] sm:$0xff] }
 0x5ae   : > { %5205 = vmatmul.msk.f32.gmra.mxu3 %vm2840_vm1, %v3547_v16  ;;  %v3763_v16 = vld [vmem:[#allocation9 + $0x6d8] sm:$0xff] }
 0x5af   : > { %3799 = vmatpush.msrb.mxu0 %v3763_v16  ;;  %v3766_v16 = vld [vmem:[#allocation9 + $0x6f0] sm:$0xff] }
 0x5b0   : > { %3768 = vmatpush.msrb.mxu3 %v3766_v16 }
 0x5b1   : > { %3800 = vmatpush.msrb.mxu0 %v3761_v40  ;;  %v3764_v40 = vld [vmem:[#allocation9 + $0x6e0] sm:$0xff] }
 0x5b2   : > { %3769 = vmatpush.msrb.mxu3 %v3764_v40  ;;  %v3889_v40 = vld [vmem:[#allocation9 + $0x740] sm:$0xff] }
 0x5b3   : > { %3801 = vmatpush.msrb.mxu0 %v3759_v3  ;;  %v3758_v3 = vld [vmem:[#allocation9 + $0x6b0] sm:$0xff] }
 0x5b5   : > { %3802 = vmatpush.msrb.mxu0 %v3757_v34  ;;  %v3754_v34 = vld [vmem:[#allocation9 + $0x690] sm:$0xff] }
 0x5b6   : > { %5206 = vmatmul.msk.f32.gmra.mxu3 %vm2840_vm1, %v3548_v18  ;;  %v3104_v18 = vadd.f32 %v7277_v49, %v3045_v39 }
 0x5b7   : > { %3803 = vmatpush.msrb.mxu0 %v3755_v23  ;;  %v3752_v23 = vld [vmem:[#allocation9 + $0x680] sm:$0xff] }
 0x5b9   : > { %3804 = vmatpush.msrb.mxu0 %v3753_v63 }
 0x5bb   : > { %3805 = vmatpush.msrb.mxu0 %v3751_v37 }
 0x5bd   : > { %3806 = vmatpush.msrb.mxu0 %v3749_v6 }
 0x5bf   : > { %3807 = vmatpush.msrb.mxu0 %v3747_v53  ;;  %v3740_v53 = vld [vmem:[#allocation9 + $0x620] sm:$0xff] }
 0x5c1   : > { %3808 = vmatpush.msrb.mxu0 %v3745_v24  ;;  %v3072_v24 = vadd.f32 %v7305_v59, %v7275_v0  ;;  %v3910_v59 = vld [vmem:[#allocation9 + $0x7e8] sm:$0xff] }
 0x5c3   : > { %3809 = vmatpush.msrb.mxu0 %v3743_v27 }
 0x5c5   : > { %3810 = vmatpush.msrb.mxu0 %v3741_v9 }
 0x5c7   : > { %3811 = vmatpush.msrb.mxu0 %v3739_v21  ;;  %v3912_v21 = vld [vmem:[#allocation9 + $0x7f8] sm:$0xff] }
 0x5c9   : > { %3812 = vmatpush.msrb.mxu0 %v3737_v35  ;;  %v3908_v35 = vld [vmem:[#allocation9 + $0x7d8] sm:$0xff] }
 0x5dc   : > { %v3234_v29 = vpop.f32.mrf.mxu0  ;;  %v7313_v12 = vpop.f32.mrf.mxu2 }
 0x5dd   : > { %v3247_v28 = vadd.f32 %v3234_v29, %v3098_v52  ;;  %v3911_v52 = vld [vmem:[#allocation9 + $0x7f0] sm:$0xff] }
 0x5e1   : > { %v7315_v42 = vpop.f32.mrf.mxu3 }
 0x5e4   : > { %v7317_v4 = vpop.f32.mrf.mxu0  ;;  %v7319_v45 = vpop.f32.mrf.mxu2 }
 0x5e5   : > { %v3249_v36 = vadd.f32 %v7317_v4, %v3101_v56 }
 0x5e9   : > { %v7321_v55 = vpop.f32.mrf.mxu3 }
 0x5ec   : > { %v3240_v32 = vpop.f32.mrf.mxu0  ;;  %v3356_v43 = vpop.f32.mrf.mxu2 }
 0x5ed   : > { %v3251_v48 = vadd.f32 %v3240_v32, %v3104_v18  ;;  %v3762_v18 = vld [vmem:[#allocation9 + $0x6d0] sm:$0xff]  ;;  %v3760_v32 = vld [vmem:[#allocation9 + $0x6c0] sm:$0xff] }
 0x5ee   : > { %3770 = vmatpush.msrb.mxu3 %v3762_v18 }
 0x5f0   : > { %3771 = vmatpush.msrb.mxu3 %v3760_v32  ;;  %v3887_v32 = vld [vmem:[#allocation9 + $0x730] sm:$0xff] }
 0x5f1   : > { %v3211_v14 = vpop.f32.mrf.mxu3 }
 0x5f2   : > { %v3250_v19 = vadd.f32 %v3211_v14, %v3075_v38  ;;  %3772 = vmatpush.msrb.mxu3 %v3758_v3  ;;  %v3750_v38 = vld [vmem:[#allocation9 + $0x670] sm:$0xff]  ;;  %v3069_v14 = vadd.f32 %v7300_v2, %v7271_v31  ;;  %v3248_v2 = vadd.f32 %v7321_v55, %v3072_v24  ;;  %v3888_v3 = vld [vmem:[#allocation9 + $0x738] sm:$0xff] }
 0x5f3   : > { %v3738_v31 = vld [vmem:[#allocation9 + $0x610] sm:$0xff] }
 0x5f4   : > { %v3243_v49 = vpop.f32.mrf.mxu0  ;;  %v7327_v60 = vadd.f32 %v3356_v43, %v3250_v19  ;;  %v3748_v43 = vld [vmem:[#allocation9 + $0x660] sm:$0xff]  ;;  %v3746_v19 = vld [vmem:[#allocation9 + $0x650] sm:$0xff]  ;;  %v3246_v63 = vadd.f32 %v7315_v42, %v3069_v14  ;;  %v3393_v9 = vadd.f32 %v7319_v45, %v3248_v2 }
 0x5f5   : > { %v3253_v22 = vadd.f32 %v3243_v49, %v3107_v47  ;;  %v3359_v47 = vpop.f32.mrf.mxu2  ;;  %v3744_v49 = vld [vmem:[#allocation9 + $0x640] sm:$0xff]  ;;  %v3907_v55 = vld [vmem:[#allocation9 + $0x7d0] sm:$0xff] }
 0x5f6   : > { %v3391_v37 = vadd.f32 %v7313_v12, %v3246_v63  ;;  %v3882_v63 = vld [vmem:[#allocation9 + $0x708] sm:$0xff] }
 0x5f9   : > { %v7329_v46 = vpop.f32.mrf.mxu3 }
 0x5fc   : > { %v3433_v39 = vpop.f32.mrf.mxu0 }
 0x5fd   : > { %3494 = vmatmul.f32.vlgmr.msra.gmra.mxu1 %v3433_v39  ;;  %3523 = vmatmul.f32.vlgmr.msrb.gmra.mxu2 %v3433_v39  ;;  %v3736_v39 = vld [vmem:[#allocation9 + $0x600] sm:$0xff] }
 0x5fe   : > { %3863 = vmatpush.msra.mxu1 %v7225_v7  ;;  %3913 = vmatpush.msrb.mxu2 %v3911_v52 }
 0x600   : > { %3864 = vmatpush.msra.mxu1 %v7227_v17 }
 0x601   : > { %v3379_v30 = vpop.f32.mrf.mxu3 }
 0x602   : > { %3865 = vmatpush.msra.mxu1 %v7232_v44  ;;  %v7336_v41 = vadd.f32 %v3379_v30, %v3247_v28  ;;  %v3909_v28 = vld [vmem:[#allocation9 + $0x7e0] sm:$0xff] }
 0x603   : > { %3914 = vmatpush.msrb.mxu2 %v3909_v28 }
 0x604   : > { %3866 = vmatpush.msra.mxu1 %v7237_v8  ;;  %v3436_v58 = vpop.f32.mrf.mxu0 }
 0x605   : > { %3497 = vmatmul.f32.gmra.mxu1 %v3436_v58  ;;  %3526 = vmatmul.f32.gmra.mxu2 %v3436_v58  ;;  %v3905_v58 = vld [vmem:[#allocation9 + $0x7c0] sm:$0xff] }
 0x606   : > { %3915 = vmatpush.msrb.mxu2 %v3907_v55 }
 0x608   : > { %3916 = vmatpush.msrb.mxu2 %v3905_v58  ;;  %v4056_v58 = vld [vmem:[#allocation9 + $0x8f0] sm:$0xff] }
 0x609   : > { %v3382_v61 = vpop.f32.mrf.mxu3 }
 0x60a   : > { %v7342_v11 = vadd.f32 %v3382_v61, %v3249_v36  ;;  %v3903_v36 = vld [vmem:[#allocation9 + $0x7b0] sm:$0xff]  ;;  %v3904_v61 = vld [vmem:[#allocation9 + $0x7b8] sm:$0xff] }
 0x60b   : > { %3917 = vmatpush.msrb.mxu2 %v3903_v36  ;;  %v4055_v36 = vld [vmem:[#allocation9 + $0x8e8] sm:$0xff] }
 0x60c   : > { %v3439_v51 = vpop.f32.mrf.mxu0 }
 0x60d   : > { %3500 = vmatmul.f32.gmra.mxu1 %v3439_v51  ;;  %3529 = vmatmul.f32.gmra.mxu2 %v3439_v51 }
 0x611   : > { %v3385_v26 = vpop.f32.mrf.mxu3 }
 0x612   : > { %v7344_v15 = vadd.f32 %v3385_v26, %v3251_v48  ;;  %v3756_v48 = vld [vmem:[#allocation9 + $0x6a0] sm:$0xff] }
 0x613   : > { %3773 = vmatpush.msrb.mxu3 %v3756_v48  ;;  %v3901_v26 = vld [vmem:[#allocation9 + $0x7a0] sm:$0xff] }
 0x614   : > { %v3442_v29 = vpop.f32.mrf.mxu0  ;;  %3918 = vmatpush.msrb.mxu2 %v3901_v26  ;;  %v3885_v48 = vld [vmem:[#allocation9 + $0x720] sm:$0xff] }
 0x615   : > { %3503 = vmatmul.f32.gmra.mxu1 %v3442_v29  ;;  %3532 = vmatmul.f32.gmra.mxu2 %v3442_v29  ;;  %v3902_v29 = vld [vmem:[#allocation9 + $0x7a8] sm:$0xff]  ;;  %v4050_v26 = vld [vmem:[#allocation9 + $0x8c0] sm:$0xff] }
 0x616   : > { %3774 = vmatpush.msrb.mxu3 %v3754_v34  ;;  %v3886_v34 = vld [vmem:[#allocation9 + $0x728] sm:$0xff] }
 0x618   : > { %3775 = vmatpush.msrb.mxu3 %v3752_v23  ;;  %v3883_v23 = vld [vmem:[#allocation9 + $0x710] sm:$0xff] }
 0x619   : > { %v3388_v13 = vpop.f32.mrf.mxu3 }
 0x61a   : > { %v7346_v1 = vadd.f32 %v3388_v13, %v3253_v22  ;;  %3776 = vmatpush.msrb.mxu3 %v3750_v38  ;;  %v3742_v22 = vld [vmem:[#allocation9 + $0x630] sm:$0xff]  ;;  %v3078_v13 = vadd.f32 %v7311_v62, %v7283_v20  ;;  %v3896_v62 = vld [vmem:[#allocation9 + $0x778] sm:$0xff] }
 0x61b   : > { %v3895_v20 = vld [vmem:[#allocation9 + $0x770] sm:$0xff]  ;;  %v3884_v38 = vld [vmem:[#allocation9 + $0x718] sm:$0xff] }
 0x61c   : > { %3777 = vmatpush.msrb.mxu3 %v3748_v43 }
 0x61d   : > { %5207 = vmatmul.msk.f32.vlgmr.msra.gmra.mxu2 %vm2840_vm1, %v3690_v50 }
 0x61e   : > { %3778 = vmatpush.msrb.mxu3 %v3746_v19  ;;  %v3881_v19 = vld [vmem:[#allocation9 + $0x700] sm:$0xff] }
 0x620   : > { %3779 = vmatpush.msrb.mxu3 %v3744_v49 }
 0x621   : > { %v3578_v54 = vpop.f32.mrf.mxu3 }
 0x622   : > { %3639 = vmatmul.f32.vlgmr.msra.gmra.mxu0 %v3578_v54  ;;  %3668 = vmatmul.f32.vlgmr.msrb.gmra.mxu1 %v3578_v54  ;;  %v3899_v54 = vld [vmem:[#allocation9 + $0x790] sm:$0xff] }
 0x623   : > { %4008 = vmatpush.msra.mxu0 %v7225_v7  ;;  %3780 = vmatpush.msrb.mxu3 %v3742_v22 }
 0x624   : > { %3919 = vmatpush.msrb.mxu2 %v3899_v54  ;;  %4058 = vmatpush.msrb.mxu1 %v4056_v58  ;;  %v4046_v54 = vld [vmem:[#allocation9 + $0x8a0] sm:$0xff] }
 0x625   : > { %5208 = vmatmul.msk.f32.gmra.mxu2 %vm2840_vm1, %v3691_v5  ;;  %4009 = vmatpush.msra.mxu0 %v7227_v17  ;;  %v3835_v17 = vld [vmem:[#allocation7 + $0xe0] sm:$0xff]  ;;  %v3900_v5 = vld [vmem:[#allocation9 + $0x798] sm:$0xff] }
 0x626   : > { %3781 = vmatpush.msrb.mxu3 %v3740_v53 }
 0x627   : > { %4010 = vmatpush.msra.mxu0 %v7232_v44  ;;  %v3836_v44 = vld [vmem:[#allocation7 + $0xe8] sm:$0xff] }
 0x628   : > { %3782 = vmatpush.msrb.mxu3 %v3738_v31 }
 0x629   : > { %4011 = vmatpush.msra.mxu0 %v7237_v8  ;;  %v3581_v10 = vpop.f32.mrf.mxu3  ;;  %v3837_v8 = vld [vmem:[#allocation7 + $0xf0] sm:$0xff] }
 0x62a   : > { %3642 = vmatmul.f32.gmra.mxu0 %v3581_v10  ;;  %3671 = vmatmul.f32.gmra.mxu1 %v3581_v10 }
 0x62b   : > { %3783 = vmatpush.msrb.mxu3 %v3736_v39 }
 0x62d   : > { %5209 = vmatmul.msk.f32.gmra.mxu2 %vm2840_vm1, %v3692_v33  ;;  %3942 = vmatpush.msra.mxu3 %v3912_v21  ;;  %v3897_v33 = vld [vmem:[#allocation9 + $0x780] sm:$0xff] }
 0x62e   : > { %3920 = vmatpush.msrb.mxu2 %v3897_v33  ;;  %v3980_v21 = vld [vmem:[#allocation7 + $0x100] sm:$0xff] }
 0x62f   : > { %3943 = vmatpush.msra.mxu3 %v3910_v59  ;;  %v4042_v33 = vld [vmem:[#allocation9 + $0x880] sm:$0xff] }
 0x630   : > { %3921 = vmatpush.msrb.mxu2 %v3895_v20  ;;  %v4038_v20 = vld [vmem:[#allocation9 + $0x860] sm:$0xff] }
 0x631   : > { %v3584_v4 = vpop.f32.mrf.mxu3  ;;  %3944 = vmatpush.msra.mxu3 %v3908_v35  ;;  %v3983_v35 = vld [vmem:[#allocation7 + $0x118] sm:$0xff] }
 0x632   : > { %3645 = vmatmul.f32.gmra.mxu0 %v3584_v4  ;;  %3674 = vmatmul.f32.gmra.mxu1 %v3584_v4  ;;  %v3898_v4 = vld [vmem:[#allocation9 + $0x788] sm:$0xff] }
 0x635   : > { %5210 = vmatmul.msk.f32.gmra.mxu2 %vm2840_vm1, %v3693_v57 }
 0x639   : > { %v3587_v7 = vpop.f32.mrf.mxu3 }
 0x63a   : > { %3648 = vmatmul.f32.gmra.mxu0 %v3587_v7  ;;  %3677 = vmatmul.f32.gmra.mxu1 %v3587_v7 }
 0x642   : > { %5211 = vmatmul.msk.f32.vlgmr.msra.gmra.mxu1 %vm2840_vm1, %v3835_v17  ;;  %v3893_v17 = vld [vmem:[#allocation9 + $0x760] sm:$0xff] }
 0x643   : > { %3922 = vmatpush.msrb.mxu2 %v3893_v17  ;;  %v4037_v17 = vld [vmem:[#allocation9 + $0x858] sm:$0xff] }
 0x64a   : > { %5212 = vmatmul.msk.f32.gmra.mxu1 %vm2840_vm1, %v3836_v44  ;;  %v3894_v44 = vld [vmem:[#allocation9 + $0x768] sm:$0xff] }
 0x652   : > { %5213 = vmatmul.msk.f32.gmra.mxu1 %vm2840_vm1, %v3837_v8 }
 0x65a   : > { %5214 = vmatmul.msk.f32.gmra.mxu1 %vm2840_vm1, %v3838_v25  ;;  %v3892_v25 = vld [vmem:[#allocation9 + $0x758] sm:$0xff] }
 0x67a   : > { %v3495_v6 = vpop.f32.mrf.mxu1 }
 0x67b   : > { %v7366_v27 = vadd.f32 %v3495_v6, %v3391_v37 }
 0x680   : > { %v3524_v42 = vpop.f32.mrf.mxu2 }
 0x681   : > { %v7371_v12 = vadd.f32 %v3524_v42, %v7336_v41  ;;  %v3906_v41 = vld [vmem:[#allocation9 + $0x7c8] sm:$0xff] }
 0x682   : > { %v3498_v0 = vpop.f32.mrf.mxu1  ;;  %3945 = vmatpush.msra.mxu3 %v3906_v41  ;;  %v4057_v41 = vld [vmem:[#allocation9 + $0x8f8] sm:$0xff] }
 0x683   : > { %v7373_v30 = vadd.f32 %v3498_v0, %v3393_v9  ;;  %v3981_v0 = vld [vmem:[#allocation7 + $0x108] sm:$0xff] }
 0x684   : > { %3946 = vmatpush.msra.mxu3 %v3904_v61  ;;  %v4052_v61 = vld [vmem:[#allocation9 + $0x8d0] sm:$0xff] }
 0x686   : > { %3947 = vmatpush.msra.mxu3 %v3902_v29  ;;  %v4051_v29 = vld [vmem:[#allocation9 + $0x8c8] sm:$0xff] }
 0x688   : > { %v3527_v45 = vpop.f32.mrf.mxu2  ;;  %3948 = vmatpush.msra.mxu3 %v3900_v5  ;;  %v4047_v5 = vld [vmem:[#allocation9 + $0x8a8] sm:$0xff] }
 0x689   : > { %v7376_v56 = vadd.f32 %v3527_v45, %v7342_v11  ;;  %v3252_v11 = vadd.f32 %v7329_v46, %v3078_v13  ;;  %v3891_v46 = vld [vmem:[#allocation9 + $0x750] sm:$0xff] }
 0x68a   : > { %v3501_v51 = vpop.f32.mrf.mxu1  ;;  %3949 = vmatpush.msra.mxu3 %v3898_v4  ;;  %3923 = vmatpush.msrb.mxu2 %v3891_v46  ;;  %v4048_v13 = vld [vmem:[#allocation9 + $0x8b0] sm:$0xff]  ;;  %v4043_v4 = vld [vmem:[#allocation9 + $0x888] sm:$0xff]  ;;  %v4034_v46 = vld [vmem:[#allocation9 + $0x840] sm:$0xff] }
 0x68b   : > { %v7381_v50 = vadd.f32 %v3501_v51, %v7327_v60  ;;  %v3397_v57 = vadd.f32 %v3359_v47, %v3252_v11  ;;  %v4053_v51 = vld [vmem:[#allocation9 + $0x8d8] sm:$0xff]  ;;  %v4044_v11 = vld [vmem:[#allocation9 + $0x890] sm:$0xff] }
 0x68c   : > { %3950 = vmatpush.msra.mxu3 %v3896_v62  ;;  %3924 = vmatpush.msrb.mxu2 %v3889_v40  ;;  %v4039_v62 = vld [vmem:[#allocation9 + $0x868] sm:$0xff]  ;;  %v4033_v40 = vld [vmem:[#allocation9 + $0x838] sm:$0xff] }
 0x68e   : > { %3951 = vmatpush.msra.mxu3 %v3894_v44  ;;  %3925 = vmatpush.msrb.mxu2 %v3887_v32  ;;  %v4028_v32 = vld [vmem:[#allocation9 + $0x810] sm:$0xff] }
 0x690   : > { %v3530_v10 = vpop.f32.mrf.mxu2  ;;  %3952 = vmatpush.msra.mxu3 %v3892_v25  ;;  %3926 = vmatpush.msrb.mxu2 %v3885_v48  ;;  %v4035_v25 = vld [vmem:[#allocation9 + $0x848] sm:$0xff] }
 0x691   : > { %v3541_v7 = vadd.f32 %v3530_v10, %v7344_v15  ;;  %v3890_v15 = vld [vmem:[#allocation9 + $0x748] sm:$0xff]  ;;  %v4045_v10 = vld [vmem:[#allocation9 + $0x898] sm:$0xff] }
 0x692   : > { %v3504_v60 = vpop.f32.mrf.mxu1  ;;  %3953 = vmatpush.msra.mxu3 %v3890_v15  ;;  %3927 = vmatpush.msrb.mxu2 %v3883_v23  ;;  %v4030_v15 = vld [vmem:[#allocation9 + $0x820] sm:$0xff]  ;;  %v4027_v23 = vld [vmem:[#allocation9 + $0x808] sm:$0xff] }
 0x693   : > { %v7385_v8 = vadd.f32 %v3504_v60, %v3397_v57  ;;  %v4040_v57 = vld [vmem:[#allocation9 + $0x870] sm:$0xff] }
 0x694   : > { %3954 = vmatpush.msra.mxu3 %v3888_v3  ;;  %3928 = vmatpush.msrb.mxu2 %v3881_v19  ;;  %v4036_v60 = vld [vmem:[#allocation9 + $0x850] sm:$0xff]  ;;  %v4029_v3 = vld [vmem:[#allocation9 + $0x818] sm:$0xff] }
 0x696   : > { %3955 = vmatpush.msra.mxu3 %v3886_v34  ;;  %4087 = vmatpush.msra.mxu2 %v4057_v41  ;;  %v4026_v34 = vld [vmem:[#allocation9 + $0x800] sm:$0xff] }
 0x698   : > { %v3533_v16 = vpop.f32.mrf.mxu2  ;;  %3956 = vmatpush.msra.mxu3 %v3884_v38  ;;  %4088 = vmatpush.msra.mxu2 %v4055_v36 }
 0x699   : > { %v3543_v18 = vadd.f32 %v3533_v16, %v7346_v1  ;;  %v4032_v16 = vld [vmem:[#allocation9 + $0x830] sm:$0xff] }
 0x69a   : > { %3957 = vmatpush.msra.mxu3 %v3882_v63  ;;  %4089 = vmatpush.msra.mxu2 %v4053_v51 }
 0x69c   : > { %4090 = vmatpush.msra.mxu2 %v4051_v29 }
 0x69f   : > { %v3640_v14 = vpop.f32.mrf.mxu0  ;;  %v3669_v43 = vpop.f32.mrf.mxu1 }
 0x6a0   : > { %v7389_v1 = vadd.f32 %v3640_v14, %v7366_v27  ;;  %v7392_v47 = vadd.f32 %v3669_v43, %v7371_v12  ;;  %v3723_v49 = vpop.f32.mrf.mxu2 }
 0x6a1   : > { %3784 = vmatmul.f32.vlgmr.msrb.gmra.mxu3 %v3723_v49  ;;  %3813 = vmatmul.f32.vlgmr.msrb.gmra.mxu0 %v3723_v49 }
 0x6a7   : > { %v3643_v37 = vpop.f32.mrf.mxu0  ;;  %v3672_v22 = vpop.f32.mrf.mxu1 }
 0x6a8   : > { %v7395_v6 = vadd.f32 %v3643_v37, %v7373_v30  ;;  %v7398_v53 = vadd.f32 %v3672_v22, %v7376_v56  ;;  %v3726_v24 = vpop.f32.mrf.mxu2  ;;  %v3982_v30 = vld [vmem:[#allocation7 + $0x110] sm:$0xff]  ;;  %v4054_v56 = vld [vmem:[#allocation9 + $0x8e0] sm:$0xff] }
 0x6a9   : > { %3787 = vmatmul.f32.gmra.mxu3 %v3726_v24  ;;  %3816 = vmatmul.f32.gmra.mxu0 %v3726_v24 }
 0x6aa   : > { %4059 = vmatpush.msrb.mxu1 %v4054_v56 }
 0x6ac   : > { %4060 = vmatpush.msrb.mxu1 %v4052_v61 }
 0x6ae   : > { %4061 = vmatpush.msrb.mxu1 %v4050_v26 }
 0x6af   : > { %v3646_v27 = vpop.f32.mrf.mxu0  ;;  %v3675_v31 = vpop.f32.mrf.mxu1 }
 0x6b0   : > { %v7401_v2 = vadd.f32 %v3646_v27, %v7381_v50  ;;  %v7403_v42 = vadd.f32 %v3675_v31, %v3541_v7  ;;  %v3729_v39 = vpop.f32.mrf.mxu2  ;;  %v4049_v50 = vld [vmem:[#allocation9 + $0x8b8] sm:$0xff]  ;;  %4062 = vmatpush.msrb.mxu1 %v4048_v13 }
 0x6b1   : > { %3790 = vmatmul.f32.gmra.mxu3 %v3729_v39  ;;  %3819 = vmatmul.f32.gmra.mxu0 %v3729_v39  ;;  %v4041_v7 = vld [vmem:[#allocation9 + $0x878] sm:$0xff] }
 0x6b2   : > { %4091 = vmatpush.msra.mxu2 %v4049_v50  ;;  %4063 = vmatpush.msrb.mxu1 %v4046_v54 }
 0x6b4   : > { %4092 = vmatpush.msra.mxu2 %v4047_v5  ;;  %4064 = vmatpush.msrb.mxu1 %v4044_v11 }
 0x6b6   : > { %4093 = vmatpush.msra.mxu2 %v4045_v10  ;;  %4065 = vmatpush.msrb.mxu1 %v4042_v33 }
 0x6b7   : > { %v3678_v9 = vpop.f32.mrf.mxu1  ;;  %v7411_v44 = vpop.f32.mrf.mxu0 }
 0x6b8   : > { %v7405_v12 = vadd.f32 %v3678_v9, %v3543_v18  ;;  %v3732_v52 = vpop.f32.mrf.mxu2  ;;  %4094 = vmatpush.msra.mxu2 %v4043_v4  ;;  %4066 = vmatpush.msrb.mxu1 %v4040_v57  ;;  %v4031_v18 = vld [vmem:[#allocation9 + $0x828] sm:$0xff] }
 0x6b9   : > { %3793 = vmatmul.f32.gmra.mxu3 %v3732_v52  ;;  %3822 = vmatmul.f32.gmra.mxu0 %v3732_v52 }
 0x6ba   : > { %4095 = vmatpush.msra.mxu2 %v4041_v7  ;;  %4067 = vmatpush.msrb.mxu1 %v4038_v20 }
 0x6bc   : > { %4096 = vmatpush.msra.mxu2 %v4039_v62  ;;  %4068 = vmatpush.msrb.mxu1 %v4036_v60 }
 0x6be   : > { %4097 = vmatpush.msra.mxu2 %v4037_v17  ;;  %4069 = vmatpush.msrb.mxu1 %v4034_v46 }
 0x6bf   : > { %v3868_v28 = vpop.f32.mrf.mxu1 }
 0x6c0   : > { %3929 = vmatmul.f32.vlgmr.msrb.gmra.mxu2 %v3868_v28  ;;  %4070 = vmatpush.msrb.mxu1 %v4032_v16  ;;  %v3687_v16 = vadd.f32 %v7411_v44, %v7385_v8 }
 0x6c1   : > { %3958 = vmatmul.f32.vlgmr.msra.gmra.mxu3 %v3868_v28  ;;  %5215 = vmatmul.msk.f32.vlgmr.msra.gmra.mxu0 %vm2840_vm1, %v3980_v21 }
 0x6c2   : > { %4098 = vmatpush.msra.mxu2 %v4035_v25  ;;  %4071 = vmatpush.msrb.mxu1 %v4030_v15 }
 0x6c4   : > { %4099 = vmatpush.msra.mxu2 %v4033_v40  ;;  %4072 = vmatpush.msrb.mxu1 %v4028_v32 }
 0x6c6   : > { %4100 = vmatpush.msra.mxu2 %v4031_v18  ;;  %4073 = vmatpush.msrb.mxu1 %v4026_v34 }
 0x6c7   : > { %v3871_v59 = vpop.f32.mrf.mxu1 }
 0x6c8   : > { %3932 = vmatmul.f32.gmra.mxu2 %v3871_v59 }
 0x6c9   : > { %3961 = vmatmul.f32.gmra.mxu3 %v3871_v59  ;;  %5216 = vmatmul.msk.f32.gmra.mxu0 %vm2840_vm1, %v3981_v0 }
 0x6ca   : > { %4101 = vmatpush.msra.mxu2 %v4029_v3 }
 0x6cc   : > { %4102 = vmatpush.msra.mxu2 %v4027_v23 }
 0x6cf   : > { %v3874_v55 = vpop.f32.mrf.mxu1 }
 0x6d0   : > { %3935 = vmatmul.f32.gmra.mxu2 %v3874_v55 }
 0x6d1   : > { %3964 = vmatmul.f32.gmra.mxu3 %v3874_v55  ;;  %5217 = vmatmul.msk.f32.gmra.mxu0 %vm2840_vm1, %v3982_v30  ;;  %v4124_v30 = vld [vmem:[#allocation10] sm:$0x3] }
 0x6d2   : > { %v4127_v41 = vperm.slane %v4124_v30, 1 }
 0x6d7   : > { %v3877_v45 = vpop.f32.mrf.mxu1 }
 0x6d8   : > { %3938 = vmatmul.f32.gmra.mxu2 %v3877_v45 }
 0x6d9   : > { %3967 = vmatmul.f32.gmra.mxu3 %v3877_v45  ;;  %5218 = vmatmul.msk.f32.gmra.mxu0 %vm2840_vm1, %v3983_v35  ;;  %v4126_v45 = vperm.slane %v4124_v30, 0  ;;  %v4265_v30 = vld [vmem:[#allocation13 + $0x68] sm:$0xff] }
 0x71e   : > { %v3814_v48 = vpop.f32.mrf.mxu0 }
 0x71f   : > { %v3827_v38 = vadd.f32 %v3814_v48, %v7392_v47 }
 0x726   : > { %v3817_v14 = vpop.f32.mrf.mxu0 }
 0x727   : > { %v3829_v43 = vadd.f32 %v3817_v14, %v7398_v53  ;;  %v3785_v53 = vpop.f32.mrf.mxu3 }
 0x728   : > { %v3826_v0 = vadd.f32 %v3785_v53, %v7389_v1 }
 0x72e   : > { %v3820_v19 = vpop.f32.mrf.mxu0 }
 0x72f   : > { %v3831_v63 = vadd.f32 %v3820_v19, %v7403_v42  ;;  %v3788_v31 = vpop.f32.mrf.mxu3 }
 0x730   : > { %v3828_v61 = vadd.f32 %v3788_v31, %v7395_v6  ;;  %v4344_v31 = vld [vmem:[#allocation13 + $0x178] sm:$0xff] }
 0x731   : > { %4347 = vmatpush.msrb.mxu2 %v4344_v31  ;;  %v4504_v31 = vld [vmem:[#allocation13 + $0x378] sm:$0xff] }
 0x736   : > { %v3823_v49 = vpop.f32.mrf.mxu0 }
 0x737   : > { %v7417_v37 = vadd.f32 %v3823_v49, %v7405_v12  ;;  %v3791_v42 = vpop.f32.mrf.mxu3 }
 0x738   : > { %v3830_v4 = vadd.f32 %v3791_v42, %v7401_v2  ;;  %v4343_v42 = vld [vmem:[#allocation13 + $0x170] sm:$0xff] }
 0x739   : > { %4348 = vmatpush.msrb.mxu2 %v4343_v42  ;;  %v4253_v42 = vld [vmem:[#allocation13 + $0x8] sm:$0xff] }
 0x73e   : > { %v4013_v22 = vpop.f32.mrf.mxu0 }
 0x73f   : > { %4074 = vmatmul.f32.vlgmr.msrb.gmra.mxu1 %v4013_v22  ;;  %4103 = vmatmul.f32.vlgmr.msra.gmra.mxu2 %v4013_v22  ;;  %v3794_v52 = vpop.f32.mrf.mxu3 }
 0x740   : > { %v3832_v32 = vadd.f32 %v3794_v52, %v3687_v16  ;;  %v4342_v52 = vld [vmem:[#allocation13 + $0x168] sm:$0xff]  ;;  %v4383_v16 = vld [vmem:[#allocation13 + $0x1f0] sm:$0xff] }
 0x741   : > { %4349 = vmatpush.msrb.mxu2 %v4342_v52  ;;  %v4424_v52 = vld [vmem:[#allocation13 + $0x278] sm:$0xff] }
 0x743   : > { %v3930_v39 = vpop.f32.mrf.mxu2 }
 0x744   : > { %v3971_v55 = vadd.f32 %v3930_v39, %v3826_v0  ;;  %v4284_v39 = vld [vmem:[#allocation13 + $0xf8] sm:$0xff]  ;;  %v4341_v0 = vld [vmem:[#allocation13 + $0x160] sm:$0xff] }
 0x745   : > { %4288 = vmatpush.msrb.mxu0 %v4284_v39  ;;  %4350 = vmatpush.msrb.mxu2 %v4341_v0  ;;  %v4269_v39 = vld [vmem:[#allocation13 + $0x80] sm:$0xff]  ;;  %v4423_v0 = vld [vmem:[#allocation13 + $0x270] sm:$0xff] }
 0x746   : > { %v4016_v24 = vpop.f32.mrf.mxu0 }
 0x747   : > { %4077 = vmatmul.f32.gmra.mxu1 %v4016_v24  ;;  %4106 = vmatmul.f32.gmra.mxu2 %v4016_v24  ;;  %v3959_v21 = vpop.f32.mrf.mxu3 }
 0x748   : > { %v3972_v58 = vadd.f32 %v3959_v21, %v3827_v38  ;;  %v4282_v21 = vld [vmem:[#allocation13 + $0xe8] sm:$0xff] }
 0x74b   : > { %v3933_v9 = vpop.f32.mrf.mxu2 }
 0x74c   : > { %v3973_v13 = vadd.f32 %v3933_v9, %v3828_v61  ;;  %v4267_v9 = vld [vmem:[#allocation13 + $0x78] sm:$0xff]  ;;  %v4278_v61 = vld [vmem:[#allocation13 + $0xc8] sm:$0xff] }
 0x74d   : > { %4308 = vmatpush.msra.mxu1 %v4267_v9  ;;  %v4252_v9 = vld [vmem:[#allocation13] sm:$0xff] }
 0x74e   : > { %v4019_v27 = vpop.f32.mrf.mxu0 }
 0x74f   : > { %4080 = vmatmul.f32.gmra.mxu1 %v4019_v27  ;;  %4109 = vmatmul.f32.gmra.mxu2 %v4019_v27  ;;  %v3962_v56 = vpop.f32.mrf.mxu3 }
 0x750   : > { %v3974_v1 = vadd.f32 %v3962_v56, %v3829_v43  ;;  %v4263_v56 = vld [vmem:[#allocation13 + $0x58] sm:$0xff] }
 0x753   : > { %v3936_v12 = vpop.f32.mrf.mxu2 }
 0x754   : > { %v3975_v60 = vadd.f32 %v3936_v12, %v3830_v4  ;;  %v4150_v12 = vld [vmem:[#allocation12] sm:$0xff]  ;;  %v4259_v4 = vld [vmem:[#allocation13 + $0x38] sm:$0xff] }
 0x756   : > { %v4022_v47 = vpop.f32.mrf.mxu0 }
 0x757   : > { %4083 = vmatmul.f32.gmra.mxu1 %v4022_v47  ;;  %4112 = vmatmul.f32.gmra.mxu2 %v4022_v47  ;;  %v3965_v20 = vpop.f32.mrf.mxu3 }
 0x758   : > { %v3976_v40 = vadd.f32 %v3965_v20, %v3831_v63  ;;  %v4201_v20 = vld [vmem:[#allocation12 + $0x10] sm:$0xff] }
 0x75b   : > { %v3939_v28 = vpop.f32.mrf.mxu2 }
 0x75c   : > { %v3977_v34 = vadd.f32 %v3939_v28, %v3832_v32  ;;  %v4266_v28 = vld [vmem:[#allocation13 + $0x70] sm:$0xff]  ;;  %v4380_v32 = vld [vmem:[#allocation13 + $0x1d8] sm:$0xff] }
 0x75d   : > { %4309 = vmatpush.msra.mxu1 %v4266_v28  ;;  %v4503_v28 = vld [vmem:[#allocation13 + $0x370] sm:$0xff] }
 0x75f   : > { %v3968_v38 = vpop.f32.mrf.mxu3  ;;  %4310 = vmatpush.msra.mxu1 %v4265_v30  ;;  %v4502_v30 = vld [vmem:[#allocation13 + $0x368] sm:$0xff] }
 0x760   : > { %v3978_v49 = vadd.f32 %v3968_v38, %v7417_v37  ;;  %v4283_v37 = vld [vmem:[#allocation13 + $0xf0] sm:$0xff]  ;;  %v4373_v38 = vld [vmem:[#allocation13 + $0x1a0] sm:$0xff] }
 0x761   : > { %4289 = vmatpush.msrb.mxu0 %v4283_v37  ;;  %v4369_v37 = vld [vmem:[#allocation13 + $0x180] sm:$0xff] }
 0x763   : > { %4290 = vmatpush.msrb.mxu0 %v4282_v21  ;;  %v4464_v21 = vld [vmem:[#allocation13 + $0x2f8] sm:$0xff] }
 0x7bc   : > { %v4075_v59 = vpop.f32.mrf.mxu1 }
 0x7bd   : > { %v4116_v35 = vadd.f32 %v4075_v59, %v3971_v55  ;;  %v4281_v59 = vld [vmem:[#allocation13 + $0xe0] sm:$0xff]  ;;  %v4340_v55 = vld [vmem:[#allocation13 + $0x158] sm:$0xff] }
 0x7be   : > { %4291 = vmatpush.msrb.mxu0 %v4281_v59  ;;  %4351 = vmatpush.msrb.mxu2 %v4340_v55  ;;  %v4543_v59 = vld [vmem:[#allocation13 + $0x3f0] sm:$0xff]  ;;  %v4422_v55 = vld [vmem:[#allocation13 + $0x268] sm:$0xff] }
 0x7bf   : > { %v4130_v51 = vadd.f32 %v4126_v45, %v4116_v35  ;;  %v4280_v35 = vld [vmem:[#allocation13 + $0xd8] sm:$0xff] }
 0x7c0   : > { %4292 = vmatpush.msrb.mxu0 %v4280_v35  ;;  %v4463_v35 = vld [vmem:[#allocation13 + $0x2f0] sm:$0xff] }
 0x7c1   : > { %v4138_v54 = vmax.f32 %v4130_v51, 0.0  ;;  %v4175_v51 = vld [vmem:[#allocation12 + $0x8] sm:$0xff] }
 0x7c2   : > { %v4104_v36 = vpop.f32.mrf.mxu2 }
 0x7c3   : > { %v4117_v26 = vadd.f32 %v4104_v36, %v3972_v58  ;;  %v4339_v58 = vld [vmem:[#allocation13 + $0x150] sm:$0xff]  ;;  %v4338_v36 = vld [vmem:[#allocation13 + $0x148] sm:$0xff] }
 0x7c4   : > { %v4078_v29 = vpop.f32.mrf.mxu1  ;;  %4352 = vmatpush.msrb.mxu2 %v4339_v58  ;;  %v4542_v58 = vld [vmem:[#allocation13 + $0x3e8] sm:$0xff] }
 0x7c5   : > { %v4131_v50 = vadd.f32 %v4127_v41, %v4117_v26  ;;  %v4118_v11 = vadd.f32 %v4078_v29, %v3973_v13  ;;  %v4262_v26 = vld [vmem:[#allocation13 + $0x50] sm:$0xff]  ;;  %v4337_v29 = vld [vmem:[#allocation13 + $0x140] sm:$0xff] }
 0x7c6   : > { %4353 = vmatpush.msrb.mxu2 %v4338_v36  ;;  %v4277_v13 = vld [vmem:[#allocation13 + $0xc0] sm:$0xff] }
 0x7c7   : > { %v4139_v5 = vmax.f32 %v4131_v50, 0.0  ;;  %v4132_v57 = vadd.f32 %v4126_v45, %v4118_v11  ;;  %v4261_v50 = vld [vmem:[#allocation13 + $0x48] sm:$0xff]  ;;  %v4260_v11 = vld [vmem:[#allocation13 + $0x40] sm:$0xff] }
 0x7c8   : > { %4354 = vmatpush.msrb.mxu2 %v4337_v29  ;;  %v4541_v36 = vld [vmem:[#allocation13 + $0x3e0] sm:$0xff]  ;;  %v4540_v29 = vld [vmem:[#allocation13 + $0x3d8] sm:$0xff] }
 0x7c9   : > { %v7421_v10 = vmax.f32 %v4138_v54, %v4139_v5  ;;  %v4140_v17 = vmax.f32 %v4132_v57, 0.0  ;;  %v4336_v54 = vld [vmem:[#allocation13 + $0x138] sm:$0xff]  ;;  %v4334_v57 = vld [vmem:[#allocation13 + $0x128] sm:$0xff] }
 0x7ca   : > { %v4107_v33 = vpop.f32.mrf.mxu2  ;;  %v4276_v5 = vld [vmem:[#allocation13 + $0xb8] sm:$0xff]  ;;  %4355 = vmatpush.msrb.mxu2 %v4336_v54  ;;  %v4419_v54 = vld [vmem:[#allocation13 + $0x250] sm:$0xff] }
 0x7cb   : > { %v4119_v7 = vadd.f32 %v4107_v33, %v3974_v1  ;;  %v4335_v1 = vld [vmem:[#allocation13 + $0x130] sm:$0xff] }
 0x7cc   : > { %v4081_v62 = vpop.f32.mrf.mxu1  ;;  %v4275_v33 = vld [vmem:[#allocation13 + $0xb0] sm:$0xff]  ;;  %4356 = vmatpush.msrb.mxu2 %v4335_v1  ;;  %v4498_v1 = vld [vmem:[#allocation13 + $0x348] sm:$0xff] }
 0x7cd   : > { %v4133_v6 = vadd.f32 %v4127_v41, %v4119_v7  ;;  %v4120_v25 = vadd.f32 %v4081_v62, %v3975_v60  ;;  %v4274_v7 = vld [vmem:[#allocation13 + $0xa8] sm:$0xff]  ;;  %v4258_v62 = vld [vmem:[#allocation13 + $0x30] sm:$0xff]  ;;  %v4333_v60 = vld [vmem:[#allocation13 + $0x120] sm:$0xff] }
 0x7ce   : > { %4357 = vmatpush.msrb.mxu2 %v4334_v57  ;;  %v4538_v57 = vld [vmem:[#allocation13 + $0x3c8] sm:$0xff] }
 0x7cf   : > { %v4141_v46 = vmax.f32 %v4133_v6, 0.0  ;;  %v4134_v3 = vadd.f32 %v4126_v45, %v4120_v25  ;;  %v4384_v6 = vld [vmem:[#allocation13 + $0x1f8] sm:$0xff] }
 0x7d0   : > { %v4332_v25 = vld [vmem:[#allocation13 + $0x118] sm:$0xff]  ;;  %4358 = vmatpush.msrb.mxu2 %v4333_v60  ;;  %v4537_v60 = vld [vmem:[#allocation13 + $0x3c0] sm:$0xff] }
 0x7d1   : > { %v7426_v15 = vmax.f32 %v4140_v17, %v4141_v46  ;;  %v4142_v14 = vmax.f32 %v4134_v3, 0.0  ;;  %v4273_v17 = vld [vmem:[#allocation13 + $0xa0] sm:$0xff]  ;;  %v4257_v46 = vld [vmem:[#allocation13 + $0x28] sm:$0xff]  ;;  %v4379_v3 = vld [vmem:[#allocation13 + $0x1d0] sm:$0xff] }
 0x7d2   : > { %v4110_v18 = vpop.f32.mrf.mxu2  ;;  %4359 = vmatpush.msrb.mxu2 %v4332_v25  ;;  %v4456_v25 = vld [vmem:[#allocation13 + $0x2b8] sm:$0xff] }
 0x7d3   : > { %v4121_v48 = vadd.f32 %v4110_v18, %v3976_v40  ;;  %v4382_v40 = vld [vmem:[#allocation13 + $0x1e8] sm:$0xff]  ;;  %v4227_v18 = vld [vmem:[#allocation12 + $0x18] sm:$0xff] }
 0x7d4   : > { %v4084_v2 = vpop.f32.mrf.mxu1 }
 0x7d5   : > { %v4135_v23 = vadd.f32 %v4127_v41, %v4121_v48  ;;  %v4122_v19 = vadd.f32 %v4084_v2, %v3977_v34  ;;  %v4378_v48 = vld [vmem:[#allocation13 + $0x1c8] sm:$0xff]  ;;  %v4376_v2 = vld [vmem:[#allocation13 + $0x1b8] sm:$0xff]  ;;  %v4375_v34 = vld [vmem:[#allocation13 + $0x1b0] sm:$0xff] }
 0x7d7   : > { %v4143_v43 = vmax.f32 %v4135_v23, 0.0  ;;  %v4136_v8 = vadd.f32 %v4126_v45, %v4122_v19  ;;  %v4264_v45 = vld [vmem:[#allocation13 + $0x60] sm:$0xff]  ;;  %v4374_v23 = vld [vmem:[#allocation13 + $0x1a8] sm:$0xff]  ;;  %v4272_v19 = vld [vmem:[#allocation13 + $0x98] sm:$0xff] }
 0x7d8   : > { %4311 = vmatpush.msra.mxu1 %v4264_v45  ;;  %v4501_v45 = vld [vmem:[#allocation13 + $0x360] sm:$0xff] }
 0x7d9   : > { %v7429_v22 = vmax.f32 %v4142_v14, %v4143_v43  ;;  %v4144_v27 = vmax.f32 %v4136_v8, 0.0  ;;  %v4256_v14 = vld [vmem:[#allocation13 + $0x20] sm:$0xff]  ;;  %v4255_v43 = vld [vmem:[#allocation13 + $0x18] sm:$0xff]  ;;  %v4330_v8 = vld [vmem:[#allocation13 + $0x108] sm:$0xff] }
 0x7da   : > { %v4113_v24 = vpop.f32.mrf.mxu2  ;;  %4312 = vmatpush.msra.mxu1 %v4263_v56  ;;  %v4462_v56 = vld [vmem:[#allocation13 + $0x2e8] sm:$0xff] }
 0x7db   : > { %v4123_v44 = vadd.f32 %v4113_v24, %v3978_v49  ;;  %v4331_v49 = vld [vmem:[#allocation13 + $0x110] sm:$0xff] }
 0x7dc   : > { %4313 = vmatpush.msra.mxu1 %v4262_v26  ;;  %4360 = vmatpush.msrb.mxu2 %v4331_v49  ;;  %v4271_v24 = vld [vmem:[#allocation13 + $0x90] sm:$0xff]  ;;  %v4420_v26 = vld [vmem:[#allocation13 + $0x258] sm:$0xff] }
 0x7dd   : > { %v4137_v63 = vadd.f32 %v4127_v41, %v4123_v44  ;;  %v4279_v41 = vld [vmem:[#allocation13 + $0xd0] sm:$0xff]  ;;  %v4412_v49 = vld [vmem:[#allocation13 + $0x218] sm:$0xff] }
 0x7de   : > { %4293 = vmatpush.msrb.mxu0 %v4279_v41  ;;  %4314 = vmatpush.msra.mxu1 %v4261_v50  ;;  %v4371_v44 = vld [vmem:[#allocation13 + $0x190] sm:$0xff]  ;;  %v4421_v41 = vld [vmem:[#allocation13 + $0x260] sm:$0xff] }
 0x7df   : > { %v4145_v47 = vmax.f32 %v4137_v63, 0.0  ;;  %v4270_v63 = vld [vmem:[#allocation13 + $0x88] sm:$0xff]  ;;  %4361 = vmatpush.msrb.mxu2 %v4330_v8  ;;  %v4499_v50 = vld [vmem:[#allocation13 + $0x350] sm:$0xff] }
 0x7e0   : > { %4294 = vmatpush.msrb.mxu0 %v4278_v61  ;;  %4315 = vmatpush.msra.mxu1 %v4260_v11  ;;  %v4500_v61 = vld [vmem:[#allocation13 + $0x358] sm:$0xff]  ;;  %v4459_v11 = vld [vmem:[#allocation13 + $0x2d0] sm:$0xff] }
 0x7e1   : > { %v7431_v53 = vmax.f32 %v4144_v27, %v4145_v47  ;;  %v4254_v27 = vld [vmem:[#allocation13 + $0x10] sm:$0xff]  ;;  %v4329_v47 = vld [vmem:[#allocation13 + $0x100] sm:$0xff] }
 0x7e2   : > { %4295 = vmatpush.msrb.mxu0 %v4277_v13  ;;  %4316 = vmatpush.msra.mxu1 %v4259_v4  ;;  %v4460_v13 = vld [vmem:[#allocation13 + $0x2d8] sm:$0xff]  ;;  %v4497_v4 = vld [vmem:[#allocation13 + $0x340] sm:$0xff]  ;;  %v4411_v8 = vld [vmem:[#allocation13 + $0x210] sm:$0xff] }
 0x7e3   : > { %4166 = vmatpush.msrb.mxu3 %v7431_v53  ;;  %4362 = vmatpush.msrb.mxu2 %v4329_v47  ;;  %v4451_v47 = vld [vmem:[#allocation13 + $0x290] sm:$0xff] }
 0x7e4   : > { %4296 = vmatpush.msrb.mxu0 %v4276_v5  ;;  %4317 = vmatpush.msra.mxu1 %v4258_v62  ;;  %v4539_v5 = vld [vmem:[#allocation13 + $0x3d0] sm:$0xff]  ;;  %v4496_v62 = vld [vmem:[#allocation13 + $0x338] sm:$0xff] }
 0x7e5   : > { %4167 = vmatpush.msrb.mxu3 %v7429_v22  ;;  %4507 = vmatpush.msra.mxu2 %v4504_v31  ;;  %v4530_v31 = vld [vmem:[#allocation13 + $0x388] sm:$0xff] }
 0x7e6   : > { %4297 = vmatpush.msrb.mxu0 %v4275_v33  ;;  %4318 = vmatpush.msra.mxu1 %v4257_v46  ;;  %v4418_v33 = vld [vmem:[#allocation13 + $0x248] sm:$0xff]  ;;  %v4536_v46 = vld [vmem:[#allocation13 + $0x3b8] sm:$0xff] }
 0x7e7   : > { %4168 = vmatpush.msrb.mxu3 %v7426_v15  ;;  %4508 = vmatpush.msra.mxu2 %v4503_v28 }
 0x7e8   : > { %4298 = vmatpush.msrb.mxu0 %v4274_v7  ;;  %4319 = vmatpush.msra.mxu1 %v4256_v14  ;;  %v4417_v7 = vld [vmem:[#allocation13 + $0x240] sm:$0xff]  ;;  %v4492_v14 = vld [vmem:[#allocation13 + $0x318] sm:$0xff] }
 0x7e9   : > { %4169 = vmatpush.msrb.mxu3 %v7421_v10  ;;  %4509 = vmatpush.msra.mxu2 %v4502_v30 }
 0x7ea   : > { %5219 = vmatmul.msk.f32.vlgmr.msrb.gmra.mxu3 %vm2840_vm1, %v4150_v12  ;;  %4299 = vmatpush.msrb.mxu0 %v4273_v17  ;;  %v4544_v12 = vld [vmem:[#allocation13 + $0x3f8] sm:$0xff] }
 0x7eb   : > { %4191 = vmatpush.msra.mxu3 %v7431_v53  ;;  %4320 = vmatpush.msra.mxu1 %v4255_v43  ;;  %v4416_v17 = vld [vmem:[#allocation13 + $0x238] sm:$0xff] }
 0x7ec   : > { %4300 = vmatpush.msrb.mxu0 %v4272_v19  ;;  %4510 = vmatpush.msra.mxu2 %v4501_v45  ;;  %v4452_v43 = vld [vmem:[#allocation13 + $0x298] sm:$0xff] }
 0x7ed   : > { %4192 = vmatpush.msra.mxu3 %v7429_v22  ;;  %4321 = vmatpush.msra.mxu1 %v4254_v27  ;;  %v4410_v27 = vld [vmem:[#allocation13 + $0x208] sm:$0xff]  ;;  %v4586_v45 = vld [vmem:[#allocation16 + $0x78] sm:$0xff] }
 0x7ee   : > { %4301 = vmatpush.msrb.mxu0 %v4271_v24  ;;  %4511 = vmatpush.msra.mxu2 %v4500_v61  ;;  %v4532_v24 = vld [vmem:[#allocation13 + $0x398] sm:$0xff] }
 0x7ef   : > { %4193 = vmatpush.msra.mxu3 %v7426_v15  ;;  %4322 = vmatpush.msra.mxu1 %v4253_v42  ;;  %v4409_v42 = vld [vmem:[#allocation13 + $0x200] sm:$0xff] }
 0x7f0   : > { %4302 = vmatpush.msrb.mxu0 %v4270_v63  ;;  %4512 = vmatpush.msra.mxu2 %v4499_v50  ;;  %v4531_v63 = vld [vmem:[#allocation13 + $0x390] sm:$0xff] }
 0x7f1   : > { %4194 = vmatpush.msra.mxu3 %v7421_v10  ;;  %4323 = vmatpush.msra.mxu1 %v4252_v9  ;;  %v4449_v9 = vld [vmem:[#allocation13 + $0x280] sm:$0xff]  ;;  %v4580_v50 = vld [vmem:[#allocation16 + $0x48] sm:$0xff] }
 0x7f2   : > { %5220 = vmatmul.msk.f32.vlgmr.msra.gmra.mxu3 %vm2840_vm1, %v4175_v51  ;;  %4303 = vmatpush.msrb.mxu0 %v4269_v39  ;;  %v4461_v51 = vld [vmem:[#allocation13 + $0x2e0] sm:$0xff]  ;;  %v4450_v39 = vld [vmem:[#allocation13 + $0x288] sm:$0xff] }
 0x7f3   : > { %4217 = vmatpush.msrb.mxu3 %v7431_v53  ;;  %4467 = vmatpush.msrb.mxu1 %v4464_v21 }
 0x7f4   : > { %4427 = vmatpush.msra.mxu0 %v4424_v52  ;;  %4513 = vmatpush.msra.mxu2 %v4498_v1  ;;  %v4576_v1 = vld [vmem:[#allocation16 + $0x28] sm:$0xff] }
 0x7f5   : > { %4218 = vmatpush.msrb.mxu3 %v7429_v22  ;;  %4468 = vmatpush.msrb.mxu1 %v4463_v35 }
 0x7f6   : > { %4428 = vmatpush.msra.mxu0 %v4423_v0  ;;  %4514 = vmatpush.msra.mxu2 %v4497_v4  ;;  %v4574_v4 = vld [vmem:[#allocation16 + $0x18] sm:$0xff] }
 0x7f7   : > { %4219 = vmatpush.msrb.mxu3 %v7426_v15  ;;  %4469 = vmatpush.msrb.mxu1 %v4462_v56 }
 0x7f8   : > { %4429 = vmatpush.msra.mxu0 %v4422_v55  ;;  %4515 = vmatpush.msra.mxu2 %v4496_v62 }
 0x7f9   : > { %4220 = vmatpush.msrb.mxu3 %v7421_v10  ;;  %4470 = vmatpush.msrb.mxu1 %v4461_v51 }
 0x7fa   : > { %5221 = vmatmul.msk.f32.vlgmr.msrb.gmra.mxu3 %vm2840_vm1, %v4201_v20  ;;  %4430 = vmatpush.msra.mxu0 %v4421_v41  ;;  %v4458_v20 = vld [vmem:[#allocation13 + $0x2c8] sm:$0xff] }
 0x7fb   : > { %4243 = vmatpush.msra.mxu3 %v7431_v53  ;;  %v4370_v53 = vld [vmem:[#allocation13 + $0x188] sm:$0xff]  ;;  %4471 = vmatpush.msrb.mxu1 %v4460_v13  ;;  %v4581_v13 = vld [vmem:[#allocation16 + $0x50] sm:$0xff] }
 0x7fc   : > { %4431 = vmatpush.msra.mxu0 %v4420_v26  ;;  %v4584_v41 = vld [vmem:[#allocation16 + $0x68] sm:$0xff]  ;;  %v4582_v26 = vld [vmem:[#allocation16 + $0x58] sm:$0xff] }
 0x7fd   : > { %4244 = vmatpush.msra.mxu3 %v7429_v22  ;;  %v4372_v22 = vld [vmem:[#allocation13 + $0x198] sm:$0xff]  ;;  %4472 = vmatpush.msrb.mxu1 %v4459_v11 }
 0x7fe   : > { %4432 = vmatpush.msra.mxu0 %v4419_v54  ;;  %v4579_v54 = vld [vmem:[#allocation16 + $0x40] sm:$0xff]  ;;  %v4577_v11 = vld [vmem:[#allocation16 + $0x30] sm:$0xff] }
 0x7ff   : > { %4245 = vmatpush.msra.mxu3 %v7426_v15  ;;  %v4381_v15 = vld [vmem:[#allocation13 + $0x1e0] sm:$0xff]  ;;  %4473 = vmatpush.msrb.mxu1 %v4458_v20 }
 0x800   : > { %4433 = vmatpush.msra.mxu0 %v4418_v33  ;;  %v4575_v33 = vld [vmem:[#allocation16 + $0x20] sm:$0xff] }
 0x801   : > { %4246 = vmatpush.msra.mxu3 %v7421_v10  ;;  %v4377_v10 = vld [vmem:[#allocation13 + $0x1c0] sm:$0xff] }
 0x802   : > { %5222 = vmatmul.msk.f32.vlgmr.msra.gmra.mxu3 %vm2840_vm1, %v4227_v18  ;;  %4434 = vmatpush.msra.mxu0 %v4417_v7  ;;  %v4535_v18 = vld [vmem:[#allocation13 + $0x3b0] sm:$0xff]  ;;  %v4571_v20 = vld [vmem:[#allocation16] sm:$0xff] }
 0x803   : > { %4387 = vmatpush.msrb.mxu3 %v4384_v6  ;;  %v4457_v6 = vld [vmem:[#allocation13 + $0x2c0] sm:$0xff]  ;;  %v4572_v7 = vld [vmem:[#allocation16 + $0x8] sm:$0xff] }
 0x804   : > { %4435 = vmatpush.msra.mxu0 %v4416_v17  ;;  %4474 = vmatpush.msrb.mxu1 %v4457_v6 }
 0x805   : > { %4388 = vmatpush.msrb.mxu3 %v4383_v16  ;;  %v4495_v16 = vld [vmem:[#allocation13 + $0x330] sm:$0xff] }
 0x806   : > { %4516 = vmatpush.msra.mxu2 %v4495_v16  ;;  %4475 = vmatpush.msrb.mxu1 %v4456_v25 }
 0x807   : > { %4389 = vmatpush.msrb.mxu3 %v4382_v40  ;;  %v4415_v40 = vld [vmem:[#allocation13 + $0x230] sm:$0xff] }
 0x808   : > { %4436 = vmatpush.msra.mxu0 %v4415_v40 }
 0x809   : > { %4390 = vmatpush.msrb.mxu3 %v4381_v15  ;;  %v4455_v15 = vld [vmem:[#allocation13 + $0x2b0] sm:$0xff] }
 0x80a   : > { %4476 = vmatpush.msrb.mxu1 %v4455_v15 }
 0x80b   : > { %4391 = vmatpush.msrb.mxu3 %v4380_v32  ;;  %v4494_v32 = vld [vmem:[#allocation13 + $0x328] sm:$0xff] }
 0x80c   : > { %4517 = vmatpush.msra.mxu2 %v4494_v32 }
 0x80d   : > { %4392 = vmatpush.msrb.mxu3 %v4379_v3  ;;  %v4414_v3 = vld [vmem:[#allocation13 + $0x228] sm:$0xff] }
 0x80e   : > { %4437 = vmatpush.msra.mxu0 %v4414_v3 }
 0x80f   : > { %4393 = vmatpush.msrb.mxu3 %v4378_v48  ;;  %v4493_v48 = vld [vmem:[#allocation13 + $0x320] sm:$0xff] }
 0x810   : > { %4518 = vmatpush.msra.mxu2 %v4493_v48 }
 0x811   : > { %4394 = vmatpush.msrb.mxu3 %v4377_v10  ;;  %v4534_v10 = vld [vmem:[#allocation13 + $0x3a8] sm:$0xff] }
 0x812   : > { %4519 = vmatpush.msra.mxu2 %v4492_v14  ;;  %v4587_v14 = vld [vmem:[#allocation18] sm:$0x1] }
 0x813   : > { %4395 = vmatpush.msrb.mxu3 %v4376_v2  ;;  %v4454_v2 = vld [vmem:[#allocation13 + $0x2a8] sm:$0xff] }
 0x814   : > { %4477 = vmatpush.msrb.mxu1 %v4454_v2  ;;  %v4568_v2 = vld [vmem:[#allocation15] sm:$0x1] }
 0x815   : > { %4396 = vmatpush.msrb.mxu3 %v4375_v34  ;;  %v4413_v34 = vld [vmem:[#allocation13 + $0x220] sm:$0xff] }
 0x816   : > { %4438 = vmatpush.msra.mxu0 %v4413_v34 }
 0x817   : > { %4397 = vmatpush.msrb.mxu3 %v4374_v23  ;;  %v4533_v23 = vld [vmem:[#allocation13 + $0x3a0] sm:$0xff] }
 0x818   : > { %4439 = vmatpush.msra.mxu0 %v4412_v49 }
 0x819   : > { %4398 = vmatpush.msrb.mxu3 %v4373_v38  ;;  %v4453_v38 = vld [vmem:[#allocation13 + $0x2a0] sm:$0xff] }
 0x81a   : > { %4478 = vmatpush.msrb.mxu1 %v4453_v38  ;;  %4440 = vmatpush.msra.mxu0 %v4411_v8 }
 0x81b   : > { %4399 = vmatpush.msrb.mxu3 %v4372_v22  ;;  %v4491_v22 = vld [vmem:[#allocation13 + $0x310] sm:$0xff] }
 0x81c   : > { %4520 = vmatpush.msra.mxu2 %v4491_v22  ;;  %4479 = vmatpush.msrb.mxu1 %v4452_v43 }
 0x81d   : > { %4400 = vmatpush.msrb.mxu3 %v4371_v44  ;;  %v4490_v44 = vld [vmem:[#allocation13 + $0x308] sm:$0xff]  ;;  %4441 = vmatpush.msra.mxu0 %v4410_v27 }
 0x81e   : > { %4521 = vmatpush.msra.mxu2 %v4490_v44  ;;  %4480 = vmatpush.msrb.mxu1 %v4451_v47 }
 0x81f   : > { %4401 = vmatpush.msrb.mxu3 %v4370_v53  ;;  %v4489_v53 = vld [vmem:[#allocation13 + $0x300] sm:$0xff]  ;;  %4442 = vmatpush.msra.mxu0 %v4409_v42 }
 0x820   : > { %4522 = vmatpush.msra.mxu2 %v4489_v53  ;;  %4481 = vmatpush.msrb.mxu1 %v4450_v39 }
 0x821   : > { %4402 = vmatpush.msrb.mxu3 %v4369_v37  ;;  %v4529_v37 = vld [vmem:[#allocation13 + $0x380] sm:$0xff] }
 0x822   : > { %4482 = vmatpush.msrb.mxu1 %v4449_v9 }
 0x823   : > { %4547 = vmatpush.msra.mxu3 %v4544_v12 }
 0x825   : > { %4548 = vmatpush.msra.mxu3 %v4543_v59 }
 0x827   : > { %4549 = vmatpush.msra.mxu3 %v4542_v58  ;;  %v4585_v58 = vld [vmem:[#allocation16 + $0x70] sm:$0xff] }
 0x829   : > { %4550 = vmatpush.msra.mxu3 %v4541_v36  ;;  %v4583_v36 = vld [vmem:[#allocation16 + $0x60] sm:$0xff] }
 0x82b   : > { %4551 = vmatpush.msra.mxu3 %v4540_v29 }
 0x82d   : > { %4552 = vmatpush.msra.mxu3 %v4539_v5  ;;  %v4578_v5 = vld [vmem:[#allocation16 + $0x38] sm:$0xff] }
 0x82f   : > { %4553 = vmatpush.msra.mxu3 %v4538_v57  ;;  %v4573_v57 = vld [vmem:[#allocation16 + $0x10] sm:$0xff] }
 0x831   : > { %4554 = vmatpush.msra.mxu3 %v4537_v60 }
 0x833   : > { %4555 = vmatpush.msra.mxu3 %v4536_v46 }
 0x835   : > { %4556 = vmatpush.msra.mxu3 %v4535_v18 }
 0x837   : > { %4557 = vmatpush.msra.mxu3 %v4534_v10 }
 0x839   : > { %4558 = vmatpush.msra.mxu3 %v4533_v23 }
 0x83b   : > { %4559 = vmatpush.msra.mxu3 %v4532_v24 }
 0x83d   : > { %4560 = vmatpush.msra.mxu3 %v4531_v63 }
 0x83f   : > { %4561 = vmatpush.msra.mxu3 %v4530_v31 }
 0x841   : > { %4562 = vmatpush.msra.mxu3 %v4529_v37 }
 0x86d   : > { %v4171_v19 = vpop.f32.mrf.mxu3 }
 0x875   : > { %v4196_v52 = vpop.f32.mrf.mxu3 }
 0x876   : > { %v4199_v21 = vmax.f32 %v4171_v19, %v4196_v52 }
 0x87d   : > { %v4222_v12 = vpop.f32.mrf.mxu3 }
 0x87e   : > { %v4225_v28 = vmax.f32 %v4199_v21, %v4222_v12 }
 0x885   : > { %v4248_v0 = vpop.f32.mrf.mxu3 }
 0x886   : > { %v4251_v59 = vmax.f32 %v4225_v28, %v4248_v0 }
 0x888   : > { %v4345_v30 = vrot.slane %v4251_v59, 2  ;;  %v4286_v55 = vrot.slane %v4251_v59, 1  ;;  %v4385_v35 = vrot.slane %v4251_v59, 3  ;;  %4324 = vmatmul.f32.vlgmr.msra.gmra.mxu1 %v4251_v59  ;;  %v4465_v56 = vrot.slane %v4251_v59, 5 }
 0x889   : > { %v4505_v61 = vrot.slane %v4251_v59, 6  ;;  %v4425_v51 = vrot.slane %v4251_v59, 4  ;;  %v4545_v29 = vrot.slane %v4251_v59, 7 }
 0x88a   : > { %4363 = vmatmul.f32.vlgmr.msrb.gmra.mxu2 %v4345_v30  ;;  %4304 = vmatmul.f32.vlgmr.msrb.gmra.mxu0 %v4286_v55 }
 0x88b   : > { %4403 = vmatmul.f32.vlgmr.msrb.gmra.mxu3 %v4385_v35  ;;  %4588 = vmatpush.msrb.mxu0 %v4586_v45 }
 0x88d   : > { %4589 = vmatpush.msrb.mxu0 %v4585_v58 }
 0x88f   : > { %4590 = vmatpush.msrb.mxu0 %v4584_v41 }
 0x890   : > { %4483 = vmatmul.f32.vlgmr.msrb.gmra.mxu1 %v4465_v56 }
 0x891   : > { %4591 = vmatpush.msrb.mxu0 %v4583_v36 }
 0x892   : > { %4523 = vmatmul.f32.vlgmr.msra.gmra.mxu2 %v4505_v61  ;;  %4443 = vmatmul.f32.vlgmr.msra.gmra.mxu0 %v4425_v51 }
 0x893   : > { %4563 = vmatmul.f32.vlgmr.msra.gmra.mxu3 %v4545_v29  ;;  %4592 = vmatpush.msrb.mxu0 %v4582_v26 }
 0x895   : > { %4593 = vmatpush.msrb.mxu0 %v4581_v13 }
 0x897   : > { %4594 = vmatpush.msrb.mxu0 %v4580_v50 }
 0x899   : > { %4595 = vmatpush.msrb.mxu0 %v4579_v54 }
 0x89b   : > { %4596 = vmatpush.msrb.mxu0 %v4578_v5 }
 0x89d   : > { %4597 = vmatpush.msrb.mxu0 %v4577_v11 }
 0x89f   : > { %4598 = vmatpush.msrb.mxu0 %v4576_v1 }
 0x8a1   : > { %4599 = vmatpush.msrb.mxu0 %v4575_v33 }
 0x8a3   : > { %4600 = vmatpush.msrb.mxu0 %v4574_v4 }
 0x8a5   : > { %4601 = vmatpush.msrb.mxu0 %v4573_v57 }
 0x8a7   : > { %4602 = vmatpush.msrb.mxu0 %v4572_v7 }
 0x8a9   : > { %4603 = vmatpush.msrb.mxu0 %v4571_v20 }
 0x905   : > { %v4325_v60 = vpop.f32.mrf.mxu1 }
 0x907   : > { %v4305_v62 = vpop.f32.mrf.mxu0 }
 0x908   : > { %v4326_v6 = vadd.f32 %v4325_v60, %v4305_v62 }
 0x90d   : > { %v4364_v17 = vpop.f32.mrf.mxu2  ;;  %v4484_v15 = vpop.f32.mrf.mxu1 }
 0x90e   : > { %v4367_v46 = vadd.f32 %v4364_v17, %v4326_v6  ;;  %v4404_v25 = vpop.f32.mrf.mxu3 }
 0x90f   : > { %v4444_v40 = vpop.f32.mrf.mxu0 }
 0x910   : > { %v4407_v16 = vadd.f32 %v4404_v25, %v4367_v46 }
 0x912   : > { %v4447_v18 = vadd.f32 %v4444_v40, %v4407_v16 }
 0x914   : > { %v4487_v32 = vadd.f32 %v4484_v15, %v4447_v18 }
 0x915   : > { %v4524_v3 = vpop.f32.mrf.mxu2 }
 0x916   : > { %v4527_v48 = vadd.f32 %v4524_v3, %v4487_v32  ;;  %v4564_v10 = vpop.f32.mrf.mxu3 }
 0x918   : > { %v4567_v34 = vadd.f32 %v4564_v10, %v4527_v48 }
 0x91a   : > { %v4569_v23 = vadd.f32 %v4568_v2, %v4567_v34 }
 0x91c   : > { %v4570_v38 = vmax.f32 %v4569_v23, 0.0 }
 0x91e   : > { %4604 = vmatmul.f32.vlgmr.msrb.gmra.mxu0 %v4570_v38 }
 0x99b   : > { %v4605_v43 = vpop.f32.mrf.mxu0 }
 0x99c   : > { %v4606_v19 = vadd.f32 %v4605_v43, %v4587_v14 }
 0x99e   : > { %v4608_v49 = vperm.slane %v4606_v19, 0 }
 0x9a0   : > { %4609 = vst [vmem:[%s585_s30] sm:$0xff] %v4608_v49 }
 0x9a1 PF: > { %s28_s21 = sadd.s32 1, %s5715_s21  }
 0x9a2   : > { %p25_p7 = scmp.ge.s32.totalorder %s28_s21, 4  }
 0x9a4   :  { %27 = sbr.rel (!%p25_p7) target bundleno = 10 (0xa), region = 182 }
 0x9a9   :  { %4629 = vsyncpa [#allocation3], 1 }
 0x9aa   :  { %4631 = vsyncpa [#allocation3 + $0x1], 1 }
 0x9ab   :  { %4632 = vsyncpa [#allocation5], 1 }
 0x9ac   :  { %4633 = vsyncpa [#allocation8], 1 }
 0x9ad   :  { %4634 = vsyncpa [#allocation11], 1 }
 0x9ae   :  { %4635 = vsyncpa [#allocation14], 1 }
 0x9af   :  { %4636 = vsyncpa [#allocation17], 1 }

</bundles_post_ra>
